<compile_context>
chip_gen: v6e
topology: v6e:2x2x1
jax: 0.10.0
libtpu: 0.0.40
codegen_flags: <defaults>
</compile_context>

<pallas_src>
import functools

import jax
import jax.numpy as jnp
from jax.experimental import pallas as pl
from jax.experimental.pallas import tpu as pltpu


# ----------------------------------------------------------------------------
# Helpers
# ----------------------------------------------------------------------------
def _round_up(n, m):
    return ((n + m - 1) // m) * m


def _pad_gate_rows(w, H, H_pad):
    """Pad the gate-interleaved leading axis (4H,) -> (4H_pad,) per gate."""
    rest = w.shape[1:]
    w4 = w.reshape((4, H) + rest)
    pads = [(0, 0), (0, H_pad - H)] + [(0, 0)] * len(rest)
    return jnp.pad(w4, pads).reshape((4 * H_pad,) + rest)


# ----------------------------------------------------------------------------
# Fused multi-layer LSTM kernel.  Gate order follows PyTorch: i, f, g, o.
#
# refs layout:
#   refs[0]                 : x chunk, (T*B_pad, E_pad) f32  (time-major rows)
#   refs[1 : 1+3L]          : per layer [wih_t (D_pad,4H_pad) bf16,
#                                        whh_t (H_pad,4H_pad) bf16,
#                                        bias  (1,4H_pad)     f32]
#   refs[1+3L], refs[2+3L]  : h_out, c_out  (L, B_pad, H_pad) f32
#   refs[3+3L:]             : scratches h_scr, c_scr, act_scr, gx_scr
# ----------------------------------------------------------------------------
def _encoder_kernel(*refs, num_layers, T, B_pad, H_pad, seq_len):
    nw = 3 * num_layers
    x_ref = refs[0]
    w_refs = refs[1:1 + nw]
    h_out_ref = refs[1 + nw]
    c_out_ref = refs[2 + nw]
    h_scr, c_scr, act_scr, gx_scr = refs[3 + nw:]

    chunk = pl.program_id(0)

    @pl.when(chunk == 0)
    def _():
        h_scr[...] = jnp.zeros_like(h_scr)
        c_scr[...] = jnp.zeros_like(c_scr)

    for layer in range(num_layers):
        wih = w_refs[3 * layer][...]        # (D_pad, 4H_pad) bf16, resident
        whh = w_refs[3 * layer + 1][...]    # (H_pad, 4H_pad) bf16, resident
        bias = w_refs[3 * layer + 2][...]   # (1, 4H_pad) f32

        # Layer input for the whole chunk (time-major rows, lane-dense).
        x_in = x_ref[...] if layer == 0 else act_scr[...]

        # One chunk-wide input-projection GEMM, bias folded in (off the
        # sequential critical path).
        gx_scr[...] = (
            jnp.dot(x_in.astype(jnp.bfloat16), wih,
                    preferred_element_type=jnp.float32) + bias)

        def step(t, carry, layer=layer):
            row = pl.multiple_of(t * B_pad, B_pad)
            gx_t = gx_scr[pl.ds(row, B_pad), :]          # (B_pad, 4H_pad) f32
            h_prev = h_scr[layer]                        # (B_pad, H_pad) f32
            c_prev = c_scr[layer]

            gates = gx_t + jnp.dot(h_prev.astype(jnp.bfloat16), whh,
                                   preferred_element_type=jnp.float32)

            # Lane-aligned gate slices (H_pad is a multiple of 128).
            i_g = jax.nn.sigmoid(gates[:, 0 * H_pad:1 * H_pad])
            f_g = jax.nn.sigmoid(gates[:, 1 * H_pad:2 * H_pad])
            g_g = jnp.tanh(gates[:, 2 * H_pad:3 * H_pad])
            o_g = jax.nn.sigmoid(gates[:, 3 * H_pad:4 * H_pad])

            c_new = f_g * c_prev + i_g * g_g
            h_new = o_g * jnp.tanh(c_new)

            # Mask padded timesteps of the last chunk so the final (h, c)
            # correspond to step seq_len - 1.
            valid = (chunk * T + t) < seq_len
            h_scr[layer] = jnp.where(valid, h_new, h_prev)
            c_scr[layer] = jnp.where(valid, c_new, c_prev)

            # Chunk activations for the next layer stay in VMEM.
            act_scr[pl.ds(row, B_pad), :] = h_new
            return carry

        jax.lax.fori_loop(0, T, step, 0, unroll=True)

    # Constant-index output blocks stay resident; write every chunk (cheap).
    h_out_ref[...] = h_scr[...]
    c_out_ref[...] = c_scr[...]


# ----------------------------------------------------------------------------
# Parameter preparation: pad / transpose / cast once (not per forward call).
# ----------------------------------------------------------------------------
def init_encoder_params(key, input_size, embedding_size, hidden_size, num_layers):
    params = {}
    key, k_emb = jax.random.split(key)
    params["embedding"] = jax.random.normal(
        k_emb, (input_size, embedding_size), jnp.float32)  # nn.Embedding: N(0, 1)

    bound = 1.0 / jnp.sqrt(hidden_size)
    layers = []
    for layer in range(num_layers):
        in_dim = embedding_size if layer == 0 else hidden_size
        key, k1, k2, k3, k4 = jax.random.split(key, 5)
        layers.append(dict(
            w_ih=jax.random.uniform(k1, (4 * hidden_size, in_dim),
                                    jnp.float32, -bound, bound),
            w_hh=jax.random.uniform(k2, (4 * hidden_size, hidden_size),
                                    jnp.float32, -bound, bound),
            b_ih=jax.random.uniform(k3, (4 * hidden_size,),
                                    jnp.float32, -bound, bound),
            b_hh=jax.random.uniform(k4, (4 * hidden_size,),
                                    jnp.float32, -bound, bound),
        ))
    params["lstm"] = layers
    return params


def prepare_encoder_params(params, embedding_size, hidden_size):
    """Pad to (8, 128) tiles, transpose weights, cast matmul operands to bf16."""
    E, H = embedding_size, hidden_size
    E_pad = _round_up(E, 128)
    H_pad = _round_up(H, 128)

    emb = jnp.asarray(params["embedding"], jnp.float32)
    emb = jnp.pad(emb, ((0, 0), (0, E_pad - E)))

    layers = []
    for li, lp in enumerate(params["lstm"]):
        in_dim = E if li == 0 else H
        in_pad = E_pad if li == 0 else H_pad
        w_ih = jnp.asarray(lp["w_ih"], jnp.float32)                # (4H, in_dim)
        w_hh = jnp.asarray(lp["w_hh"], jnp.float32)                # (4H, H)
        b = jnp.asarray(lp["b_ih"] + lp["b_hh"], jnp.float32)      # (4H,)

        w_ih_p = _pad_gate_rows(w_ih, H, H_pad)                    # (4H_pad, in_dim)
        w_ih_p = jnp.pad(w_ih_p, ((0, 0), (0, in_pad - in_dim)))   # (4H_pad, in_pad)
        w_hh_p = _pad_gate_rows(w_hh, H, H_pad)                    # (4H_pad, H)
        w_hh_p = jnp.pad(w_hh_p, ((0, 0), (0, H_pad - H)))         # (4H_pad, H_pad)
        b_p = _pad_gate_rows(b.reshape(4 * H, 1), H, H_pad).reshape(1, 4 * H_pad)

        layers.append(dict(
            wih_t=w_ih_p.T.astype(jnp.bfloat16),   # (in_pad, 4H_pad)
            whh_t=w_hh_p.T.astype(jnp.bfloat16),   # (H_pad, 4H_pad)
            bias=b_p,                              # (1, 4H_pad) f32
        ))

    return dict(embedding=emb, layers=layers, num_layers=len(layers),
                embedding_size=E, emb_pad=E_pad,
                hidden_size=H, hidden_pad=H_pad)


# ----------------------------------------------------------------------------
# Encoder forward: embedding gather (glue) + one fused Pallas LSTM kernel.
# ----------------------------------------------------------------------------
def encoder_forward(prep, x, *, time_chunk=8):
    """x: (seq_len, batch) int32 token ids -> (hidden, cell),
    each (num_layers, batch, hidden_size)."""
    S, B = x.shape
    L = prep["num_layers"]
    H, H_pad = prep["hidden_size"], prep["hidden_pad"]
    E_pad = prep["emb_pad"]

    T = time_chunk
    S_pad = _round_up(S, T)
    B_pad = _round_up(B, 8)
    num_chunks = S_pad // T

    # Embedding lookup (gather) + dropout (identity in eval mode) -- glue.
    emb = jnp.take(prep["embedding"], x, axis=0)               # (S, B, E_pad) f32
    emb = jnp.pad(emb, ((0, S_pad - S), (0, B_pad - B), (0, 0)))
    x_flat = emb.reshape(S_pad * B_pad, E_pad)                 # time-major rows

    in_specs = [pl.BlockSpec((T * B_pad, E_pad), lambda c: (c, 0))]
    flat_weights = []
    for li, lp in enumerate(prep["layers"]):
        d_pad = lp["wih_t"].shape[0]
        in_specs += [
            pl.BlockSpec((d_pad, 4 * H_pad), lambda c: (0, 0)),   # W_ih^T (resident)
            pl.BlockSpec((H_pad, 4 * H_pad), lambda c: (0, 0)),   # W_hh^T (resident)
            pl.BlockSpec((1, 4 * H_pad), lambda c: (0, 0)),       # bias
        ]
        flat_weights += [lp["wih_t"], lp["whh_t"], lp["bias"]]

    out_specs = [
        pl.BlockSpec((L, B_pad, H_pad), lambda c: (0, 0, 0)),     # final h (all layers)
        pl.BlockSpec((L, B_pad, H_pad), lambda c: (0, 0, 0)),     # final c (all layers)
    ]
    out_shape = (
        jax.ShapeDtypeStruct((L, B_pad, H_pad), jnp.float32),
        jax.ShapeDtypeStruct((L, B_pad, H_pad), jnp.float32),
    )
    scratch_shapes = [
        pltpu.VMEM((L, B_pad, H_pad), jnp.float32),          # h carry per layer
        pltpu.VMEM((L, B_pad, H_pad), jnp.float32),          # c carry per layer
        pltpu.VMEM((T * B_pad, H_pad), jnp.float32),         # inter-layer chunk acts
        pltpu.VMEM((T * B_pad, 4 * H_pad), jnp.float32),     # chunk input-proj gates
    ]

    kernel = functools.partial(
        _encoder_kernel, num_layers=L, T=T, B_pad=B_pad, H_pad=H_pad, seq_len=S)

    grid_spec = pltpu.PrefetchScalarGridSpec(
        num_scalar_prefetch=0,
        grid=(num_chunks,),
        in_specs=in_specs,
        out_specs=out_specs,
        scratch_shapes=scratch_shapes,
    )

    h_pad_out, c_pad_out = pl.pallas_call(
        kernel,
        out_shape=out_shape,
        grid_spec=grid_spec,
        compiler_params=pltpu.CompilerParams(
            dimension_semantics=("arbitrary",)),   # sequential recurrence over time
    )(x_flat, *flat_weights)

    return h_pad_out[:, :B, :H], c_pad_out[:, :B, :H]


# ----------------------------------------------------------------------------
# Pure-JAX f32 reference (for correctness check of the kernel).
# ----------------------------------------------------------------------------
def _encoder_reference(params, x):
    emb = jnp.take(params["embedding"], x, axis=0)   # (S, B, E)
    layer_in = emb
    hs, cs = [], []
    B = x.shape[1]
    for lp in params["lstm"]:
        w_ih, w_hh = lp["w_ih"], lp["w_hh"]
        b = lp["b_ih"] + lp["b_hh"]
        H = w_hh.shape[1]

        def step(carry, x_t, w_ih=w_ih, w_hh=w_hh, b=b, H=H):
            h, c = carry
            g = x_t @ w_ih.T + h @ w_hh.T + b
            i = jax.nn.sigmoid(g[:, 0 * H:1 * H])
            f = jax.nn.sigmoid(g[:, 1 * H:2 * H])
            gg = jnp.tanh(g[:, 2 * H:3 * H])
            o = jax.nn.sigmoid(g[:, 3 * H:4 * H])
            c = f * c + i * gg
            h = o * jnp.tanh(c)
            return (h, c), h

        init = (jnp.zeros((B, H), jnp.float32), jnp.zeros((B, H), jnp.float32))
        (h, c), outs = jax.lax.scan(step, init, layer_in)
        layer_in = outs
        hs.append(h)
        cs.append(c)
    return jnp.stack(hs, axis=0), jnp.stack(cs, axis=0)


# ----------------------------------------------------------------------------
# Demo
# ----------------------------------------------------------------------------
if __name__ == "__main__":
    input_size = 16       # vocab
    embedding_size = 32
    hidden_size = 32
    num_layers = 2
    seq_len = 8
    batch = 4

    key = jax.random.PRNGKey(0)
    key, k_params, k_x = jax.random.split(key, 3)

    params = init_encoder_params(
        k_params, input_size, embedding_size, hidden_size, num_layers)
    prep = prepare_encoder_params(params, embedding_size, hidden_size)

    x = jax.random.randint(k_x, (seq_len, batch), 0, input_size, jnp.int32)

    fwd = jax.jit(functools.partial(encoder_forward, prep))
    hidden, cell = fwd(x)
    hidden = jax.block_until_ready(hidden)
    cell = jax.block_until_ready(cell)

    assert hidden.shape == (num_layers, batch, hidden_size)
    assert cell.shape == (num_layers, batch, hidden_size)
    assert bool(jnp.all(jnp.isfinite(hidden))) and bool(jnp.all(jnp.isfinite(cell)))

    # Compare against the pure-JAX f32 reference (kernel uses bf16 matmul
    # operands, so allow a modest tolerance).
    h_ref, c_ref = _encoder_reference(params, x)
    err_h = float(jnp.max(jnp.abs(hidden - h_ref)))
    err_c = float(jnp.max(jnp.abs(cell - c_ref)))
    assert err_h < 0.1 and err_c < 0.1, (err_h, err_c)

    print("KERNEL_OK")
</pallas_src>

<mosaic_0001>
module attributes {stable_mosaic.version = 11 : i64} {
  func.func @_encoder_kernel(%arg0: i32, %arg1: memref<64x128xf32, #tpu.memory_space<vmem>>, %arg2: memref<128x512xbf16, #tpu.memory_space<vmem>>, %arg3: memref<128x512xbf16, #tpu.memory_space<vmem>>, %arg4: memref<1x512xf32, #tpu.memory_space<vmem>>, %arg5: memref<128x512xbf16, #tpu.memory_space<vmem>>, %arg6: memref<128x512xbf16, #tpu.memory_space<vmem>>, %arg7: memref<1x512xf32, #tpu.memory_space<vmem>>, %arg8: memref<2x8x128xf32, #tpu.memory_space<vmem>>, %arg9: memref<2x8x128xf32, #tpu.memory_space<vmem>>, %arg10: memref<2x8x128xf32, #tpu.memory_space<vmem>>, %arg11: memref<2x8x128xf32, #tpu.memory_space<vmem>>, %arg12: memref<64x128xf32, #tpu.memory_space<vmem>>, %arg13: memref<64x512xf32, #tpu.memory_space<vmem>>) attributes {dimension_semantics = [#tpu.dimension_semantics<arbitrary>], iteration_bounds = array<i64: 1>, scalar_prefetch = 0 : i64, scratch_operands = 4 : i64, tpu.core_type = #tpu.core_type<tc>, window_params = [{transform_indices = @transform_0, window_bounds = array<i64: 64, 128>}, {pipeline_mode = #tpu.pipeline_mode<synchronous>, transform_indices = @transform_1, window_bounds = array<i64: 128, 512>}, {pipeline_mode = #tpu.pipeline_mode<synchronous>, transform_indices = @transform_2, window_bounds = array<i64: 128, 512>}, {pipeline_mode = #tpu.pipeline_mode<synchronous>, transform_indices = @transform_3, window_bounds = array<i64: 1, 512>}, {pipeline_mode = #tpu.pipeline_mode<synchronous>, transform_indices = @transform_4, window_bounds = array<i64: 128, 512>}, {pipeline_mode = #tpu.pipeline_mode<synchronous>, transform_indices = @transform_5, window_bounds = array<i64: 128, 512>}, {pipeline_mode = #tpu.pipeline_mode<synchronous>, transform_indices = @transform_6, window_bounds = array<i64: 1, 512>}, {pipeline_mode = #tpu.pipeline_mode<synchronous>, transform_indices = @transform_7, window_bounds = array<i64: 2, 8, 128>}, {pipeline_mode = #tpu.pipeline_mode<synchronous>, transform_indices = @transform_8, window_bounds = array<i64: 2, 8, 128>}]} {
    %c0_i32 = arith.constant 0 : i32
    %0 = arith.cmpi eq, %arg0, %c0_i32 : i32
    %1 = arith.extui %0 : i1 to i32
    %c0_i32_0 = arith.constant 0 : i32
    %2 = arith.cmpi ne, %1, %c0_i32_0 : i32
    scf.if %2 {
      %cst_378 = arith.constant 0.000000e+00 : f32
      %809 = vector.broadcast %cst_378 : f32 to vector<2x8x128xf32>
      %c0_379 = arith.constant 0 : index
      %c0_380 = arith.constant 0 : index
      %c0_381 = arith.constant 0 : index
      %810 = vector.load %arg10[%c0_379, %c0_380, %c0_381] : memref<2x8x128xf32, #tpu.memory_space<vmem>>, vector<2x8x128xf32>
      tpu.vector_store %arg10[%c0_379, %c0_380, %c0_381], %809 {strides = array<i32>} : memref<2x8x128xf32, #tpu.memory_space<vmem>>, vector<2x8x128xf32>,
      %cst_382 = arith.constant 0.000000e+00 : f32
      %811 = vector.broadcast %cst_382 : f32 to vector<2x8x128xf32>
      %c0_383 = arith.constant 0 : index
      %c0_384 = arith.constant 0 : index
      %c0_385 = arith.constant 0 : index
      %812 = vector.load %arg11[%c0_383, %c0_384, %c0_385] : memref<2x8x128xf32, #tpu.memory_space<vmem>>, vector<2x8x128xf32>
      tpu.vector_store %arg11[%c0_383, %c0_384, %c0_385], %811 {strides = array<i32>} : memref<2x8x128xf32, #tpu.memory_space<vmem>>, vector<2x8x128xf32>,
    } else {
    }
    %c0 = arith.constant 0 : index
    %c0_1 = arith.constant 0 : index
    %3 = vector.load %arg2[%c0, %c0_1] : memref<128x512xbf16, #tpu.memory_space<vmem>>, vector<128x512xbf16>
    %c0_2 = arith.constant 0 : index
    %c0_3 = arith.constant 0 : index
    %4 = vector.load %arg3[%c0_2, %c0_3] : memref<128x512xbf16, #tpu.memory_space<vmem>>, vector<128x512xbf16>
    %c0_4 = arith.constant 0 : index
    %c0_5 = arith.constant 0 : index
    %5 = vector.load %arg4[%c0_4, %c0_5] : memref<1x512xf32, #tpu.memory_space<vmem>>, vector<1x512xf32>
    %c0_6 = arith.constant 0 : index
    %c0_7 = arith.constant 0 : index
    %6 = vector.load %arg1[%c0_6, %c0_7] : memref<64x128xf32, #tpu.memory_space<vmem>>, vector<64x128xf32>
    %7 = arith.truncf %6 : vector<64x128xf32> to vector<64x128xbf16>
    %cst = arith.constant dense<0.000000e+00> : vector<64x512xf32>
    %8 = tpu.matmul %7, %3, %cst {dimension_numbers = #tpu.dot_dimension_numbers<[1], [0], [0], [1], [0, 0, 1, 1], [], []>} : vector<64x128xbf16>, vector<128x512xbf16>, vector<64x512xf32> -> vector<64x512xf32>
    %9 = vector.broadcast %5 : vector<1x512xf32> to vector<64x512xf32>
    %10 = arith.addf %8, %9 : vector<64x512xf32>
    %c0_8 = arith.constant 0 : index
    %c0_9 = arith.constant 0 : index
    %11 = vector.load %arg13[%c0_8, %c0_9] : memref<64x512xf32, #tpu.memory_space<vmem>>, vector<64x512xf32>
    tpu.vector_store %arg13[%c0_8, %c0_9], %10 {strides = array<i32>} : memref<64x512xf32, #tpu.memory_space<vmem>>, vector<64x512xf32>,
    %c0_i32_10 = arith.constant 0 : i32
    %c8_i32 = arith.constant 8 : i32
    %12 = arith.muli %c0_i32_10, %c8_i32 : i32
    %13 = tpu.assume_multiple %12, 8 : i32
    %14 = arith.index_cast %13 : i32 to index
    %c0_11 = arith.constant 0 : index
    %15 = vector.load %arg13[%14, %c0_11] : memref<64x512xf32, #tpu.memory_space<vmem>>, vector<8x512xf32>
    %c0_12 = arith.constant 0 : index
    %c0_13 = arith.constant 0 : index
    %c0_14 = arith.constant 0 : index
    %16 = vector.load %arg10[%c0_12, %c0_13, %c0_14] : memref<2x8x128xf32, #tpu.memory_space<vmem>>, vector<1x8x128xf32>
    %17 = vector.shape_cast %16 : vector<1x8x128xf32> to vector<8x128xf32>
    %c0_15 = arith.constant 0 : index
    %c0_16 = arith.constant 0 : index
    %c0_17 = arith.constant 0 : index
    %18 = vector.load %arg11[%c0_15, %c0_16, %c0_17] : memref<2x8x128xf32, #tpu.memory_space<vmem>>, vector<1x8x128xf32>
    %19 = vector.shape_cast %18 : vector<1x8x128xf32> to vector<8x128xf32>
    %20 = arith.truncf %17 : vector<8x128xf32> to vector<8x128xbf16>
    %cst_18 = arith.constant dense<0.000000e+00> : vector<8x512xf32>
    %21 = tpu.matmul %20, %4, %cst_18 {dimension_numbers = #tpu.dot_dimension_numbers<[1], [0], [0], [1], [0, 0, 1, 1], [], []>} : vector<8x128xbf16>, vector<128x512xbf16>, vector<8x512xf32> -> vector<8x512xf32>
    %22 = arith.addf %15, %21 : vector<8x512xf32>
    %23 = vector.extract_strided_slice %22 {offsets = [0, 0], sizes = [8, 128], strides = [1, 1]} : vector<8x512xf32> to vector<8x128xf32>
    %24 = arith.negf %23 : vector<8x128xf32>
    %25 = math.exp %24 : vector<8x128xf32>
    %cst_19 = arith.constant 1.000000e+00 : f32
    %26 = vector.broadcast %cst_19 : f32 to vector<8x128xf32>
    %27 = arith.addf %26, %25 : vector<8x128xf32>
    %28 = arith.divf %26, %27 : vector<8x128xf32>
    %29 = vector.extract_strided_slice %22 {offsets = [0, 128], sizes = [8, 128], strides = [1, 1]} : vector<8x512xf32> to vector<8x128xf32>
    %30 = arith.negf %29 : vector<8x128xf32>
    %31 = math.exp %30 : vector<8x128xf32>
    %cst_20 = arith.constant 1.000000e+00 : f32
    %32 = vector.broadcast %cst_20 : f32 to vector<8x128xf32>
    %33 = arith.addf %32, %31 : vector<8x128xf32>
    %34 = arith.divf %32, %33 : vector<8x128xf32>
    %35 = vector.extract_strided_slice %22 {offsets = [0, 256], sizes = [8, 128], strides = [1, 1]} : vector<8x512xf32> to vector<8x128xf32>
    %36 = math.tanh %35 : vector<8x128xf32>
    %37 = vector.extract_strided_slice %22 {offsets = [0, 384], sizes = [8, 128], strides = [1, 1]} : vector<8x512xf32> to vector<8x128xf32>
    %38 = arith.negf %37 : vector<8x128xf32>
    %39 = math.exp %38 : vector<8x128xf32>
    %cst_21 = arith.constant 1.000000e+00 : f32
    %40 = vector.broadcast %cst_21 : f32 to vector<8x128xf32>
    %41 = arith.addf %40, %39 : vector<8x128xf32>
    %42 = arith.divf %40, %41 : vector<8x128xf32>
    %43 = arith.mulf %34, %19 : vector<8x128xf32>
    %44 = arith.mulf %28, %36 : vector<8x128xf32>
    %45 = arith.addf %43, %44 : vector<8x128xf32>
    %46 = math.tanh %45 : vector<8x128xf32>
    %47 = arith.mulf %42, %46 : vector<8x128xf32>
    %c8_i32_22 = arith.constant 8 : i32
    %48 = arith.muli %arg0, %c8_i32_22 : i32
    %49 = arith.addi %48, %c0_i32_10 : i32
    %c8_i32_23 = arith.constant 8 : i32
    %50 = arith.cmpi slt, %49, %c8_i32_23 : i32
    %51 = arith.select %50, %47, %17 : vector<8x128xf32>
    %c0_24 = arith.constant 0 : index
    %c0_25 = arith.constant 0 : index
    %c0_26 = arith.constant 0 : index
    %52 = vector.load %arg10[%c0_24, %c0_25, %c0_26] : memref<2x8x128xf32, #tpu.memory_space<vmem>>, vector<1x8x128xf32>
    %53 = vector.shape_cast %52 : vector<1x8x128xf32> to vector<8x128xf32>
    %54 = vector.shape_cast %51 : vector<8x128xf32> to vector<1x8x128xf32>
    tpu.vector_store %arg10[%c0_24, %c0_25, %c0_26], %54 {strides = array<i32>} : memref<2x8x128xf32, #tpu.memory_space<vmem>>, vector<1x8x128xf32>,
    %55 = arith.select %50, %45, %19 : vector<8x128xf32>
    %c0_27 = arith.constant 0 : index
    %c0_28 = arith.constant 0 : index
    %c0_29 = arith.constant 0 : index
    %56 = vector.load %arg11[%c0_27, %c0_28, %c0_29] : memref<2x8x128xf32, #tpu.memory_space<vmem>>, vector<1x8x128xf32>
    %57 = vector.shape_cast %56 : vector<1x8x128xf32> to vector<8x128xf32>
    %58 = vector.shape_cast %55 : vector<8x128xf32> to vector<1x8x128xf32>
    tpu.vector_store %arg11[%c0_27, %c0_28, %c0_29], %58 {strides = array<i32>} : memref<2x8x128xf32, #tpu.memory_space<vmem>>, vector<1x8x128xf32>,
    %59 = arith.index_cast %13 : i32 to index
    %c0_30 = arith.constant 0 : index
    %60 = vector.load %arg12[%59, %c0_30] : memref<64x128xf32, #tpu.memory_space<vmem>>, vector<8x128xf32>
    tpu.vector_store %arg12[%59, %c0_30], %47 {strides = array<i32>} : memref<64x128xf32, #tpu.memory_space<vmem>>, vector<8x128xf32>,
    %c1_i32 = arith.constant 1 : i32
    %c8_i32_31 = arith.constant 8 : i32
    %61 = arith.muli %c1_i32, %c8_i32_31 : i32
    %62 = tpu.assume_multiple %61, 8 : i32
    %63 = arith.index_cast %62 : i32 to index
    %c0_32 = arith.constant 0 : index
    %64 = vector.load %arg13[%63, %c0_32] : memref<64x512xf32, #tpu.memory_space<vmem>>, vector<8x512xf32>
    %c0_33 = arith.constant 0 : index
    %c0_34 = arith.constant 0 : index
    %c0_35 = arith.constant 0 : index
    %65 = vector.load %arg10[%c0_33, %c0_34, %c0_35] : memref<2x8x128xf32, #tpu.memory_space<vmem>>, vector<1x8x128xf32>
    %66 = vector.shape_cast %65 : vector<1x8x128xf32> to vector<8x128xf32>
    %c0_36 = arith.constant 0 : index
    %c0_37 = arith.constant 0 : index
    %c0_38 = arith.constant 0 : index
    %67 = vector.load %arg11[%c0_36, %c0_37, %c0_38] : memref<2x8x128xf32, #tpu.memory_space<vmem>>, vector<1x8x128xf32>
    %68 = vector.shape_cast %67 : vector<1x8x128xf32> to vector<8x128xf32>
    %69 = arith.truncf %66 : vector<8x128xf32> to vector<8x128xbf16>
    %cst_39 = arith.constant dense<0.000000e+00> : vector<8x512xf32>
    %70 = tpu.matmul %69, %4, %cst_39 {dimension_numbers = #tpu.dot_dimension_numbers<[1], [0], [0], [1], [0, 0, 1, 1], [], []>} : vector<8x128xbf16>, vector<128x512xbf16>, vector<8x512xf32> -> vector<8x512xf32>
    %71 = arith.addf %64, %70 : vector<8x512xf32>
    %72 = vector.extract_strided_slice %71 {offsets = [0, 0], sizes = [8, 128], strides = [1, 1]} : vector<8x512xf32> to vector<8x128xf32>
    %73 = arith.negf %72 : vector<8x128xf32>
    %74 = math.exp %73 : vector<8x128xf32>
    %cst_40 = arith.constant 1.000000e+00 : f32
    %75 = vector.broadcast %cst_40 : f32 to vector<8x128xf32>
    %76 = arith.addf %75, %74 : vector<8x128xf32>
    %77 = arith.divf %75, %76 : vector<8x128xf32>
    %78 = vector.extract_strided_slice %71 {offsets = [0, 128], sizes = [8, 128], strides = [1, 1]} : vector<8x512xf32> to vector<8x128xf32>
    %79 = arith.negf %78 : vector<8x128xf32>
    %80 = math.exp %79 : vector<8x128xf32>
    %cst_41 = arith.constant 1.000000e+00 : f32
    %81 = vector.broadcast %cst_41 : f32 to vector<8x128xf32>
    %82 = arith.addf %81, %80 : vector<8x128xf32>
    %83 = arith.divf %81, %82 : vector<8x128xf32>
    %84 = vector.extract_strided_slice %71 {offsets = [0, 256], sizes = [8, 128], strides = [1, 1]} : vector<8x512xf32> to vector<8x128xf32>
    %85 = math.tanh %84 : vector<8x128xf32>
    %86 = vector.extract_strided_slice %71 {offsets = [0, 384], sizes = [8, 128], strides = [1, 1]} : vector<8x512xf32> to vector<8x128xf32>
    %87 = arith.negf %86 : vector<8x128xf32>
    %88 = math.exp %87 : vector<8x128xf32>
    %cst_42 = arith.constant 1.000000e+00 : f32
    %89 = vector.broadcast %cst_42 : f32 to vector<8x128xf32>
    %90 = arith.addf %89, %88 : vector<8x128xf32>
    %91 = arith.divf %89, %90 : vector<8x128xf32>
    %92 = arith.mulf %83, %68 : vector<8x128xf32>
    %93 = arith.mulf %77, %85 : vector<8x128xf32>
    %94 = arith.addf %92, %93 : vector<8x128xf32>
    %95 = math.tanh %94 : vector<8x128xf32>
    %96 = arith.mulf %91, %95 : vector<8x128xf32>
    %c8_i32_43 = arith.constant 8 : i32
    %97 = arith.muli %arg0, %c8_i32_43 : i32
    %98 = arith.addi %97, %c1_i32 : i32
    %c8_i32_44 = arith.constant 8 : i32
    %99 = arith.cmpi slt, %98, %c8_i32_44 : i32
    %100 = arith.select %99, %96, %66 : vector<8x128xf32>
    %c0_45 = arith.constant 0 : index
    %c0_46 = arith.constant 0 : index
    %c0_47 = arith.constant 0 : index
    %101 = vector.load %arg10[%c0_45, %c0_46, %c0_47] : memref<2x8x128xf32, #tpu.memory_space<vmem>>, vector<1x8x128xf32>
    %102 = vector.shape_cast %101 : vector<1x8x128xf32> to vector<8x128xf32>
    %103 = vector.shape_cast %100 : vector<8x128xf32> to vector<1x8x128xf32>
    tpu.vector_store %arg10[%c0_45, %c0_46, %c0_47], %103 {strides = array<i32>} : memref<2x8x128xf32, #tpu.memory_space<vmem>>, vector<1x8x128xf32>,
    %104 = arith.select %99, %94, %68 : vector<8x128xf32>
    %c0_48 = arith.constant 0 : index
    %c0_49 = arith.constant 0 : index
    %c0_50 = arith.constant 0 : index
    %105 = vector.load %arg11[%c0_48, %c0_49, %c0_50] : memref<2x8x128xf32, #tpu.memory_space<vmem>>, vector<1x8x128xf32>
    %106 = vector.shape_cast %105 : vector<1x8x128xf32> to vector<8x128xf32>
    %107 = vector.shape_cast %104 : vector<8x128xf32> to vector<1x8x128xf32>
    tpu.vector_store %arg11[%c0_48, %c0_49, %c0_50], %107 {strides = array<i32>} : memref<2x8x128xf32, #tpu.memory_space<vmem>>, vector<1x8x128xf32>,
    %108 = arith.index_cast %62 : i32 to index
    %c0_51 = arith.constant 0 : index
    %109 = vector.load %arg12[%108, %c0_51] : memref<64x128xf32, #tpu.memory_space<vmem>>, vector<8x128xf32>
    tpu.vector_store %arg12[%108, %c0_51], %96 {strides = array<i32>} : memref<64x128xf32, #tpu.memory_space<vmem>>, vector<8x128xf32>,
    %c2_i32 = arith.constant 2 : i32
    %c8_i32_52 = arith.constant 8 : i32
    %110 = arith.muli %c2_i32, %c8_i32_52 : i32
    %111 = tpu.assume_multiple %110, 8 : i32
    %112 = arith.index_cast %111 : i32 to index
    %c0_53 = arith.constant 0 : index
    %113 = vector.load %arg13[%112, %c0_53] : memref<64x512xf32, #tpu.memory_space<vmem>>, vector<8x512xf32>
    %c0_54 = arith.constant 0 : index
    %c0_55 = arith.constant 0 : index
    %c0_56 = arith.constant 0 : index
    %114 = vector.load %arg10[%c0_54, %c0_55, %c0_56] : memref<2x8x128xf32, #tpu.memory_space<vmem>>, vector<1x8x128xf32>
    %115 = vector.shape_cast %114 : vector<1x8x128xf32> to vector<8x128xf32>
    %c0_57 = arith.constant 0 : index
    %c0_58 = arith.constant 0 : index
    %c0_59 = arith.constant 0 : index
    %116 = vector.load %arg11[%c0_57, %c0_58, %c0_59] : memref<2x8x128xf32, #tpu.memory_space<vmem>>, vector<1x8x128xf32>
    %117 = vector.shape_cast %116 : vector<1x8x128xf32> to vector<8x128xf32>
    %118 = arith.truncf %115 : vector<8x128xf32> to vector<8x128xbf16>
    %cst_60 = arith.constant dense<0.000000e+00> : vector<8x512xf32>
    %119 = tpu.matmul %118, %4, %cst_60 {dimension_numbers = #tpu.dot_dimension_numbers<[1], [0], [0], [1], [0, 0, 1, 1], [], []>} : vector<8x128xbf16>, vector<128x512xbf16>, vector<8x512xf32> -> vector<8x512xf32>
    %120 = arith.addf %113, %119 : vector<8x512xf32>
    %121 = vector.extract_strided_slice %120 {offsets = [0, 0], sizes = [8, 128], strides = [1, 1]} : vector<8x512xf32> to vector<8x128xf32>
    %122 = arith.negf %121 : vector<8x128xf32>
    %123 = math.exp %122 : vector<8x128xf32>
    %cst_61 = arith.constant 1.000000e+00 : f32
    %124 = vector.broadcast %cst_61 : f32 to vector<8x128xf32>
    %125 = arith.addf %124, %123 : vector<8x128xf32>
    %126 = arith.divf %124, %125 : vector<8x128xf32>
    %127 = vector.extract_strided_slice %120 {offsets = [0, 128], sizes = [8, 128], strides = [1, 1]} : vector<8x512xf32> to vector<8x128xf32>
    %128 = arith.negf %127 : vector<8x128xf32>
    %129 = math.exp %128 : vector<8x128xf32>
    %cst_62 = arith.constant 1.000000e+00 : f32
    %130 = vector.broadcast %cst_62 : f32 to vector<8x128xf32>
    %131 = arith.addf %130, %129 : vector<8x128xf32>
    %132 = arith.divf %130, %131 : vector<8x128xf32>
    %133 = vector.extract_strided_slice %120 {offsets = [0, 256], sizes = [8, 128], strides = [1, 1]} : vector<8x512xf32> to vector<8x128xf32>
    %134 = math.tanh %133 : vector<8x128xf32>
    %135 = vector.extract_strided_slice %120 {offsets = [0, 384], sizes = [8, 128], strides = [1, 1]} : vector<8x512xf32> to vector<8x128xf32>
    %136 = arith.negf %135 : vector<8x128xf32>
    %137 = math.exp %136 : vector<8x128xf32>
    %cst_63 = arith.constant 1.000000e+00 : f32
    %138 = vector.broadcast %cst_63 : f32 to vector<8x128xf32>
    %139 = arith.addf %138, %137 : vector<8x128xf32>
    %140 = arith.divf %138, %139 : vector<8x128xf32>
    %141 = arith.mulf %132, %117 : vector<8x128xf32>
    %142 = arith.mulf %126, %134 : vector<8x128xf32>
    %143 = arith.addf %141, %142 : vector<8x128xf32>
    %144 = math.tanh %143 : vector<8x128xf32>
    %145 = arith.mulf %140, %144 : vector<8x128xf32>
    %c8_i32_64 = arith.constant 8 : i32
    %146 = arith.muli %arg0, %c8_i32_64 : i32
    %147 = arith.addi %146, %c2_i32 : i32
    %c8_i32_65 = arith.constant 8 : i32
    %148 = arith.cmpi slt, %147, %c8_i32_65 : i32
    %149 = arith.select %148, %145, %115 : vector<8x128xf32>
    %c0_66 = arith.constant 0 : index
    %c0_67 = arith.constant 0 : index
    %c0_68 = arith.constant 0 : index
    %150 = vector.load %arg10[%c0_66, %c0_67, %c0_68] : memref<2x8x128xf32, #tpu.memory_space<vmem>>, vector<1x8x128xf32>
    %151 = vector.shape_cast %150 : vector<1x8x128xf32> to vector<8x128xf32>
    %152 = vector.shape_cast %149 : vector<8x128xf32> to vector<1x8x128xf32>
    tpu.vector_store %arg10[%c0_66, %c0_67, %c0_68], %152 {strides = array<i32>} : memref<2x8x128xf32, #tpu.memory_space<vmem>>, vector<1x8x128xf32>,
    %153 = arith.select %148, %143, %117 : vector<8x128xf32>
    %c0_69 = arith.constant 0 : index
    %c0_70 = arith.constant 0 : index
    %c0_71 = arith.constant 0 : index
    %154 = vector.load %arg11[%c0_69, %c0_70, %c0_71] : memref<2x8x128xf32, #tpu.memory_space<vmem>>, vector<1x8x128xf32>
    %155 = vector.shape_cast %154 : vector<1x8x128xf32> to vector<8x128xf32>
    %156 = vector.shape_cast %153 : vector<8x128xf32> to vector<1x8x128xf32>
    tpu.vector_store %arg11[%c0_69, %c0_70, %c0_71], %156 {strides = array<i32>} : memref<2x8x128xf32, #tpu.memory_space<vmem>>, vector<1x8x128xf32>,
    %157 = arith.index_cast %111 : i32 to index
    %c0_72 = arith.constant 0 : index
    %158 = vector.load %arg12[%157, %c0_72] : memref<64x128xf32, #tpu.memory_space<vmem>>, vector<8x128xf32>
    tpu.vector_store %arg12[%157, %c0_72], %145 {strides = array<i32>} : memref<64x128xf32, #tpu.memory_space<vmem>>, vector<8x128xf32>,
    %c3_i32 = arith.constant 3 : i32
    %c8_i32_73 = arith.constant 8 : i32
    %159 = arith.muli %c3_i32, %c8_i32_73 : i32
    %160 = tpu.assume_multiple %159, 8 : i32
    %161 = arith.index_cast %160 : i32 to index
    %c0_74 = arith.constant 0 : index
    %162 = vector.load %arg13[%161, %c0_74] : memref<64x512xf32, #tpu.memory_space<vmem>>, vector<8x512xf32>
    %c0_75 = arith.constant 0 : index
    %c0_76 = arith.constant 0 : index
    %c0_77 = arith.constant 0 : index
    %163 = vector.load %arg10[%c0_75, %c0_76, %c0_77] : memref<2x8x128xf32, #tpu.memory_space<vmem>>, vector<1x8x128xf32>
    %164 = vector.shape_cast %163 : vector<1x8x128xf32> to vector<8x128xf32>
    %c0_78 = arith.constant 0 : index
    %c0_79 = arith.constant 0 : index
    %c0_80 = arith.constant 0 : index
    %165 = vector.load %arg11[%c0_78, %c0_79, %c0_80] : memref<2x8x128xf32, #tpu.memory_space<vmem>>, vector<1x8x128xf32>
    %166 = vector.shape_cast %165 : vector<1x8x128xf32> to vector<8x128xf32>
    %167 = arith.truncf %164 : vector<8x128xf32> to vector<8x128xbf16>
    %cst_81 = arith.constant dense<0.000000e+00> : vector<8x512xf32>
    %168 = tpu.matmul %167, %4, %cst_81 {dimension_numbers = #tpu.dot_dimension_numbers<[1], [0], [0], [1], [0, 0, 1, 1], [], []>} : vector<8x128xbf16>, vector<128x512xbf16>, vector<8x512xf32> -> vector<8x512xf32>
    %169 = arith.addf %162, %168 : vector<8x512xf32>
    %170 = vector.extract_strided_slice %169 {offsets = [0, 0], sizes = [8, 128], strides = [1, 1]} : vector<8x512xf32> to vector<8x128xf32>
    %171 = arith.negf %170 : vector<8x128xf32>
    %172 = math.exp %171 : vector<8x128xf32>
    %cst_82 = arith.constant 1.000000e+00 : f32
    %173 = vector.broadcast %cst_82 : f32 to vector<8x128xf32>
    %174 = arith.addf %173, %172 : vector<8x128xf32>
    %175 = arith.divf %173, %174 : vector<8x128xf32>
    %176 = vector.extract_strided_slice %169 {offsets = [0, 128], sizes = [8, 128], strides = [1, 1]} : vector<8x512xf32> to vector<8x128xf32>
    %177 = arith.negf %176 : vector<8x128xf32>
    %178 = math.exp %177 : vector<8x128xf32>
    %cst_83 = arith.constant 1.000000e+00 : f32
    %179 = vector.broadcast %cst_83 : f32 to vector<8x128xf32>
    %180 = arith.addf %179, %178 : vector<8x128xf32>
    %181 = arith.divf %179, %180 : vector<8x128xf32>
    %182 = vector.extract_strided_slice %169 {offsets = [0, 256], sizes = [8, 128], strides = [1, 1]} : vector<8x512xf32> to vector<8x128xf32>
    %183 = math.tanh %182 : vector<8x128xf32>
    %184 = vector.extract_strided_slice %169 {offsets = [0, 384], sizes = [8, 128], strides = [1, 1]} : vector<8x512xf32> to vector<8x128xf32>
    %185 = arith.negf %184 : vector<8x128xf32>
    %186 = math.exp %185 : vector<8x128xf32>
    %cst_84 = arith.constant 1.000000e+00 : f32
    %187 = vector.broadcast %cst_84 : f32 to vector<8x128xf32>
    %188 = arith.addf %187, %186 : vector<8x128xf32>
    %189 = arith.divf %187, %188 : vector<8x128xf32>
    %190 = arith.mulf %181, %166 : vector<8x128xf32>
    %191 = arith.mulf %175, %183 : vector<8x128xf32>
    %192 = arith.addf %190, %191 : vector<8x128xf32>
    %193 = math.tanh %192 : vector<8x128xf32>
    %194 = arith.mulf %189, %193 : vector<8x128xf32>
    %c8_i32_85 = arith.constant 8 : i32
    %195 = arith.muli %arg0, %c8_i32_85 : i32
    %196 = arith.addi %195, %c3_i32 : i32
    %c8_i32_86 = arith.constant 8 : i32
    %197 = arith.cmpi slt, %196, %c8_i32_86 : i32
    %198 = arith.select %197, %194, %164 : vector<8x128xf32>
    %c0_87 = arith.constant 0 : index
    %c0_88 = arith.constant 0 : index
    %c0_89 = arith.constant 0 : index
    %199 = vector.load %arg10[%c0_87, %c0_88, %c0_89] : memref<2x8x128xf32, #tpu.memory_space<vmem>>, vector<1x8x128xf32>
    %200 = vector.shape_cast %199 : vector<1x8x128xf32> to vector<8x128xf32>
    %201 = vector.shape_cast %198 : vector<8x128xf32> to vector<1x8x128xf32>
    tpu.vector_store %arg10[%c0_87, %c0_88, %c0_89], %201 {strides = array<i32>} : memref<2x8x128xf32, #tpu.memory_space<vmem>>, vector<1x8x128xf32>,
    %202 = arith.select %197, %192, %166 : vector<8x128xf32>
    %c0_90 = arith.constant 0 : index
    %c0_91 = arith.constant 0 : index
    %c0_92 = arith.constant 0 : index
    %203 = vector.load %arg11[%c0_90, %c0_91, %c0_92] : memref<2x8x128xf32, #tpu.memory_space<vmem>>, vector<1x8x128xf32>
    %204 = vector.shape_cast %203 : vector<1x8x128xf32> to vector<8x128xf32>
    %205 = vector.shape_cast %202 : vector<8x128xf32> to vector<1x8x128xf32>
    tpu.vector_store %arg11[%c0_90, %c0_91, %c0_92], %205 {strides = array<i32>} : memref<2x8x128xf32, #tpu.memory_space<vmem>>, vector<1x8x128xf32>,
    %206 = arith.index_cast %160 : i32 to index
    %c0_93 = arith.constant 0 : index
    %207 = vector.load %arg12[%206, %c0_93] : memref<64x128xf32, #tpu.memory_space<vmem>>, vector<8x128xf32>
    tpu.vector_store %arg12[%206, %c0_93], %194 {strides = array<i32>} : memref<64x128xf32, #tpu.memory_space<vmem>>, vector<8x128xf32>,
    %c4_i32 = arith.constant 4 : i32
    %c8_i32_94 = arith.constant 8 : i32
    %208 = arith.muli %c4_i32, %c8_i32_94 : i32
    %209 = tpu.assume_multiple %208, 8 : i32
    %210 = arith.index_cast %209 : i32 to index
    %c0_95 = arith.constant 0 : index
    %211 = vector.load %arg13[%210, %c0_95] : memref<64x512xf32, #tpu.memory_space<vmem>>, vector<8x512xf32>
    %c0_96 = arith.constant 0 : index
    %c0_97 = arith.constant 0 : index
    %c0_98 = arith.constant 0 : index
    %212 = vector.load %arg10[%c0_96, %c0_97, %c0_98] : memref<2x8x128xf32, #tpu.memory_space<vmem>>, vector<1x8x128xf32>
    %213 = vector.shape_cast %212 : vector<1x8x128xf32> to vector<8x128xf32>
    %c0_99 = arith.constant 0 : index
    %c0_100 = arith.constant 0 : index
    %c0_101 = arith.constant 0 : index
    %214 = vector.load %arg11[%c0_99, %c0_100, %c0_101] : memref<2x8x128xf32, #tpu.memory_space<vmem>>, vector<1x8x128xf32>
    %215 = vector.shape_cast %214 : vector<1x8x128xf32> to vector<8x128xf32>
    %216 = arith.truncf %213 : vector<8x128xf32> to vector<8x128xbf16>
    %cst_102 = arith.constant dense<0.000000e+00> : vector<8x512xf32>
    %217 = tpu.matmul %216, %4, %cst_102 {dimension_numbers = #tpu.dot_dimension_numbers<[1], [0], [0], [1], [0, 0, 1, 1], [], []>} : vector<8x128xbf16>, vector<128x512xbf16>, vector<8x512xf32> -> vector<8x512xf32>
    %218 = arith.addf %211, %217 : vector<8x512xf32>
    %219 = vector.extract_strided_slice %218 {offsets = [0, 0], sizes = [8, 128], strides = [1, 1]} : vector<8x512xf32> to vector<8x128xf32>
    %220 = arith.negf %219 : vector<8x128xf32>
    %221 = math.exp %220 : vector<8x128xf32>
    %cst_103 = arith.constant 1.000000e+00 : f32
    %222 = vector.broadcast %cst_103 : f32 to vector<8x128xf32>
    %223 = arith.addf %222, %221 : vector<8x128xf32>
    %224 = arith.divf %222, %223 : vector<8x128xf32>
    %225 = vector.extract_strided_slice %218 {offsets = [0, 128], sizes = [8, 128], strides = [1, 1]} : vector<8x512xf32> to vector<8x128xf32>
    %226 = arith.negf %225 : vector<8x128xf32>
    %227 = math.exp %226 : vector<8x128xf32>
    %cst_104 = arith.constant 1.000000e+00 : f32
    %228 = vector.broadcast %cst_104 : f32 to vector<8x128xf32>
    %229 = arith.addf %228, %227 : vector<8x128xf32>
    %230 = arith.divf %228, %229 : vector<8x128xf32>
    %231 = vector.extract_strided_slice %218 {offsets = [0, 256], sizes = [8, 128], strides = [1, 1]} : vector<8x512xf32> to vector<8x128xf32>
    %232 = math.tanh %231 : vector<8x128xf32>
    %233 = vector.extract_strided_slice %218 {offsets = [0, 384], sizes = [8, 128], strides = [1, 1]} : vector<8x512xf32> to vector<8x128xf32>
    %234 = arith.negf %233 : vector<8x128xf32>
    %235 = math.exp %234 : vector<8x128xf32>
    %cst_105 = arith.constant 1.000000e+00 : f32
    %236 = vector.broadcast %cst_105 : f32 to vector<8x128xf32>
    %237 = arith.addf %236, %235 : vector<8x128xf32>
    %238 = arith.divf %236, %237 : vector<8x128xf32>
    %239 = arith.mulf %230, %215 : vector<8x128xf32>
    %240 = arith.mulf %224, %232 : vector<8x128xf32>
    %241 = arith.addf %239, %240 : vector<8x128xf32>
    %242 = math.tanh %241 : vector<8x128xf32>
    %243 = arith.mulf %238, %242 : vector<8x128xf32>
    %c8_i32_106 = arith.constant 8 : i32
    %244 = arith.muli %arg0, %c8_i32_106 : i32
    %245 = arith.addi %244, %c4_i32 : i32
    %c8_i32_107 = arith.constant 8 : i32
    %246 = arith.cmpi slt, %245, %c8_i32_107 : i32
    %247 = arith.select %246, %243, %213 : vector<8x128xf32>
    %c0_108 = arith.constant 0 : index
    %c0_109 = arith.constant 0 : index
    %c0_110 = arith.constant 0 : index
    %248 = vector.load %arg10[%c0_108, %c0_109, %c0_110] : memref<2x8x128xf32, #tpu.memory_space<vmem>>, vector<1x8x128xf32>
    %249 = vector.shape_cast %248 : vector<1x8x128xf32> to vector<8x128xf32>
    %250 = vector.shape_cast %247 : vector<8x128xf32> to vector<1x8x128xf32>
    tpu.vector_store %arg10[%c0_108, %c0_109, %c0_110], %250 {strides = array<i32>} : memref<2x8x128xf32, #tpu.memory_space<vmem>>, vector<1x8x128xf32>,
    %251 = arith.select %246, %241, %215 : vector<8x128xf32>
    %c0_111 = arith.constant 0 : index
    %c0_112 = arith.constant 0 : index
    %c0_113 = arith.constant 0 : index
    %252 = vector.load %arg11[%c0_111, %c0_112, %c0_113] : memref<2x8x128xf32, #tpu.memory_space<vmem>>, vector<1x8x128xf32>
    %253 = vector.shape_cast %252 : vector<1x8x128xf32> to vector<8x128xf32>
    %254 = vector.shape_cast %251 : vector<8x128xf32> to vector<1x8x128xf32>
    tpu.vector_store %arg11[%c0_111, %c0_112, %c0_113], %254 {strides = array<i32>} : memref<2x8x128xf32, #tpu.memory_space<vmem>>, vector<1x8x128xf32>,
    %255 = arith.index_cast %209 : i32 to index
    %c0_114 = arith.constant 0 : index
    %256 = vector.load %arg12[%255, %c0_114] : memref<64x128xf32, #tpu.memory_space<vmem>>, vector<8x128xf32>
    tpu.vector_store %arg12[%255, %c0_114], %243 {strides = array<i32>} : memref<64x128xf32, #tpu.memory_space<vmem>>, vector<8x128xf32>,
    %c5_i32 = arith.constant 5 : i32
    %c8_i32_115 = arith.constant 8 : i32
    %257 = arith.muli %c5_i32, %c8_i32_115 : i32
    %258 = tpu.assume_multiple %257, 8 : i32
    %259 = arith.index_cast %258 : i32 to index
    %c0_116 = arith.constant 0 : index
    %260 = vector.load %arg13[%259, %c0_116] : memref<64x512xf32, #tpu.memory_space<vmem>>, vector<8x512xf32>
    %c0_117 = arith.constant 0 : index
    %c0_118 = arith.constant 0 : index
    %c0_119 = arith.constant 0 : index
    %261 = vector.load %arg10[%c0_117, %c0_118, %c0_119] : memref<2x8x128xf32, #tpu.memory_space<vmem>>, vector<1x8x128xf32>
    %262 = vector.shape_cast %261 : vector<1x8x128xf32> to vector<8x128xf32>
    %c0_120 = arith.constant 0 : index
    %c0_121 = arith.constant 0 : index
    %c0_122 = arith.constant 0 : index
    %263 = vector.load %arg11[%c0_120, %c0_121, %c0_122] : memref<2x8x128xf32, #tpu.memory_space<vmem>>, vector<1x8x128xf32>
    %264 = vector.shape_cast %263 : vector<1x8x128xf32> to vector<8x128xf32>
    %265 = arith.truncf %262 : vector<8x128xf32> to vector<8x128xbf16>
    %cst_123 = arith.constant dense<0.000000e+00> : vector<8x512xf32>
    %266 = tpu.matmul %265, %4, %cst_123 {dimension_numbers = #tpu.dot_dimension_numbers<[1], [0], [0], [1], [0, 0, 1, 1], [], []>} : vector<8x128xbf16>, vector<128x512xbf16>, vector<8x512xf32> -> vector<8x512xf32>
    %267 = arith.addf %260, %266 : vector<8x512xf32>
    %268 = vector.extract_strided_slice %267 {offsets = [0, 0], sizes = [8, 128], strides = [1, 1]} : vector<8x512xf32> to vector<8x128xf32>
    %269 = arith.negf %268 : vector<8x128xf32>
    %270 = math.exp %269 : vector<8x128xf32>
    %cst_124 = arith.constant 1.000000e+00 : f32
    %271 = vector.broadcast %cst_124 : f32 to vector<8x128xf32>
    %272 = arith.addf %271, %270 : vector<8x128xf32>
    %273 = arith.divf %271, %272 : vector<8x128xf32>
    %274 = vector.extract_strided_slice %267 {offsets = [0, 128], sizes = [8, 128], strides = [1, 1]} : vector<8x512xf32> to vector<8x128xf32>
    %275 = arith.negf %274 : vector<8x128xf32>
    %276 = math.exp %275 : vector<8x128xf32>
    %cst_125 = arith.constant 1.000000e+00 : f32
    %277 = vector.broadcast %cst_125 : f32 to vector<8x128xf32>
    %278 = arith.addf %277, %276 : vector<8x128xf32>
    %279 = arith.divf %277, %278 : vector<8x128xf32>
    %280 = vector.extract_strided_slice %267 {offsets = [0, 256], sizes = [8, 128], strides = [1, 1]} : vector<8x512xf32> to vector<8x128xf32>
    %281 = math.tanh %280 : vector<8x128xf32>
    %282 = vector.extract_strided_slice %267 {offsets = [0, 384], sizes = [8, 128], strides = [1, 1]} : vector<8x512xf32> to vector<8x128xf32>
    %283 = arith.negf %282 : vector<8x128xf32>
    %284 = math.exp %283 : vector<8x128xf32>
    %cst_126 = arith.constant 1.000000e+00 : f32
    %285 = vector.broadcast %cst_126 : f32 to vector<8x128xf32>
    %286 = arith.addf %285, %284 : vector<8x128xf32>
    %287 = arith.divf %285, %286 : vector<8x128xf32>
    %288 = arith.mulf %279, %264 : vector<8x128xf32>
    %289 = arith.mulf %273, %281 : vector<8x128xf32>
    %290 = arith.addf %288, %289 : vector<8x128xf32>
    %291 = math.tanh %290 : vector<8x128xf32>
    %292 = arith.mulf %287, %291 : vector<8x128xf32>
    %c8_i32_127 = arith.constant 8 : i32
    %293 = arith.muli %arg0, %c8_i32_127 : i32
    %294 = arith.addi %293, %c5_i32 : i32
    %c8_i32_128 = arith.constant 8 : i32
    %295 = arith.cmpi slt, %294, %c8_i32_128 : i32
    %296 = arith.select %295, %292, %262 : vector<8x128xf32>
    %c0_129 = arith.constant 0 : index
    %c0_130 = arith.constant 0 : index
    %c0_131 = arith.constant 0 : index
    %297 = vector.load %arg10[%c0_129, %c0_130, %c0_131] : memref<2x8x128xf32, #tpu.memory_space<vmem>>, vector<1x8x128xf32>
    %298 = vector.shape_cast %297 : vector<1x8x128xf32> to vector<8x128xf32>
    %299 = vector.shape_cast %296 : vector<8x128xf32> to vector<1x8x128xf32>
    tpu.vector_store %arg10[%c0_129, %c0_130, %c0_131], %299 {strides = array<i32>} : memref<2x8x128xf32, #tpu.memory_space<vmem>>, vector<1x8x128xf32>,
    %300 = arith.select %295, %290, %264 : vector<8x128xf32>
    %c0_132 = arith.constant 0 : index
    %c0_133 = arith.constant 0 : index
    %c0_134 = arith.constant 0 : index
    %301 = vector.load %arg11[%c0_132, %c0_133, %c0_134] : memref<2x8x128xf32, #tpu.memory_space<vmem>>, vector<1x8x128xf32>
    %302 = vector.shape_cast %301 : vector<1x8x128xf32> to vector<8x128xf32>
    %303 = vector.shape_cast %300 : vector<8x128xf32> to vector<1x8x128xf32>
    tpu.vector_store %arg11[%c0_132, %c0_133, %c0_134], %303 {strides = array<i32>} : memref<2x8x128xf32, #tpu.memory_space<vmem>>, vector<1x8x128xf32>,
    %304 = arith.index_cast %258 : i32 to index
    %c0_135 = arith.constant 0 : index
    %305 = vector.load %arg12[%304, %c0_135] : memref<64x128xf32, #tpu.memory_space<vmem>>, vector<8x128xf32>
    tpu.vector_store %arg12[%304, %c0_135], %292 {strides = array<i32>} : memref<64x128xf32, #tpu.memory_space<vmem>>, vector<8x128xf32>,
    %c6_i32 = arith.constant 6 : i32
    %c8_i32_136 = arith.constant 8 : i32
    %306 = arith.muli %c6_i32, %c8_i32_136 : i32
    %307 = tpu.assume_multiple %306, 8 : i32
    %308 = arith.index_cast %307 : i32 to index
    %c0_137 = arith.constant 0 : index
    %309 = vector.load %arg13[%308, %c0_137] : memref<64x512xf32, #tpu.memory_space<vmem>>, vector<8x512xf32>
    %c0_138 = arith.constant 0 : index
    %c0_139 = arith.constant 0 : index
    %c0_140 = arith.constant 0 : index
    %310 = vector.load %arg10[%c0_138, %c0_139, %c0_140] : memref<2x8x128xf32, #tpu.memory_space<vmem>>, vector<1x8x128xf32>
    %311 = vector.shape_cast %310 : vector<1x8x128xf32> to vector<8x128xf32>
    %c0_141 = arith.constant 0 : index
    %c0_142 = arith.constant 0 : index
    %c0_143 = arith.constant 0 : index
    %312 = vector.load %arg11[%c0_141, %c0_142, %c0_143] : memref<2x8x128xf32, #tpu.memory_space<vmem>>, vector<1x8x128xf32>
    %313 = vector.shape_cast %312 : vector<1x8x128xf32> to vector<8x128xf32>
    %314 = arith.truncf %311 : vector<8x128xf32> to vector<8x128xbf16>
    %cst_144 = arith.constant dense<0.000000e+00> : vector<8x512xf32>
    %315 = tpu.matmul %314, %4, %cst_144 {dimension_numbers = #tpu.dot_dimension_numbers<[1], [0], [0], [1], [0, 0, 1, 1], [], []>} : vector<8x128xbf16>, vector<128x512xbf16>, vector<8x512xf32> -> vector<8x512xf32>
    %316 = arith.addf %309, %315 : vector<8x512xf32>
    %317 = vector.extract_strided_slice %316 {offsets = [0, 0], sizes = [8, 128], strides = [1, 1]} : vector<8x512xf32> to vector<8x128xf32>
    %318 = arith.negf %317 : vector<8x128xf32>
    %319 = math.exp %318 : vector<8x128xf32>
    %cst_145 = arith.constant 1.000000e+00 : f32
    %320 = vector.broadcast %cst_145 : f32 to vector<8x128xf32>
    %321 = arith.addf %320, %319 : vector<8x128xf32>
    %322 = arith.divf %320, %321 : vector<8x128xf32>
    %323 = vector.extract_strided_slice %316 {offsets = [0, 128], sizes = [8, 128], strides = [1, 1]} : vector<8x512xf32> to vector<8x128xf32>
    %324 = arith.negf %323 : vector<8x128xf32>
    %325 = math.exp %324 : vector<8x128xf32>
    %cst_146 = arith.constant 1.000000e+00 : f32
    %326 = vector.broadcast %cst_146 : f32 to vector<8x128xf32>
    %327 = arith.addf %326, %325 : vector<8x128xf32>
    %328 = arith.divf %326, %327 : vector<8x128xf32>
    %329 = vector.extract_strided_slice %316 {offsets = [0, 256], sizes = [8, 128], strides = [1, 1]} : vector<8x512xf32> to vector<8x128xf32>
    %330 = math.tanh %329 : vector<8x128xf32>
    %331 = vector.extract_strided_slice %316 {offsets = [0, 384], sizes = [8, 128], strides = [1, 1]} : vector<8x512xf32> to vector<8x128xf32>
    %332 = arith.negf %331 : vector<8x128xf32>
    %333 = math.exp %332 : vector<8x128xf32>
    %cst_147 = arith.constant 1.000000e+00 : f32
    %334 = vector.broadcast %cst_147 : f32 to vector<8x128xf32>
    %335 = arith.addf %334, %333 : vector<8x128xf32>
    %336 = arith.divf %334, %335 : vector<8x128xf32>
    %337 = arith.mulf %328, %313 : vector<8x128xf32>
    %338 = arith.mulf %322, %330 : vector<8x128xf32>
    %339 = arith.addf %337, %338 : vector<8x128xf32>
    %340 = math.tanh %339 : vector<8x128xf32>
    %341 = arith.mulf %336, %340 : vector<8x128xf32>
    %c8_i32_148 = arith.constant 8 : i32
    %342 = arith.muli %arg0, %c8_i32_148 : i32
    %343 = arith.addi %342, %c6_i32 : i32
    %c8_i32_149 = arith.constant 8 : i32
    %344 = arith.cmpi slt, %343, %c8_i32_149 : i32
    %345 = arith.select %344, %341, %311 : vector<8x128xf32>
    %c0_150 = arith.constant 0 : index
    %c0_151 = arith.constant 0 : index
    %c0_152 = arith.constant 0 : index
    %346 = vector.load %arg10[%c0_150, %c0_151, %c0_152] : memref<2x8x128xf32, #tpu.memory_space<vmem>>, vector<1x8x128xf32>
    %347 = vector.shape_cast %346 : vector<1x8x128xf32> to vector<8x128xf32>
    %348 = vector.shape_cast %345 : vector<8x128xf32> to vector<1x8x128xf32>
    tpu.vector_store %arg10[%c0_150, %c0_151, %c0_152], %348 {strides = array<i32>} : memref<2x8x128xf32, #tpu.memory_space<vmem>>, vector<1x8x128xf32>,
    %349 = arith.select %344, %339, %313 : vector<8x128xf32>
    %c0_153 = arith.constant 0 : index
    %c0_154 = arith.constant 0 : index
    %c0_155 = arith.constant 0 : index
    %350 = vector.load %arg11[%c0_153, %c0_154, %c0_155] : memref<2x8x128xf32, #tpu.memory_space<vmem>>, vector<1x8x128xf32>
    %351 = vector.shape_cast %350 : vector<1x8x128xf32> to vector<8x128xf32>
    %352 = vector.shape_cast %349 : vector<8x128xf32> to vector<1x8x128xf32>
    tpu.vector_store %arg11[%c0_153, %c0_154, %c0_155], %352 {strides = array<i32>} : memref<2x8x128xf32, #tpu.memory_space<vmem>>, vector<1x8x128xf32>,
    %353 = arith.index_cast %307 : i32 to index
    %c0_156 = arith.constant 0 : index
    %354 = vector.load %arg12[%353, %c0_156] : memref<64x128xf32, #tpu.memory_space<vmem>>, vector<8x128xf32>
    tpu.vector_store %arg12[%353, %c0_156], %341 {strides = array<i32>} : memref<64x128xf32, #tpu.memory_space<vmem>>, vector<8x128xf32>,
    %c7_i32 = arith.constant 7 : i32
    %c8_i32_157 = arith.constant 8 : i32
    %355 = arith.muli %c7_i32, %c8_i32_157 : i32
    %356 = tpu.assume_multiple %355, 8 : i32
    %357 = arith.index_cast %356 : i32 to index
    %c0_158 = arith.constant 0 : index
    %358 = vector.load %arg13[%357, %c0_158] : memref<64x512xf32, #tpu.memory_space<vmem>>, vector<8x512xf32>
    %c0_159 = arith.constant 0 : index
    %c0_160 = arith.constant 0 : index
    %c0_161 = arith.constant 0 : index
    %359 = vector.load %arg10[%c0_159, %c0_160, %c0_161] : memref<2x8x128xf32, #tpu.memory_space<vmem>>, vector<1x8x128xf32>
    %360 = vector.shape_cast %359 : vector<1x8x128xf32> to vector<8x128xf32>
    %c0_162 = arith.constant 0 : index
    %c0_163 = arith.constant 0 : index
    %c0_164 = arith.constant 0 : index
    %361 = vector.load %arg11[%c0_162, %c0_163, %c0_164] : memref<2x8x128xf32, #tpu.memory_space<vmem>>, vector<1x8x128xf32>
    %362 = vector.shape_cast %361 : vector<1x8x128xf32> to vector<8x128xf32>
    %363 = arith.truncf %360 : vector<8x128xf32> to vector<8x128xbf16>
    %cst_165 = arith.constant dense<0.000000e+00> : vector<8x512xf32>
    %364 = tpu.matmul %363, %4, %cst_165 {dimension_numbers = #tpu.dot_dimension_numbers<[1], [0], [0], [1], [0, 0, 1, 1], [], []>} : vector<8x128xbf16>, vector<128x512xbf16>, vector<8x512xf32> -> vector<8x512xf32>
    %365 = arith.addf %358, %364 : vector<8x512xf32>
    %366 = vector.extract_strided_slice %365 {offsets = [0, 0], sizes = [8, 128], strides = [1, 1]} : vector<8x512xf32> to vector<8x128xf32>
    %367 = arith.negf %366 : vector<8x128xf32>
    %368 = math.exp %367 : vector<8x128xf32>
    %cst_166 = arith.constant 1.000000e+00 : f32
    %369 = vector.broadcast %cst_166 : f32 to vector<8x128xf32>
    %370 = arith.addf %369, %368 : vector<8x128xf32>
    %371 = arith.divf %369, %370 : vector<8x128xf32>
    %372 = vector.extract_strided_slice %365 {offsets = [0, 128], sizes = [8, 128], strides = [1, 1]} : vector<8x512xf32> to vector<8x128xf32>
    %373 = arith.negf %372 : vector<8x128xf32>
    %374 = math.exp %373 : vector<8x128xf32>
    %cst_167 = arith.constant 1.000000e+00 : f32
    %375 = vector.broadcast %cst_167 : f32 to vector<8x128xf32>
    %376 = arith.addf %375, %374 : vector<8x128xf32>
    %377 = arith.divf %375, %376 : vector<8x128xf32>
    %378 = vector.extract_strided_slice %365 {offsets = [0, 256], sizes = [8, 128], strides = [1, 1]} : vector<8x512xf32> to vector<8x128xf32>
    %379 = math.tanh %378 : vector<8x128xf32>
    %380 = vector.extract_strided_slice %365 {offsets = [0, 384], sizes = [8, 128], strides = [1, 1]} : vector<8x512xf32> to vector<8x128xf32>
    %381 = arith.negf %380 : vector<8x128xf32>
    %382 = math.exp %381 : vector<8x128xf32>
    %cst_168 = arith.constant 1.000000e+00 : f32
    %383 = vector.broadcast %cst_168 : f32 to vector<8x128xf32>
    %384 = arith.addf %383, %382 : vector<8x128xf32>
    %385 = arith.divf %383, %384 : vector<8x128xf32>
    %386 = arith.mulf %377, %362 : vector<8x128xf32>
    %387 = arith.mulf %371, %379 : vector<8x128xf32>
    %388 = arith.addf %386, %387 : vector<8x128xf32>
    %389 = math.tanh %388 : vector<8x128xf32>
    %390 = arith.mulf %385, %389 : vector<8x128xf32>
    %c8_i32_169 = arith.constant 8 : i32
    %391 = arith.muli %arg0, %c8_i32_169 : i32
    %392 = arith.addi %391, %c7_i32 : i32
    %c8_i32_170 = arith.constant 8 : i32
    %393 = arith.cmpi slt, %392, %c8_i32_170 : i32
    %394 = arith.select %393, %390, %360 : vector<8x128xf32>
    %c0_171 = arith.constant 0 : index
    %c0_172 = arith.constant 0 : index
    %c0_173 = arith.constant 0 : index
    %395 = vector.load %arg10[%c0_171, %c0_172, %c0_173] : memref<2x8x128xf32, #tpu.memory_space<vmem>>, vector<1x8x128xf32>
    %396 = vector.shape_cast %395 : vector<1x8x128xf32> to vector<8x128xf32>
    %397 = vector.shape_cast %394 : vector<8x128xf32> to vector<1x8x128xf32>
    tpu.vector_store %arg10[%c0_171, %c0_172, %c0_173], %397 {strides = array<i32>} : memref<2x8x128xf32, #tpu.memory_space<vmem>>, vector<1x8x128xf32>,
    %398 = arith.select %393, %388, %362 : vector<8x128xf32>
    %c0_174 = arith.constant 0 : index
    %c0_175 = arith.constant 0 : index
    %c0_176 = arith.constant 0 : index
    %399 = vector.load %arg11[%c0_174, %c0_175, %c0_176] : memref<2x8x128xf32, #tpu.memory_space<vmem>>, vector<1x8x128xf32>
    %400 = vector.shape_cast %399 : vector<1x8x128xf32> to vector<8x128xf32>
    %401 = vector.shape_cast %398 : vector<8x128xf32> to vector<1x8x128xf32>
    tpu.vector_store %arg11[%c0_174, %c0_175, %c0_176], %401 {strides = array<i32>} : memref<2x8x128xf32, #tpu.memory_space<vmem>>, vector<1x8x128xf32>,
    %402 = arith.index_cast %356 : i32 to index
    %c0_177 = arith.constant 0 : index
    %403 = vector.load %arg12[%402, %c0_177] : memref<64x128xf32, #tpu.memory_space<vmem>>, vector<8x128xf32>
    tpu.vector_store %arg12[%402, %c0_177], %390 {strides = array<i32>} : memref<64x128xf32, #tpu.memory_space<vmem>>, vector<8x128xf32>,
    %c8_i32_178 = arith.constant 8 : i32
    %c0_179 = arith.constant 0 : index
    %c0_180 = arith.constant 0 : index
    %404 = vector.load %arg5[%c0_179, %c0_180] : memref<128x512xbf16, #tpu.memory_space<vmem>>, vector<128x512xbf16>
    %c0_181 = arith.constant 0 : index
    %c0_182 = arith.constant 0 : index
    %405 = vector.load %arg6[%c0_181, %c0_182] : memref<128x512xbf16, #tpu.memory_space<vmem>>, vector<128x512xbf16>
    %c0_183 = arith.constant 0 : index
    %c0_184 = arith.constant 0 : index
    %406 = vector.load %arg7[%c0_183, %c0_184] : memref<1x512xf32, #tpu.memory_space<vmem>>, vector<1x512xf32>
    %c0_185 = arith.constant 0 : index
    %c0_186 = arith.constant 0 : index
    %407 = vector.load %arg12[%c0_185, %c0_186] : memref<64x128xf32, #tpu.memory_space<vmem>>, vector<64x128xf32>
    %408 = arith.truncf %407 : vector<64x128xf32> to vector<64x128xbf16>
    %cst_187 = arith.constant dense<0.000000e+00> : vector<64x512xf32>
    %409 = tpu.matmul %408, %404, %cst_187 {dimension_numbers = #tpu.dot_dimension_numbers<[1], [0], [0], [1], [0, 0, 1, 1], [], []>} : vector<64x128xbf16>, vector<128x512xbf16>, vector<64x512xf32> -> vector<64x512xf32>
    %410 = vector.broadcast %406 : vector<1x512xf32> to vector<64x512xf32>
    %411 = arith.addf %409, %410 : vector<64x512xf32>
    %c0_188 = arith.constant 0 : index
    %c0_189 = arith.constant 0 : index
    %412 = vector.load %arg13[%c0_188, %c0_189] : memref<64x512xf32, #tpu.memory_space<vmem>>, vector<64x512xf32>
    tpu.vector_store %arg13[%c0_188, %c0_189], %411 {strides = array<i32>} : memref<64x512xf32, #tpu.memory_space<vmem>>, vector<64x512xf32>,
    %c0_i32_190 = arith.constant 0 : i32
    %c8_i32_191 = arith.constant 8 : i32
    %413 = arith.muli %c0_i32_190, %c8_i32_191 : i32
    %414 = tpu.assume_multiple %413, 8 : i32
    %415 = arith.index_cast %414 : i32 to index
    %c0_192 = arith.constant 0 : index
    %416 = vector.load %arg13[%415, %c0_192] : memref<64x512xf32, #tpu.memory_space<vmem>>, vector<8x512xf32>
    %c1 = arith.constant 1 : index
    %c0_193 = arith.constant 0 : index
    %c0_194 = arith.constant 0 : index
    %417 = vector.load %arg10[%c1, %c0_193, %c0_194] : memref<2x8x128xf32, #tpu.memory_space<vmem>>, vector<1x8x128xf32>
    %418 = vector.shape_cast %417 : vector<1x8x128xf32> to vector<8x128xf32>
    %c1_195 = arith.constant 1 : index
    %c0_196 = arith.constant 0 : index
    %c0_197 = arith.constant 0 : index
    %419 = vector.load %arg11[%c1_195, %c0_196, %c0_197] : memref<2x8x128xf32, #tpu.memory_space<vmem>>, vector<1x8x128xf32>
    %420 = vector.shape_cast %419 : vector<1x8x128xf32> to vector<8x128xf32>
    %421 = arith.truncf %418 : vector<8x128xf32> to vector<8x128xbf16>
    %cst_198 = arith.constant dense<0.000000e+00> : vector<8x512xf32>
    %422 = tpu.matmul %421, %405, %cst_198 {dimension_numbers = #tpu.dot_dimension_numbers<[1], [0], [0], [1], [0, 0, 1, 1], [], []>} : vector<8x128xbf16>, vector<128x512xbf16>, vector<8x512xf32> -> vector<8x512xf32>
    %423 = arith.addf %416, %422 : vector<8x512xf32>
    %424 = vector.extract_strided_slice %423 {offsets = [0, 0], sizes = [8, 128], strides = [1, 1]} : vector<8x512xf32> to vector<8x128xf32>
    %425 = arith.negf %424 : vector<8x128xf32>
    %426 = math.exp %425 : vector<8x128xf32>
    %cst_199 = arith.constant 1.000000e+00 : f32
    %427 = vector.broadcast %cst_199 : f32 to vector<8x128xf32>
    %428 = arith.addf %427, %426 : vector<8x128xf32>
    %429 = arith.divf %427, %428 : vector<8x128xf32>
    %430 = vector.extract_strided_slice %423 {offsets = [0, 128], sizes = [8, 128], strides = [1, 1]} : vector<8x512xf32> to vector<8x128xf32>
    %431 = arith.negf %430 : vector<8x128xf32>
    %432 = math.exp %431 : vector<8x128xf32>
    %cst_200 = arith.constant 1.000000e+00 : f32
    %433 = vector.broadcast %cst_200 : f32 to vector<8x128xf32>
    %434 = arith.addf %433, %432 : vector<8x128xf32>
    %435 = arith.divf %433, %434 : vector<8x128xf32>
    %436 = vector.extract_strided_slice %423 {offsets = [0, 256], sizes = [8, 128], strides = [1, 1]} : vector<8x512xf32> to vector<8x128xf32>
    %437 = math.tanh %436 : vector<8x128xf32>
    %438 = vector.extract_strided_slice %423 {offsets = [0, 384], sizes = [8, 128], strides = [1, 1]} : vector<8x512xf32> to vector<8x128xf32>
    %439 = arith.negf %438 : vector<8x128xf32>
    %440 = math.exp %439 : vector<8x128xf32>
    %cst_201 = arith.constant 1.000000e+00 : f32
    %441 = vector.broadcast %cst_201 : f32 to vector<8x128xf32>
    %442 = arith.addf %441, %440 : vector<8x128xf32>
    %443 = arith.divf %441, %442 : vector<8x128xf32>
    %444 = arith.mulf %435, %420 : vector<8x128xf32>
    %445 = arith.mulf %429, %437 : vector<8x128xf32>
    %446 = arith.addf %444, %445 : vector<8x128xf32>
    %447 = math.tanh %446 : vector<8x128xf32>
    %448 = arith.mulf %443, %447 : vector<8x128xf32>
    %c8_i32_202 = arith.constant 8 : i32
    %449 = arith.muli %arg0, %c8_i32_202 : i32
    %450 = arith.addi %449, %c0_i32_190 : i32
    %c8_i32_203 = arith.constant 8 : i32
    %451 = arith.cmpi slt, %450, %c8_i32_203 : i32
    %452 = arith.select %451, %448, %418 : vector<8x128xf32>
    %c1_204 = arith.constant 1 : index
    %c0_205 = arith.constant 0 : index
    %c0_206 = arith.constant 0 : index
    %453 = vector.load %arg10[%c1_204, %c0_205, %c0_206] : memref<2x8x128xf32, #tpu.memory_space<vmem>>, vector<1x8x128xf32>
    %454 = vector.shape_cast %453 : vector<1x8x128xf32> to vector<8x128xf32>
    %455 = vector.shape_cast %452 : vector<8x128xf32> to vector<1x8x128xf32>
    tpu.vector_store %arg10[%c1_204, %c0_205, %c0_206], %455 {strides = array<i32>} : memref<2x8x128xf32, #tpu.memory_space<vmem>>, vector<1x8x128xf32>,
    %456 = arith.select %451, %446, %420 : vector<8x128xf32>
    %c1_207 = arith.constant 1 : index
    %c0_208 = arith.constant 0 : index
    %c0_209 = arith.constant 0 : index
    %457 = vector.load %arg11[%c1_207, %c0_208, %c0_209] : memref<2x8x128xf32, #tpu.memory_space<vmem>>, vector<1x8x128xf32>
    %458 = vector.shape_cast %457 : vector<1x8x128xf32> to vector<8x128xf32>
    %459 = vector.shape_cast %456 : vector<8x128xf32> to vector<1x8x128xf32>
    tpu.vector_store %arg11[%c1_207, %c0_208, %c0_209], %459 {strides = array<i32>} : memref<2x8x128xf32, #tpu.memory_space<vmem>>, vector<1x8x128xf32>,
    %460 = arith.index_cast %414 : i32 to index
    %c0_210 = arith.constant 0 : index
    %461 = vector.load %arg12[%460, %c0_210] : memref<64x128xf32, #tpu.memory_space<vmem>>, vector<8x128xf32>
    tpu.vector_store %arg12[%460, %c0_210], %448 {strides = array<i32>} : memref<64x128xf32, #tpu.memory_space<vmem>>, vector<8x128xf32>,
    %c1_i32_211 = arith.constant 1 : i32
    %c8_i32_212 = arith.constant 8 : i32
    %462 = arith.muli %c1_i32_211, %c8_i32_212 : i32
    %463 = tpu.assume_multiple %462, 8 : i32
    %464 = arith.index_cast %463 : i32 to index
    %c0_213 = arith.constant 0 : index
    %465 = vector.load %arg13[%464, %c0_213] : memref<64x512xf32, #tpu.memory_space<vmem>>, vector<8x512xf32>
    %c1_214 = arith.constant 1 : index
    %c0_215 = arith.constant 0 : index
    %c0_216 = arith.constant 0 : index
    %466 = vector.load %arg10[%c1_214, %c0_215, %c0_216] : memref<2x8x128xf32, #tpu.memory_space<vmem>>, vector<1x8x128xf32>
    %467 = vector.shape_cast %466 : vector<1x8x128xf32> to vector<8x128xf32>
    %c1_217 = arith.constant 1 : index
    %c0_218 = arith.constant 0 : index
    %c0_219 = arith.constant 0 : index
    %468 = vector.load %arg11[%c1_217, %c0_218, %c0_219] : memref<2x8x128xf32, #tpu.memory_space<vmem>>, vector<1x8x128xf32>
    %469 = vector.shape_cast %468 : vector<1x8x128xf32> to vector<8x128xf32>
    %470 = arith.truncf %467 : vector<8x128xf32> to vector<8x128xbf16>
    %cst_220 = arith.constant dense<0.000000e+00> : vector<8x512xf32>
    %471 = tpu.matmul %470, %405, %cst_220 {dimension_numbers = #tpu.dot_dimension_numbers<[1], [0], [0], [1], [0, 0, 1, 1], [], []>} : vector<8x128xbf16>, vector<128x512xbf16>, vector<8x512xf32> -> vector<8x512xf32>
    %472 = arith.addf %465, %471 : vector<8x512xf32>
    %473 = vector.extract_strided_slice %472 {offsets = [0, 0], sizes = [8, 128], strides = [1, 1]} : vector<8x512xf32> to vector<8x128xf32>
    %474 = arith.negf %473 : vector<8x128xf32>
    %475 = math.exp %474 : vector<8x128xf32>
    %cst_221 = arith.constant 1.000000e+00 : f32
    %476 = vector.broadcast %cst_221 : f32 to vector<8x128xf32>
    %477 = arith.addf %476, %475 : vector<8x128xf32>
    %478 = arith.divf %476, %477 : vector<8x128xf32>
    %479 = vector.extract_strided_slice %472 {offsets = [0, 128], sizes = [8, 128], strides = [1, 1]} : vector<8x512xf32> to vector<8x128xf32>
    %480 = arith.negf %479 : vector<8x128xf32>
    %481 = math.exp %480 : vector<8x128xf32>
    %cst_222 = arith.constant 1.000000e+00 : f32
    %482 = vector.broadcast %cst_222 : f32 to vector<8x128xf32>
    %483 = arith.addf %482, %481 : vector<8x128xf32>
    %484 = arith.divf %482, %483 : vector<8x128xf32>
    %485 = vector.extract_strided_slice %472 {offsets = [0, 256], sizes = [8, 128], strides = [1, 1]} : vector<8x512xf32> to vector<8x128xf32>
    %486 = math.tanh %485 : vector<8x128xf32>
    %487 = vector.extract_strided_slice %472 {offsets = [0, 384], sizes = [8, 128], strides = [1, 1]} : vector<8x512xf32> to vector<8x128xf32>
    %488 = arith.negf %487 : vector<8x128xf32>
    %489 = math.exp %488 : vector<8x128xf32>
    %cst_223 = arith.constant 1.000000e+00 : f32
    %490 = vector.broadcast %cst_223 : f32 to vector<8x128xf32>
    %491 = arith.addf %490, %489 : vector<8x128xf32>
    %492 = arith.divf %490, %491 : vector<8x128xf32>
    %493 = arith.mulf %484, %469 : vector<8x128xf32>
    %494 = arith.mulf %478, %486 : vector<8x128xf32>
    %495 = arith.addf %493, %494 : vector<8x128xf32>
    %496 = math.tanh %495 : vector<8x128xf32>
    %497 = arith.mulf %492, %496 : vector<8x128xf32>
    %c8_i32_224 = arith.constant 8 : i32
    %498 = arith.muli %arg0, %c8_i32_224 : i32
    %499 = arith.addi %498, %c1_i32_211 : i32
    %c8_i32_225 = arith.constant 8 : i32
    %500 = arith.cmpi slt, %499, %c8_i32_225 : i32
    %501 = arith.select %500, %497, %467 : vector<8x128xf32>
    %c1_226 = arith.constant 1 : index
    %c0_227 = arith.constant 0 : index
    %c0_228 = arith.constant 0 : index
    %502 = vector.load %arg10[%c1_226, %c0_227, %c0_228] : memref<2x8x128xf32, #tpu.memory_space<vmem>>, vector<1x8x128xf32>
    %503 = vector.shape_cast %502 : vector<1x8x128xf32> to vector<8x128xf32>
    %504 = vector.shape_cast %501 : vector<8x128xf32> to vector<1x8x128xf32>
    tpu.vector_store %arg10[%c1_226, %c0_227, %c0_228], %504 {strides = array<i32>} : memref<2x8x128xf32, #tpu.memory_space<vmem>>, vector<1x8x128xf32>,
    %505 = arith.select %500, %495, %469 : vector<8x128xf32>
    %c1_229 = arith.constant 1 : index
    %c0_230 = arith.constant 0 : index
    %c0_231 = arith.constant 0 : index
    %506 = vector.load %arg11[%c1_229, %c0_230, %c0_231] : memref<2x8x128xf32, #tpu.memory_space<vmem>>, vector<1x8x128xf32>
    %507 = vector.shape_cast %506 : vector<1x8x128xf32> to vector<8x128xf32>
    %508 = vector.shape_cast %505 : vector<8x128xf32> to vector<1x8x128xf32>
    tpu.vector_store %arg11[%c1_229, %c0_230, %c0_231], %508 {strides = array<i32>} : memref<2x8x128xf32, #tpu.memory_space<vmem>>, vector<1x8x128xf32>,
    %509 = arith.index_cast %463 : i32 to index
    %c0_232 = arith.constant 0 : index
    %510 = vector.load %arg12[%509, %c0_232] : memref<64x128xf32, #tpu.memory_space<vmem>>, vector<8x128xf32>
    tpu.vector_store %arg12[%509, %c0_232], %497 {strides = array<i32>} : memref<64x128xf32, #tpu.memory_space<vmem>>, vector<8x128xf32>,
    %c2_i32_233 = arith.constant 2 : i32
    %c8_i32_234 = arith.constant 8 : i32
    %511 = arith.muli %c2_i32_233, %c8_i32_234 : i32
    %512 = tpu.assume_multiple %511, 8 : i32
    %513 = arith.index_cast %512 : i32 to index
    %c0_235 = arith.constant 0 : index
    %514 = vector.load %arg13[%513, %c0_235] : memref<64x512xf32, #tpu.memory_space<vmem>>, vector<8x512xf32>
    %c1_236 = arith.constant 1 : index
    %c0_237 = arith.constant 0 : index
    %c0_238 = arith.constant 0 : index
    %515 = vector.load %arg10[%c1_236, %c0_237, %c0_238] : memref<2x8x128xf32, #tpu.memory_space<vmem>>, vector<1x8x128xf32>
    %516 = vector.shape_cast %515 : vector<1x8x128xf32> to vector<8x128xf32>
    %c1_239 = arith.constant 1 : index
    %c0_240 = arith.constant 0 : index
    %c0_241 = arith.constant 0 : index
    %517 = vector.load %arg11[%c1_239, %c0_240, %c0_241] : memref<2x8x128xf32, #tpu.memory_space<vmem>>, vector<1x8x128xf32>
    %518 = vector.shape_cast %517 : vector<1x8x128xf32> to vector<8x128xf32>
    %519 = arith.truncf %516 : vector<8x128xf32> to vector<8x128xbf16>
    %cst_242 = arith.constant dense<0.000000e+00> : vector<8x512xf32>
    %520 = tpu.matmul %519, %405, %cst_242 {dimension_numbers = #tpu.dot_dimension_numbers<[1], [0], [0], [1], [0, 0, 1, 1], [], []>} : vector<8x128xbf16>, vector<128x512xbf16>, vector<8x512xf32> -> vector<8x512xf32>
    %521 = arith.addf %514, %520 : vector<8x512xf32>
    %522 = vector.extract_strided_slice %521 {offsets = [0, 0], sizes = [8, 128], strides = [1, 1]} : vector<8x512xf32> to vector<8x128xf32>
    %523 = arith.negf %522 : vector<8x128xf32>
    %524 = math.exp %523 : vector<8x128xf32>
    %cst_243 = arith.constant 1.000000e+00 : f32
    %525 = vector.broadcast %cst_243 : f32 to vector<8x128xf32>
    %526 = arith.addf %525, %524 : vector<8x128xf32>
    %527 = arith.divf %525, %526 : vector<8x128xf32>
    %528 = vector.extract_strided_slice %521 {offsets = [0, 128], sizes = [8, 128], strides = [1, 1]} : vector<8x512xf32> to vector<8x128xf32>
    %529 = arith.negf %528 : vector<8x128xf32>
    %530 = math.exp %529 : vector<8x128xf32>
    %cst_244 = arith.constant 1.000000e+00 : f32
    %531 = vector.broadcast %cst_244 : f32 to vector<8x128xf32>
    %532 = arith.addf %531, %530 : vector<8x128xf32>
    %533 = arith.divf %531, %532 : vector<8x128xf32>
    %534 = vector.extract_strided_slice %521 {offsets = [0, 256], sizes = [8, 128], strides = [1, 1]} : vector<8x512xf32> to vector<8x128xf32>
    %535 = math.tanh %534 : vector<8x128xf32>
    %536 = vector.extract_strided_slice %521 {offsets = [0, 384], sizes = [8, 128], strides = [1, 1]} : vector<8x512xf32> to vector<8x128xf32>
    %537 = arith.negf %536 : vector<8x128xf32>
    %538 = math.exp %537 : vector<8x128xf32>
    %cst_245 = arith.constant 1.000000e+00 : f32
    %539 = vector.broadcast %cst_245 : f32 to vector<8x128xf32>
    %540 = arith.addf %539, %538 : vector<8x128xf32>
    %541 = arith.divf %539, %540 : vector<8x128xf32>
    %542 = arith.mulf %533, %518 : vector<8x128xf32>
    %543 = arith.mulf %527, %535 : vector<8x128xf32>
    %544 = arith.addf %542, %543 : vector<8x128xf32>
    %545 = math.tanh %544 : vector<8x128xf32>
    %546 = arith.mulf %541, %545 : vector<8x128xf32>
    %c8_i32_246 = arith.constant 8 : i32
    %547 = arith.muli %arg0, %c8_i32_246 : i32
    %548 = arith.addi %547, %c2_i32_233 : i32
    %c8_i32_247 = arith.constant 8 : i32
    %549 = arith.cmpi slt, %548, %c8_i32_247 : i32
    %550 = arith.select %549, %546, %516 : vector<8x128xf32>
    %c1_248 = arith.constant 1 : index
    %c0_249 = arith.constant 0 : index
    %c0_250 = arith.constant 0 : index
    %551 = vector.load %arg10[%c1_248, %c0_249, %c0_250] : memref<2x8x128xf32, #tpu.memory_space<vmem>>, vector<1x8x128xf32>
    %552 = vector.shape_cast %551 : vector<1x8x128xf32> to vector<8x128xf32>
    %553 = vector.shape_cast %550 : vector<8x128xf32> to vector<1x8x128xf32>
    tpu.vector_store %arg10[%c1_248, %c0_249, %c0_250], %553 {strides = array<i32>} : memref<2x8x128xf32, #tpu.memory_space<vmem>>, vector<1x8x128xf32>,
    %554 = arith.select %549, %544, %518 : vector<8x128xf32>
    %c1_251 = arith.constant 1 : index
    %c0_252 = arith.constant 0 : index
    %c0_253 = arith.constant 0 : index
    %555 = vector.load %arg11[%c1_251, %c0_252, %c0_253] : memref<2x8x128xf32, #tpu.memory_space<vmem>>, vector<1x8x128xf32>
    %556 = vector.shape_cast %555 : vector<1x8x128xf32> to vector<8x128xf32>
    %557 = vector.shape_cast %554 : vector<8x128xf32> to vector<1x8x128xf32>
    tpu.vector_store %arg11[%c1_251, %c0_252, %c0_253], %557 {strides = array<i32>} : memref<2x8x128xf32, #tpu.memory_space<vmem>>, vector<1x8x128xf32>,
    %558 = arith.index_cast %512 : i32 to index
    %c0_254 = arith.constant 0 : index
    %559 = vector.load %arg12[%558, %c0_254] : memref<64x128xf32, #tpu.memory_space<vmem>>, vector<8x128xf32>
    tpu.vector_store %arg12[%558, %c0_254], %546 {strides = array<i32>} : memref<64x128xf32, #tpu.memory_space<vmem>>, vector<8x128xf32>,
    %c3_i32_255 = arith.constant 3 : i32
    %c8_i32_256 = arith.constant 8 : i32
    %560 = arith.muli %c3_i32_255, %c8_i32_256 : i32
    %561 = tpu.assume_multiple %560, 8 : i32
    %562 = arith.index_cast %561 : i32 to index
    %c0_257 = arith.constant 0 : index
    %563 = vector.load %arg13[%562, %c0_257] : memref<64x512xf32, #tpu.memory_space<vmem>>, vector<8x512xf32>
    %c1_258 = arith.constant 1 : index
    %c0_259 = arith.constant 0 : index
    %c0_260 = arith.constant 0 : index
    %564 = vector.load %arg10[%c1_258, %c0_259, %c0_260] : memref<2x8x128xf32, #tpu.memory_space<vmem>>, vector<1x8x128xf32>
    %565 = vector.shape_cast %564 : vector<1x8x128xf32> to vector<8x128xf32>
    %c1_261 = arith.constant 1 : index
    %c0_262 = arith.constant 0 : index
    %c0_263 = arith.constant 0 : index
    %566 = vector.load %arg11[%c1_261, %c0_262, %c0_263] : memref<2x8x128xf32, #tpu.memory_space<vmem>>, vector<1x8x128xf32>
    %567 = vector.shape_cast %566 : vector<1x8x128xf32> to vector<8x128xf32>
    %568 = arith.truncf %565 : vector<8x128xf32> to vector<8x128xbf16>
    %cst_264 = arith.constant dense<0.000000e+00> : vector<8x512xf32>
    %569 = tpu.matmul %568, %405, %cst_264 {dimension_numbers = #tpu.dot_dimension_numbers<[1], [0], [0], [1], [0, 0, 1, 1], [], []>} : vector<8x128xbf16>, vector<128x512xbf16>, vector<8x512xf32> -> vector<8x512xf32>
    %570 = arith.addf %563, %569 : vector<8x512xf32>
    %571 = vector.extract_strided_slice %570 {offsets = [0, 0], sizes = [8, 128], strides = [1, 1]} : vector<8x512xf32> to vector<8x128xf32>
    %572 = arith.negf %571 : vector<8x128xf32>
    %573 = math.exp %572 : vector<8x128xf32>
    %cst_265 = arith.constant 1.000000e+00 : f32
    %574 = vector.broadcast %cst_265 : f32 to vector<8x128xf32>
    %575 = arith.addf %574, %573 : vector<8x128xf32>
    %576 = arith.divf %574, %575 : vector<8x128xf32>
    %577 = vector.extract_strided_slice %570 {offsets = [0, 128], sizes = [8, 128], strides = [1, 1]} : vector<8x512xf32> to vector<8x128xf32>
    %578 = arith.negf %577 : vector<8x128xf32>
    %579 = math.exp %578 : vector<8x128xf32>
    %cst_266 = arith.constant 1.000000e+00 : f32
    %580 = vector.broadcast %cst_266 : f32 to vector<8x128xf32>
    %581 = arith.addf %580, %579 : vector<8x128xf32>
    %582 = arith.divf %580, %581 : vector<8x128xf32>
    %583 = vector.extract_strided_slice %570 {offsets = [0, 256], sizes = [8, 128], strides = [1, 1]} : vector<8x512xf32> to vector<8x128xf32>
    %584 = math.tanh %583 : vector<8x128xf32>
    %585 = vector.extract_strided_slice %570 {offsets = [0, 384], sizes = [8, 128], strides = [1, 1]} : vector<8x512xf32> to vector<8x128xf32>
    %586 = arith.negf %585 : vector<8x128xf32>
    %587 = math.exp %586 : vector<8x128xf32>
    %cst_267 = arith.constant 1.000000e+00 : f32
    %588 = vector.broadcast %cst_267 : f32 to vector<8x128xf32>
    %589 = arith.addf %588, %587 : vector<8x128xf32>
    %590 = arith.divf %588, %589 : vector<8x128xf32>
    %591 = arith.mulf %582, %567 : vector<8x128xf32>
    %592 = arith.mulf %576, %584 : vector<8x128xf32>
    %593 = arith.addf %591, %592 : vector<8x128xf32>
    %594 = math.tanh %593 : vector<8x128xf32>
    %595 = arith.mulf %590, %594 : vector<8x128xf32>
    %c8_i32_268 = arith.constant 8 : i32
    %596 = arith.muli %arg0, %c8_i32_268 : i32
    %597 = arith.addi %596, %c3_i32_255 : i32
    %c8_i32_269 = arith.constant 8 : i32
    %598 = arith.cmpi slt, %597, %c8_i32_269 : i32
    %599 = arith.select %598, %595, %565 : vector<8x128xf32>
    %c1_270 = arith.constant 1 : index
    %c0_271 = arith.constant 0 : index
    %c0_272 = arith.constant 0 : index
    %600 = vector.load %arg10[%c1_270, %c0_271, %c0_272] : memref<2x8x128xf32, #tpu.memory_space<vmem>>, vector<1x8x128xf32>
    %601 = vector.shape_cast %600 : vector<1x8x128xf32> to vector<8x128xf32>
    %602 = vector.shape_cast %599 : vector<8x128xf32> to vector<1x8x128xf32>
    tpu.vector_store %arg10[%c1_270, %c0_271, %c0_272], %602 {strides = array<i32>} : memref<2x8x128xf32, #tpu.memory_space<vmem>>, vector<1x8x128xf32>,
    %603 = arith.select %598, %593, %567 : vector<8x128xf32>
    %c1_273 = arith.constant 1 : index
    %c0_274 = arith.constant 0 : index
    %c0_275 = arith.constant 0 : index
    %604 = vector.load %arg11[%c1_273, %c0_274, %c0_275] : memref<2x8x128xf32, #tpu.memory_space<vmem>>, vector<1x8x128xf32>
    %605 = vector.shape_cast %604 : vector<1x8x128xf32> to vector<8x128xf32>
    %606 = vector.shape_cast %603 : vector<8x128xf32> to vector<1x8x128xf32>
    tpu.vector_store %arg11[%c1_273, %c0_274, %c0_275], %606 {strides = array<i32>} : memref<2x8x128xf32, #tpu.memory_space<vmem>>, vector<1x8x128xf32>,
    %607 = arith.index_cast %561 : i32 to index
    %c0_276 = arith.constant 0 : index
    %608 = vector.load %arg12[%607, %c0_276] : memref<64x128xf32, #tpu.memory_space<vmem>>, vector<8x128xf32>
    tpu.vector_store %arg12[%607, %c0_276], %595 {strides = array<i32>} : memref<64x128xf32, #tpu.memory_space<vmem>>, vector<8x128xf32>,
    %c4_i32_277 = arith.constant 4 : i32
    %c8_i32_278 = arith.constant 8 : i32
    %609 = arith.muli %c4_i32_277, %c8_i32_278 : i32
    %610 = tpu.assume_multiple %609, 8 : i32
    %611 = arith.index_cast %610 : i32 to index
    %c0_279 = arith.constant 0 : index
    %612 = vector.load %arg13[%611, %c0_279] : memref<64x512xf32, #tpu.memory_space<vmem>>, vector<8x512xf32>
    %c1_280 = arith.constant 1 : index
    %c0_281 = arith.constant 0 : index
    %c0_282 = arith.constant 0 : index
    %613 = vector.load %arg10[%c1_280, %c0_281, %c0_282] : memref<2x8x128xf32, #tpu.memory_space<vmem>>, vector<1x8x128xf32>
    %614 = vector.shape_cast %613 : vector<1x8x128xf32> to vector<8x128xf32>
    %c1_283 = arith.constant 1 : index
    %c0_284 = arith.constant 0 : index
    %c0_285 = arith.constant 0 : index
    %615 = vector.load %arg11[%c1_283, %c0_284, %c0_285] : memref<2x8x128xf32, #tpu.memory_space<vmem>>, vector<1x8x128xf32>
    %616 = vector.shape_cast %615 : vector<1x8x128xf32> to vector<8x128xf32>
    %617 = arith.truncf %614 : vector<8x128xf32> to vector<8x128xbf16>
    %cst_286 = arith.constant dense<0.000000e+00> : vector<8x512xf32>
    %618 = tpu.matmul %617, %405, %cst_286 {dimension_numbers = #tpu.dot_dimension_numbers<[1], [0], [0], [1], [0, 0, 1, 1], [], []>} : vector<8x128xbf16>, vector<128x512xbf16>, vector<8x512xf32> -> vector<8x512xf32>
    %619 = arith.addf %612, %618 : vector<8x512xf32>
    %620 = vector.extract_strided_slice %619 {offsets = [0, 0], sizes = [8, 128], strides = [1, 1]} : vector<8x512xf32> to vector<8x128xf32>
    %621 = arith.negf %620 : vector<8x128xf32>
    %622 = math.exp %621 : vector<8x128xf32>
    %cst_287 = arith.constant 1.000000e+00 : f32
    %623 = vector.broadcast %cst_287 : f32 to vector<8x128xf32>
    %624 = arith.addf %623, %622 : vector<8x128xf32>
    %625 = arith.divf %623, %624 : vector<8x128xf32>
    %626 = vector.extract_strided_slice %619 {offsets = [0, 128], sizes = [8, 128], strides = [1, 1]} : vector<8x512xf32> to vector<8x128xf32>
    %627 = arith.negf %626 : vector<8x128xf32>
    %628 = math.exp %627 : vector<8x128xf32>
    %cst_288 = arith.constant 1.000000e+00 : f32
    %629 = vector.broadcast %cst_288 : f32 to vector<8x128xf32>
    %630 = arith.addf %629, %628 : vector<8x128xf32>
    %631 = arith.divf %629, %630 : vector<8x128xf32>
    %632 = vector.extract_strided_slice %619 {offsets = [0, 256], sizes = [8, 128], strides = [1, 1]} : vector<8x512xf32> to vector<8x128xf32>
    %633 = math.tanh %632 : vector<8x128xf32>
    %634 = vector.extract_strided_slice %619 {offsets = [0, 384], sizes = [8, 128], strides = [1, 1]} : vector<8x512xf32> to vector<8x128xf32>
    %635 = arith.negf %634 : vector<8x128xf32>
    %636 = math.exp %635 : vector<8x128xf32>
    %cst_289 = arith.constant 1.000000e+00 : f32
    %637 = vector.broadcast %cst_289 : f32 to vector<8x128xf32>
    %638 = arith.addf %637, %636 : vector<8x128xf32>
    %639 = arith.divf %637, %638 : vector<8x128xf32>
    %640 = arith.mulf %631, %616 : vector<8x128xf32>
    %641 = arith.mulf %625, %633 : vector<8x128xf32>
    %642 = arith.addf %640, %641 : vector<8x128xf32>
    %643 = math.tanh %642 : vector<8x128xf32>
    %644 = arith.mulf %639, %643 : vector<8x128xf32>
    %c8_i32_290 = arith.constant 8 : i32
    %645 = arith.muli %arg0, %c8_i32_290 : i32
    %646 = arith.addi %645, %c4_i32_277 : i32
    %c8_i32_291 = arith.constant 8 : i32
    %647 = arith.cmpi slt, %646, %c8_i32_291 : i32
    %648 = arith.select %647, %644, %614 : vector<8x128xf32>
    %c1_292 = arith.constant 1 : index
    %c0_293 = arith.constant 0 : index
    %c0_294 = arith.constant 0 : index
    %649 = vector.load %arg10[%c1_292, %c0_293, %c0_294] : memref<2x8x128xf32, #tpu.memory_space<vmem>>, vector<1x8x128xf32>
    %650 = vector.shape_cast %649 : vector<1x8x128xf32> to vector<8x128xf32>
    %651 = vector.shape_cast %648 : vector<8x128xf32> to vector<1x8x128xf32>
    tpu.vector_store %arg10[%c1_292, %c0_293, %c0_294], %651 {strides = array<i32>} : memref<2x8x128xf32, #tpu.memory_space<vmem>>, vector<1x8x128xf32>,
    %652 = arith.select %647, %642, %616 : vector<8x128xf32>
    %c1_295 = arith.constant 1 : index
    %c0_296 = arith.constant 0 : index
    %c0_297 = arith.constant 0 : index
    %653 = vector.load %arg11[%c1_295, %c0_296, %c0_297] : memref<2x8x128xf32, #tpu.memory_space<vmem>>, vector<1x8x128xf32>
    %654 = vector.shape_cast %653 : vector<1x8x128xf32> to vector<8x128xf32>
    %655 = vector.shape_cast %652 : vector<8x128xf32> to vector<1x8x128xf32>
    tpu.vector_store %arg11[%c1_295, %c0_296, %c0_297], %655 {strides = array<i32>} : memref<2x8x128xf32, #tpu.memory_space<vmem>>, vector<1x8x128xf32>,
    %656 = arith.index_cast %610 : i32 to index
    %c0_298 = arith.constant 0 : index
    %657 = vector.load %arg12[%656, %c0_298] : memref<64x128xf32, #tpu.memory_space<vmem>>, vector<8x128xf32>
    tpu.vector_store %arg12[%656, %c0_298], %644 {strides = array<i32>} : memref<64x128xf32, #tpu.memory_space<vmem>>, vector<8x128xf32>,
    %c5_i32_299 = arith.constant 5 : i32
    %c8_i32_300 = arith.constant 8 : i32
    %658 = arith.muli %c5_i32_299, %c8_i32_300 : i32
    %659 = tpu.assume_multiple %658, 8 : i32
    %660 = arith.index_cast %659 : i32 to index
    %c0_301 = arith.constant 0 : index
    %661 = vector.load %arg13[%660, %c0_301] : memref<64x512xf32, #tpu.memory_space<vmem>>, vector<8x512xf32>
    %c1_302 = arith.constant 1 : index
    %c0_303 = arith.constant 0 : index
    %c0_304 = arith.constant 0 : index
    %662 = vector.load %arg10[%c1_302, %c0_303, %c0_304] : memref<2x8x128xf32, #tpu.memory_space<vmem>>, vector<1x8x128xf32>
    %663 = vector.shape_cast %662 : vector<1x8x128xf32> to vector<8x128xf32>
    %c1_305 = arith.constant 1 : index
    %c0_306 = arith.constant 0 : index
    %c0_307 = arith.constant 0 : index
    %664 = vector.load %arg11[%c1_305, %c0_306, %c0_307] : memref<2x8x128xf32, #tpu.memory_space<vmem>>, vector<1x8x128xf32>
    %665 = vector.shape_cast %664 : vector<1x8x128xf32> to vector<8x128xf32>
    %666 = arith.truncf %663 : vector<8x128xf32> to vector<8x128xbf16>
    %cst_308 = arith.constant dense<0.000000e+00> : vector<8x512xf32>
    %667 = tpu.matmul %666, %405, %cst_308 {dimension_numbers = #tpu.dot_dimension_numbers<[1], [0], [0], [1], [0, 0, 1, 1], [], []>} : vector<8x128xbf16>, vector<128x512xbf16>, vector<8x512xf32> -> vector<8x512xf32>
    %668 = arith.addf %661, %667 : vector<8x512xf32>
    %669 = vector.extract_strided_slice %668 {offsets = [0, 0], sizes = [8, 128], strides = [1, 1]} : vector<8x512xf32> to vector<8x128xf32>
    %670 = arith.negf %669 : vector<8x128xf32>
    %671 = math.exp %670 : vector<8x128xf32>
    %cst_309 = arith.constant 1.000000e+00 : f32
    %672 = vector.broadcast %cst_309 : f32 to vector<8x128xf32>
    %673 = arith.addf %672, %671 : vector<8x128xf32>
    %674 = arith.divf %672, %673 : vector<8x128xf32>
    %675 = vector.extract_strided_slice %668 {offsets = [0, 128], sizes = [8, 128], strides = [1, 1]} : vector<8x512xf32> to vector<8x128xf32>
    %676 = arith.negf %675 : vector<8x128xf32>
    %677 = math.exp %676 : vector<8x128xf32>
    %cst_310 = arith.constant 1.000000e+00 : f32
    %678 = vector.broadcast %cst_310 : f32 to vector<8x128xf32>
    %679 = arith.addf %678, %677 : vector<8x128xf32>
    %680 = arith.divf %678, %679 : vector<8x128xf32>
    %681 = vector.extract_strided_slice %668 {offsets = [0, 256], sizes = [8, 128], strides = [1, 1]} : vector<8x512xf32> to vector<8x128xf32>
    %682 = math.tanh %681 : vector<8x128xf32>
    %683 = vector.extract_strided_slice %668 {offsets = [0, 384], sizes = [8, 128], strides = [1, 1]} : vector<8x512xf32> to vector<8x128xf32>
    %684 = arith.negf %683 : vector<8x128xf32>
    %685 = math.exp %684 : vector<8x128xf32>
    %cst_311 = arith.constant 1.000000e+00 : f32
    %686 = vector.broadcast %cst_311 : f32 to vector<8x128xf32>
    %687 = arith.addf %686, %685 : vector<8x128xf32>
    %688 = arith.divf %686, %687 : vector<8x128xf32>
    %689 = arith.mulf %680, %665 : vector<8x128xf32>
    %690 = arith.mulf %674, %682 : vector<8x128xf32>
    %691 = arith.addf %689, %690 : vector<8x128xf32>
    %692 = math.tanh %691 : vector<8x128xf32>
    %693 = arith.mulf %688, %692 : vector<8x128xf32>
    %c8_i32_312 = arith.constant 8 : i32
    %694 = arith.muli %arg0, %c8_i32_312 : i32
    %695 = arith.addi %694, %c5_i32_299 : i32
    %c8_i32_313 = arith.constant 8 : i32
    %696 = arith.cmpi slt, %695, %c8_i32_313 : i32
    %697 = arith.select %696, %693, %663 : vector<8x128xf32>
    %c1_314 = arith.constant 1 : index
    %c0_315 = arith.constant 0 : index
    %c0_316 = arith.constant 0 : index
    %698 = vector.load %arg10[%c1_314, %c0_315, %c0_316] : memref<2x8x128xf32, #tpu.memory_space<vmem>>, vector<1x8x128xf32>
    %699 = vector.shape_cast %698 : vector<1x8x128xf32> to vector<8x128xf32>
    %700 = vector.shape_cast %697 : vector<8x128xf32> to vector<1x8x128xf32>
    tpu.vector_store %arg10[%c1_314, %c0_315, %c0_316], %700 {strides = array<i32>} : memref<2x8x128xf32, #tpu.memory_space<vmem>>, vector<1x8x128xf32>,
    %701 = arith.select %696, %691, %665 : vector<8x128xf32>
    %c1_317 = arith.constant 1 : index
    %c0_318 = arith.constant 0 : index
    %c0_319 = arith.constant 0 : index
    %702 = vector.load %arg11[%c1_317, %c0_318, %c0_319] : memref<2x8x128xf32, #tpu.memory_space<vmem>>, vector<1x8x128xf32>
    %703 = vector.shape_cast %702 : vector<1x8x128xf32> to vector<8x128xf32>
    %704 = vector.shape_cast %701 : vector<8x128xf32> to vector<1x8x128xf32>
    tpu.vector_store %arg11[%c1_317, %c0_318, %c0_319], %704 {strides = array<i32>} : memref<2x8x128xf32, #tpu.memory_space<vmem>>, vector<1x8x128xf32>,
    %705 = arith.index_cast %659 : i32 to index
    %c0_320 = arith.constant 0 : index
    %706 = vector.load %arg12[%705, %c0_320] : memref<64x128xf32, #tpu.memory_space<vmem>>, vector<8x128xf32>
    tpu.vector_store %arg12[%705, %c0_320], %693 {strides = array<i32>} : memref<64x128xf32, #tpu.memory_space<vmem>>, vector<8x128xf32>,
    %c6_i32_321 = arith.constant 6 : i32
    %c8_i32_322 = arith.constant 8 : i32
    %707 = arith.muli %c6_i32_321, %c8_i32_322 : i32
    %708 = tpu.assume_multiple %707, 8 : i32
    %709 = arith.index_cast %708 : i32 to index
    %c0_323 = arith.constant 0 : index
    %710 = vector.load %arg13[%709, %c0_323] : memref<64x512xf32, #tpu.memory_space<vmem>>, vector<8x512xf32>
    %c1_324 = arith.constant 1 : index
    %c0_325 = arith.constant 0 : index
    %c0_326 = arith.constant 0 : index
    %711 = vector.load %arg10[%c1_324, %c0_325, %c0_326] : memref<2x8x128xf32, #tpu.memory_space<vmem>>, vector<1x8x128xf32>
    %712 = vector.shape_cast %711 : vector<1x8x128xf32> to vector<8x128xf32>
    %c1_327 = arith.constant 1 : index
    %c0_328 = arith.constant 0 : index
    %c0_329 = arith.constant 0 : index
    %713 = vector.load %arg11[%c1_327, %c0_328, %c0_329] : memref<2x8x128xf32, #tpu.memory_space<vmem>>, vector<1x8x128xf32>
    %714 = vector.shape_cast %713 : vector<1x8x128xf32> to vector<8x128xf32>
    %715 = arith.truncf %712 : vector<8x128xf32> to vector<8x128xbf16>
    %cst_330 = arith.constant dense<0.000000e+00> : vector<8x512xf32>
    %716 = tpu.matmul %715, %405, %cst_330 {dimension_numbers = #tpu.dot_dimension_numbers<[1], [0], [0], [1], [0, 0, 1, 1], [], []>} : vector<8x128xbf16>, vector<128x512xbf16>, vector<8x512xf32> -> vector<8x512xf32>
    %717 = arith.addf %710, %716 : vector<8x512xf32>
    %718 = vector.extract_strided_slice %717 {offsets = [0, 0], sizes = [8, 128], strides = [1, 1]} : vector<8x512xf32> to vector<8x128xf32>
    %719 = arith.negf %718 : vector<8x128xf32>
    %720 = math.exp %719 : vector<8x128xf32>
    %cst_331 = arith.constant 1.000000e+00 : f32
    %721 = vector.broadcast %cst_331 : f32 to vector<8x128xf32>
    %722 = arith.addf %721, %720 : vector<8x128xf32>
    %723 = arith.divf %721, %722 : vector<8x128xf32>
    %724 = vector.extract_strided_slice %717 {offsets = [0, 128], sizes = [8, 128], strides = [1, 1]} : vector<8x512xf32> to vector<8x128xf32>
    %725 = arith.negf %724 : vector<8x128xf32>
    %726 = math.exp %725 : vector<8x128xf32>
    %cst_332 = arith.constant 1.000000e+00 : f32
    %727 = vector.broadcast %cst_332 : f32 to vector<8x128xf32>
    %728 = arith.addf %727, %726 : vector<8x128xf32>
    %729 = arith.divf %727, %728 : vector<8x128xf32>
    %730 = vector.extract_strided_slice %717 {offsets = [0, 256], sizes = [8, 128], strides = [1, 1]} : vector<8x512xf32> to vector<8x128xf32>
    %731 = math.tanh %730 : vector<8x128xf32>
    %732 = vector.extract_strided_slice %717 {offsets = [0, 384], sizes = [8, 128], strides = [1, 1]} : vector<8x512xf32> to vector<8x128xf32>
    %733 = arith.negf %732 : vector<8x128xf32>
    %734 = math.exp %733 : vector<8x128xf32>
    %cst_333 = arith.constant 1.000000e+00 : f32
    %735 = vector.broadcast %cst_333 : f32 to vector<8x128xf32>
    %736 = arith.addf %735, %734 : vector<8x128xf32>
    %737 = arith.divf %735, %736 : vector<8x128xf32>
    %738 = arith.mulf %729, %714 : vector<8x128xf32>
    %739 = arith.mulf %723, %731 : vector<8x128xf32>
    %740 = arith.addf %738, %739 : vector<8x128xf32>
    %741 = math.tanh %740 : vector<8x128xf32>
    %742 = arith.mulf %737, %741 : vector<8x128xf32>
    %c8_i32_334 = arith.constant 8 : i32
    %743 = arith.muli %arg0, %c8_i32_334 : i32
    %744 = arith.addi %743, %c6_i32_321 : i32
    %c8_i32_335 = arith.constant 8 : i32
    %745 = arith.cmpi slt, %744, %c8_i32_335 : i32
    %746 = arith.select %745, %742, %712 : vector<8x128xf32>
    %c1_336 = arith.constant 1 : index
    %c0_337 = arith.constant 0 : index
    %c0_338 = arith.constant 0 : index
    %747 = vector.load %arg10[%c1_336, %c0_337, %c0_338] : memref<2x8x128xf32, #tpu.memory_space<vmem>>, vector<1x8x128xf32>
    %748 = vector.shape_cast %747 : vector<1x8x128xf32> to vector<8x128xf32>
    %749 = vector.shape_cast %746 : vector<8x128xf32> to vector<1x8x128xf32>
    tpu.vector_store %arg10[%c1_336, %c0_337, %c0_338], %749 {strides = array<i32>} : memref<2x8x128xf32, #tpu.memory_space<vmem>>, vector<1x8x128xf32>,
    %750 = arith.select %745, %740, %714 : vector<8x128xf32>
    %c1_339 = arith.constant 1 : index
    %c0_340 = arith.constant 0 : index
    %c0_341 = arith.constant 0 : index
    %751 = vector.load %arg11[%c1_339, %c0_340, %c0_341] : memref<2x8x128xf32, #tpu.memory_space<vmem>>, vector<1x8x128xf32>
    %752 = vector.shape_cast %751 : vector<1x8x128xf32> to vector<8x128xf32>
    %753 = vector.shape_cast %750 : vector<8x128xf32> to vector<1x8x128xf32>
    tpu.vector_store %arg11[%c1_339, %c0_340, %c0_341], %753 {strides = array<i32>} : memref<2x8x128xf32, #tpu.memory_space<vmem>>, vector<1x8x128xf32>,
    %754 = arith.index_cast %708 : i32 to index
    %c0_342 = arith.constant 0 : index
    %755 = vector.load %arg12[%754, %c0_342] : memref<64x128xf32, #tpu.memory_space<vmem>>, vector<8x128xf32>
    tpu.vector_store %arg12[%754, %c0_342], %742 {strides = array<i32>} : memref<64x128xf32, #tpu.memory_space<vmem>>, vector<8x128xf32>,
    %c7_i32_343 = arith.constant 7 : i32
    %c8_i32_344 = arith.constant 8 : i32
    %756 = arith.muli %c7_i32_343, %c8_i32_344 : i32
    %757 = tpu.assume_multiple %756, 8 : i32
    %758 = arith.index_cast %757 : i32 to index
    %c0_345 = arith.constant 0 : index
    %759 = vector.load %arg13[%758, %c0_345] : memref<64x512xf32, #tpu.memory_space<vmem>>, vector<8x512xf32>
    %c1_346 = arith.constant 1 : index
    %c0_347 = arith.constant 0 : index
    %c0_348 = arith.constant 0 : index
    %760 = vector.load %arg10[%c1_346, %c0_347, %c0_348] : memref<2x8x128xf32, #tpu.memory_space<vmem>>, vector<1x8x128xf32>
    %761 = vector.shape_cast %760 : vector<1x8x128xf32> to vector<8x128xf32>
    %c1_349 = arith.constant 1 : index
    %c0_350 = arith.constant 0 : index
    %c0_351 = arith.constant 0 : index
    %762 = vector.load %arg11[%c1_349, %c0_350, %c0_351] : memref<2x8x128xf32, #tpu.memory_space<vmem>>, vector<1x8x128xf32>
    %763 = vector.shape_cast %762 : vector<1x8x128xf32> to vector<8x128xf32>
    %764 = arith.truncf %761 : vector<8x128xf32> to vector<8x128xbf16>
    %cst_352 = arith.constant dense<0.000000e+00> : vector<8x512xf32>
    %765 = tpu.matmul %764, %405, %cst_352 {dimension_numbers = #tpu.dot_dimension_numbers<[1], [0], [0], [1], [0, 0, 1, 1], [], []>} : vector<8x128xbf16>, vector<128x512xbf16>, vector<8x512xf32> -> vector<8x512xf32>
    %766 = arith.addf %759, %765 : vector<8x512xf32>
    %767 = vector.extract_strided_slice %766 {offsets = [0, 0], sizes = [8, 128], strides = [1, 1]} : vector<8x512xf32> to vector<8x128xf32>
    %768 = arith.negf %767 : vector<8x128xf32>
    %769 = math.exp %768 : vector<8x128xf32>
    %cst_353 = arith.constant 1.000000e+00 : f32
    %770 = vector.broadcast %cst_353 : f32 to vector<8x128xf32>
    %771 = arith.addf %770, %769 : vector<8x128xf32>
    %772 = arith.divf %770, %771 : vector<8x128xf32>
    %773 = vector.extract_strided_slice %766 {offsets = [0, 128], sizes = [8, 128], strides = [1, 1]} : vector<8x512xf32> to vector<8x128xf32>
    %774 = arith.negf %773 : vector<8x128xf32>
    %775 = math.exp %774 : vector<8x128xf32>
    %cst_354 = arith.constant 1.000000e+00 : f32
    %776 = vector.broadcast %cst_354 : f32 to vector<8x128xf32>
    %777 = arith.addf %776, %775 : vector<8x128xf32>
    %778 = arith.divf %776, %777 : vector<8x128xf32>
    %779 = vector.extract_strided_slice %766 {offsets = [0, 256], sizes = [8, 128], strides = [1, 1]} : vector<8x512xf32> to vector<8x128xf32>
    %780 = math.tanh %779 : vector<8x128xf32>
    %781 = vector.extract_strided_slice %766 {offsets = [0, 384], sizes = [8, 128], strides = [1, 1]} : vector<8x512xf32> to vector<8x128xf32>
    %782 = arith.negf %781 : vector<8x128xf32>
    %783 = math.exp %782 : vector<8x128xf32>
    %cst_355 = arith.constant 1.000000e+00 : f32
    %784 = vector.broadcast %cst_355 : f32 to vector<8x128xf32>
    %785 = arith.addf %784, %783 : vector<8x128xf32>
    %786 = arith.divf %784, %785 : vector<8x128xf32>
    %787 = arith.mulf %778, %763 : vector<8x128xf32>
    %788 = arith.mulf %772, %780 : vector<8x128xf32>
    %789 = arith.addf %787, %788 : vector<8x128xf32>
    %790 = math.tanh %789 : vector<8x128xf32>
    %791 = arith.mulf %786, %790 : vector<8x128xf32>
    %c8_i32_356 = arith.constant 8 : i32
    %792 = arith.muli %arg0, %c8_i32_356 : i32
    %793 = arith.addi %792, %c7_i32_343 : i32
    %c8_i32_357 = arith.constant 8 : i32
    %794 = arith.cmpi slt, %793, %c8_i32_357 : i32
    %795 = arith.select %794, %791, %761 : vector<8x128xf32>
    %c1_358 = arith.constant 1 : index
    %c0_359 = arith.constant 0 : index
    %c0_360 = arith.constant 0 : index
    %796 = vector.load %arg10[%c1_358, %c0_359, %c0_360] : memref<2x8x128xf32, #tpu.memory_space<vmem>>, vector<1x8x128xf32>
    %797 = vector.shape_cast %796 : vector<1x8x128xf32> to vector<8x128xf32>
    %798 = vector.shape_cast %795 : vector<8x128xf32> to vector<1x8x128xf32>
    tpu.vector_store %arg10[%c1_358, %c0_359, %c0_360], %798 {strides = array<i32>} : memref<2x8x128xf32, #tpu.memory_space<vmem>>, vector<1x8x128xf32>,
    %799 = arith.select %794, %789, %763 : vector<8x128xf32>
    %c1_361 = arith.constant 1 : index
    %c0_362 = arith.constant 0 : index
    %c0_363 = arith.constant 0 : index
    %800 = vector.load %arg11[%c1_361, %c0_362, %c0_363] : memref<2x8x128xf32, #tpu.memory_space<vmem>>, vector<1x8x128xf32>
    %801 = vector.shape_cast %800 : vector<1x8x128xf32> to vector<8x128xf32>
    %802 = vector.shape_cast %799 : vector<8x128xf32> to vector<1x8x128xf32>
    tpu.vector_store %arg11[%c1_361, %c0_362, %c0_363], %802 {strides = array<i32>} : memref<2x8x128xf32, #tpu.memory_space<vmem>>, vector<1x8x128xf32>,
    %803 = arith.index_cast %757 : i32 to index
    %c0_364 = arith.constant 0 : index
    %804 = vector.load %arg12[%803, %c0_364] : memref<64x128xf32, #tpu.memory_space<vmem>>, vector<8x128xf32>
    tpu.vector_store %arg12[%803, %c0_364], %791 {strides = array<i32>} : memref<64x128xf32, #tpu.memory_space<vmem>>, vector<8x128xf32>,
    %c8_i32_365 = arith.constant 8 : i32
    %c0_366 = arith.constant 0 : index
    %c0_367 = arith.constant 0 : index
    %c0_368 = arith.constant 0 : index
    %805 = vector.load %arg10[%c0_366, %c0_367, %c0_368] : memref<2x8x128xf32, #tpu.memory_space<vmem>>, vector<2x8x128xf32>
    %c0_369 = arith.constant 0 : index
    %c0_370 = arith.constant 0 : index
    %c0_371 = arith.constant 0 : index
    %806 = vector.load %arg8[%c0_369, %c0_370, %c0_371] : memref<2x8x128xf32, #tpu.memory_space<vmem>>, vector<2x8x128xf32>
    tpu.vector_store %arg8[%c0_369, %c0_370, %c0_371], %805 {strides = array<i32>} : memref<2x8x128xf32, #tpu.memory_space<vmem>>, vector<2x8x128xf32>,
    %c0_372 = arith.constant 0 : index
    %c0_373 = arith.constant 0 : index
    %c0_374 = arith.constant 0 : index
    %807 = vector.load %arg11[%c0_372, %c0_373, %c0_374] : memref<2x8x128xf32, #tpu.memory_space<vmem>>, vector<2x8x128xf32>
    %c0_375 = arith.constant 0 : index
    %c0_376 = arith.constant 0 : index
    %c0_377 = arith.constant 0 : index
    %808 = vector.load %arg9[%c0_375, %c0_376, %c0_377] : memref<2x8x128xf32, #tpu.memory_space<vmem>>, vector<2x8x128xf32>
    tpu.vector_store %arg9[%c0_375, %c0_376, %c0_377], %807 {strides = array<i32>} : memref<2x8x128xf32, #tpu.memory_space<vmem>>, vector<2x8x128xf32>,
    return
  }
  func.func @transform_0(%arg0: i32) -> (i32, i32) {
    %c0_i32 = arith.constant 0 : i32
    %c0_i32_0 = arith.constant 0 : i32
    return %arg0, %c0_i32 : i32, i32
  }
  func.func @transform_1(%arg0: i32) -> (i32, i32) {
    %c0_i32 = arith.constant 0 : i32
    %c0_i32_0 = arith.constant 0 : i32
    %c0_i32_1 = arith.constant 0 : i32
    return %c0_i32, %c0_i32_0 : i32, i32
  }
  func.func @transform_2(%arg0: i32) -> (i32, i32) {
    %c0_i32 = arith.constant 0 : i32
    %c0_i32_0 = arith.constant 0 : i32
    %c0_i32_1 = arith.constant 0 : i32
    return %c0_i32, %c0_i32_0 : i32, i32
  }
  func.func @transform_3(%arg0: i32) -> (i32, i32) {
    %c0_i32 = arith.constant 0 : i32
    %c0_i32_0 = arith.constant 0 : i32
    %c0_i32_1 = arith.constant 0 : i32
    return %c0_i32, %c0_i32_0 : i32, i32
  }
  func.func @transform_4(%arg0: i32) -> (i32, i32) {
    %c0_i32 = arith.constant 0 : i32
    %c0_i32_0 = arith.constant 0 : i32
    %c0_i32_1 = arith.constant 0 : i32
    return %c0_i32, %c0_i32_0 : i32, i32
  }
  func.func @transform_5(%arg0: i32) -> (i32, i32) {
    %c0_i32 = arith.constant 0 : i32
    %c0_i32_0 = arith.constant 0 : i32
    %c0_i32_1 = arith.constant 0 : i32
    return %c0_i32, %c0_i32_0 : i32, i32
  }
  func.func @transform_6(%arg0: i32) -> (i32, i32) {
    %c0_i32 = arith.constant 0 : i32
    %c0_i32_0 = arith.constant 0 : i32
    %c0_i32_1 = arith.constant 0 : i32
    return %c0_i32, %c0_i32_0 : i32, i32
  }
  func.func @transform_7(%arg0: i32) -> (i32, i32, i32) {
    %c0_i32 = arith.constant 0 : i32
    %c0_i32_0 = arith.constant 0 : i32
    %c0_i32_1 = arith.constant 0 : i32
    %c0_i32_2 = arith.constant 0 : i32
    return %c0_i32, %c0_i32_0, %c0_i32_1 : i32, i32, i32
  }
  func.func @transform_8(%arg0: i32) -> (i32, i32, i32) {
    %c0_i32 = arith.constant 0 : i32
    %c0_i32_0 = arith.constant 0 : i32
    %c0_i32_1 = arith.constant 0 : i32
    %c0_i32_2 = arith.constant 0 : i32
    return %c0_i32, %c0_i32_0, %c0_i32_1 : i32, i32, i32
  }
}

</mosaic_0001>

<bundles_post_ra>
// kernel: encoder_forward.1
= control target key start
LH: loop header
LB: loop body
LE: loop exit
PB: predicated region body
PF: predicated region fallthrough
CT: control target
= control target key end

     0   :  { %14 = vsyncpa [#allocation7], 0  ;;  %s5537_s0 = inlined_call_operand.vmem [shape: f32[64,128], index: 0, kind: input, shape index: {}]   ;;  %s5538_s1 = inlined_call_operand.hbm [shape: bf16[128,512], index: 1, kind: input, shape index: {}]   ;;  %s5539_s2 = inlined_call_operand.hbm [shape: bf16[128,512], index: 2, kind: input, shape index: {}]   ;;  %s5540_s3 = inlined_call_operand.vmem [shape: f32[1,512], index: 3, kind: input, shape index: {}]   ;;  %s5541_s4 = inlined_call_operand.hbm [shape: bf16[128,512], index: 4, kind: input, shape index: {}]   ;;  %s5542_s5 = inlined_call_operand.vmem [shape: bf16[128,512], index: 5, kind: input, shape index: {}]   ;;  %s5543_s6 = inlined_call_operand.vmem [shape: f32[1,512], index: 6, kind: input, shape index: {}]   ;;  %s5544_s7 = inlined_call_operand.vmem [shape: f32[2,8,128], index: 7, kind: output, shape index: {0}]   ;;  %s5545_s8 = inlined_call_operand.vmem [shape: f32[2,8,128], index: 8, kind: output, shape index: {1}]  }
   0x1   :  { %15 = vsyncpa [#allocation9], 0  ;;  %s4079_s27 = smov [#allocation8]   ;;  %s4080_s29 = smov [#allocation6]  }
   0x2   :  { %s35_s28 = sshll.u32 %s4079_s27, 4  ;;  %s23_s30 = sshll.u32 %s4080_s29, 4  ;;  %s36_s28 = int_to_ptr.vmem [resolvable:$true] %s35_s28  ;;  %s24_s30 = int_to_ptr.vmem [resolvable:$true] %s23_s30 }
   0x3   :  { %s4023_s9 = scalar_lea.vmem %s36_s28, 4096  ;;  %p4028_p1 = scmp.lt.s32.totalorder %s36_s28, %s36_s28 }
   0x4   :  { %p4024_p0 = scmp.ne.s32.totalorder %s36_s28, %s4023_s9  ;;  %p4029_p2 = scmp.lt.s32.totalorder %s4023_s9, %s4023_s9 }
   0x6   :  { %p4030_p3 = por %p4029_p2, %p4028_p1 }
   0x8   :  { %p4031_p4 = pnand %p4030_p3, %p4024_p0 }
   0xa   :  { %4034 = shalt.err (!%p4031_p4)
}
   0xb   :  { %s4081_s10 = smov 256   ;;  %s4082_s11 = smov 16  }
   0xc   :  { %41 = dma.hbm_to_vmem [thread:$0]  %s5539_s2, 4096, %s36_s28, [#allocation9], %s4081_s10, %s4081_s10, %s4082_s11  }
   0xd   :  { %s4043_s14 = scalar_lea.vmem %s24_s30, 4096  ;;  %p4048_p6 = scmp.lt.s32.totalorder %s24_s30, %s24_s30 }
   0xe   :  { %p4044_p5 = scmp.ne.s32.totalorder %s24_s30, %s4043_s14  ;;  %p4049_p7 = scmp.lt.s32.totalorder %s4043_s14, %s4043_s14 }
  0x10   :  { %p4050_p8 = por %p4049_p7, %p4048_p6 }
  0x12   :  { %p4051_p9 = pnand %p4050_p8, %p4044_p5 }
  0x14   :  { %4054 = shalt.err (!%p4051_p9)
}
  0x15   :  { %29 = dma.hbm_to_vmem [thread:$0]  %s5538_s1, 4096, %s24_s30, [#allocation7], %s4081_s10, %s4081_s10, %s4082_s11  }
  0x16   :  { %s4083_s17 = smov [#allocation10]  }
  0x17   :  { %s49_s18 = sshll.u32 %s4083_s17, 4  ;;  %s50_s18 = int_to_ptr.vmem [resolvable:$true] %s49_s18 }
  0x18   :  { %s4063_s19 = scalar_lea.vmem %s50_s18, 4096  ;;  %p4068_p11 = scmp.lt.s32.totalorder %s50_s18, %s50_s18 }
  0x19   :  { %p4064_p10 = scmp.ne.s32.totalorder %s50_s18, %s4063_s19  ;;  %p4069_p12 = scmp.lt.s32.totalorder %s4063_s19, %s4063_s19 }
  0x1b   :  { %p4070_p13 = por %p4069_p12, %p4068_p11 }
  0x1d   :  { %p4071_p0 = pnand %p4070_p13, %p4064_p10 }
  0x1f   :  { %4074 = shalt.err (!%p4071_p0)
}
  0x20   :  { %55 = dma.hbm_to_vmem [thread:$0]  %s5541_s4, 4096, %s50_s18, [#allocation9], %s4081_s10, %s4081_s10, %s4082_s11  }
  0x21   :  { %4075 = dma.done.wait [#allocation7], 4096  }
  0x22   :  { %4076 = vsyncadd [#allocation7], 4294963200 }
  0x23   :  { %4077 = dma.done.wait [#allocation9], 8192  }
  0x24   :  { %4078 = vsyncadd [#allocation9], 4294959104  ;;  %v5552_v0 = vmov 0   ;;  %v3503_v1 = vld [vmem:[#allocation6 + $0xe4] ss:$16 sps:$4 sm:$0xff]   ;;  %v144_v34 = vld [vmem:[%s5537_s0 + $0x8] sm:$0xff] }
  0x25   :  { %368 = vmatprep.mubr.bf16.mxu0 %v5552_v0  ;;  %441 = vmatprep.mubr.bf16.mxu1 %v5552_v0  ;;  %v3505_v2 = vld [vmem:[#allocation6 + $0xec] ss:$16 sps:$4 sm:$0xff]   ;;  %v3507_v3 = vld [vmem:[#allocation6 + $0xe0] ss:$16 sps:$4 sm:$0xff]   ;;  %v3508_v4 = vld [vmem:[#allocation6 + $0xe8] ss:$16 sps:$4 sm:$0xff]  }
  0x26   :  { %336 = vmatprep.subr.bf16.mxu0 %v3503_v1  ;;  %409 = vmatprep.subr.bf16.mxu1 %v3505_v2  ;;  %v3509_v5 = vld [vmem:[#allocation6 + $0xc4] ss:$16 sps:$4 sm:$0xff]   ;;  %v3511_v6 = vld [vmem:[#allocation6 + $0xcc] ss:$16 sps:$4 sm:$0xff]   ;;  %v3513_v7 = vld [vmem:[#allocation6 + $0xc0] ss:$16 sps:$4 sm:$0xff]  }
  0x27   :  { %337 = vmatpush1.bf16.msra.mxu0 %v3507_v3  ;;  %410 = vmatpush1.bf16.msra.mxu1 %v3508_v4  ;;  %v3514_v8 = vld [vmem:[#allocation6 + $0xc8] ss:$16 sps:$4 sm:$0xff]   ;;  %v3515_v9 = vld [vmem:[#allocation6 + $0xa4] ss:$16 sps:$4 sm:$0xff]   ;;  %v3517_v10 = vld [vmem:[#allocation6 + $0xac] ss:$16 sps:$4 sm:$0xff]  }
  0x28   :  { %338 = vmatprep.subr.bf16.mxu0 %v3509_v5  ;;  %411 = vmatprep.subr.bf16.mxu1 %v3511_v6  ;;  %v3519_v11 = vld [vmem:[#allocation6 + $0xa0] ss:$16 sps:$4 sm:$0xff]   ;;  %v3520_v12 = vld [vmem:[#allocation6 + $0xa8] ss:$16 sps:$4 sm:$0xff]   ;;  %v3521_v13 = vld [vmem:[#allocation6 + $0x84] ss:$16 sps:$4 sm:$0xff]  }
  0x29   :  { %v3523_v14 = vld [vmem:[#allocation6 + $0x8c] ss:$16 sps:$4 sm:$0xff]   ;;  %v3525_v15 = vld [vmem:[#allocation6 + $0x80] ss:$16 sps:$4 sm:$0xff]   ;;  %v3526_v16 = vld [vmem:[#allocation6 + $0x88] ss:$16 sps:$4 sm:$0xff]  }
  0x2a   :  { %v3527_v17 = vld [vmem:[#allocation6 + $0x64] ss:$16 sps:$4 sm:$0xff]   ;;  %v3529_v18 = vld [vmem:[#allocation6 + $0x6c] ss:$16 sps:$4 sm:$0xff]   ;;  %v3531_v19 = vld [vmem:[#allocation6 + $0x60] ss:$16 sps:$4 sm:$0xff]  }
  0x2b   :  { %339 = vmatpush1.bf16.msra.mxu0 %v3513_v7  ;;  %412 = vmatpush1.bf16.msra.mxu1 %v3514_v8  ;;  %v3532_v20 = vld [vmem:[#allocation6 + $0x68] ss:$16 sps:$4 sm:$0xff]   ;;  %v3533_v21 = vld [vmem:[#allocation6 + $0x44] ss:$16 sps:$4 sm:$0xff]   ;;  %v3535_v22 = vld [vmem:[#allocation6 + $0x4c] ss:$16 sps:$4 sm:$0xff]  }
  0x2c   :  { %340 = vmatprep.subr.bf16.mxu0 %v3515_v9  ;;  %413 = vmatprep.subr.bf16.mxu1 %v3517_v10  ;;  %v3537_v23 = vld [vmem:[#allocation6 + $0x40] ss:$16 sps:$4 sm:$0xff]   ;;  %v3538_v24 = vld [vmem:[#allocation6 + $0x48] ss:$16 sps:$4 sm:$0xff]   ;;  %v3539_v25 = vld [vmem:[#allocation6 + $0x24] ss:$16 sps:$4 sm:$0xff]  }
  0x2d   :  { %v3541_v26 = vld [vmem:[#allocation6 + $0x2c] ss:$16 sps:$4 sm:$0xff]   ;;  %v3543_v27 = vld [vmem:[#allocation6 + $0x20] ss:$16 sps:$4 sm:$0xff]   ;;  %v3544_v28 = vld [vmem:[#allocation6 + $0x28] ss:$16 sps:$4 sm:$0xff]  }
  0x2e   :  { %v3545_v29 = vld [vmem:[#allocation6 + $0x4] ss:$16 sps:$4 sm:$0xff]   ;;  %v3547_v30 = vld [vmem:[#allocation6 + $0xc] ss:$16 sps:$4 sm:$0xff]   ;;  %v3549_v31 = vld [vmem:[#allocation6] ss:$16 sps:$4 sm:$0xff]  }
  0x2f   :  { %341 = vmatpush1.bf16.msra.mxu0 %v3519_v11  ;;  %414 = vmatpush1.bf16.msra.mxu1 %v3520_v12  ;;  %v3550_v32 = vld [vmem:[#allocation6 + $0x8] ss:$16 sps:$4 sm:$0xff]   ;;  %v143_v33 = vld [vmem:[%s5537_s0] sm:$0xff]  ;;  %v4150_v36 = vld [vmem:[#allocation8 + $0xec] ss:$16 sps:$4 sm:$0xff]  }
  0x30   :  { %342 = vmatprep.subr.bf16.mxu0 %v3521_v13  ;;  %415 = vmatprep.subr.bf16.mxu1 %v3523_v14  ;;  %v4148_v35 = vld [vmem:[#allocation8 + $0xe4] ss:$16 sps:$4 sm:$0xff]   ;;  %v151_v37 = vpack.c.bf16 %v144_v34, %v143_v33  ;;  %v4152_v38 = vld [vmem:[#allocation8 + $0xe0] ss:$16 sps:$4 sm:$0xff]   ;;  %v4154_v39 = vld [vmem:[#allocation8 + $0xe8] ss:$16 sps:$4 sm:$0xff]  }
  0x31   :  { %v4158_v40 = vld [vmem:[#allocation8 + $0xc4] ss:$16 sps:$4 sm:$0xff]   ;;  %v4160_v41 = vld [vmem:[#allocation8 + $0xcc] ss:$16 sps:$4 sm:$0xff]   ;;  %v4162_v42 = vld [vmem:[#allocation8 + $0xc0] ss:$16 sps:$4 sm:$0xff]  }
  0x32   :  { %v4164_v43 = vld [vmem:[#allocation8 + $0xc8] ss:$16 sps:$4 sm:$0xff]   ;;  %v145_v44 = vld [vmem:[%s5537_s0 + $0x10] sm:$0xff]  ;;  %v4178_v47 = vld [vmem:[#allocation8 + $0xac] ss:$16 sps:$4 sm:$0xff]   ;;  %v5550_v14 = vmov 0.0|0.0  }
  0x33   :  { %343 = vmatpush1.bf16.msra.mxu0 %v3525_v15  ;;  %416 = vmatpush1.bf16.msra.mxu1 %v3526_v16  ;;  %v146_v45 = vld [vmem:[%s5537_s0 + $0x18] sm:$0xff]  ;;  %v4174_v46 = vld [vmem:[#allocation8 + $0xa4] ss:$16 sps:$4 sm:$0xff]   ;;  %v4182_v49 = vld [vmem:[#allocation8 + $0xa0] ss:$16 sps:$4 sm:$0xff]   ;;  %v156_v15 = vlaneseq }
  0x34   :  { %344 = vmatprep.subr.bf16.mxu0 %v3527_v17  ;;  %417 = vmatprep.subr.bf16.mxu1 %v3529_v18  ;;  %v152_v48 = vpack.c.bf16 %v146_v45, %v145_v44  ;;  %v4184_v50 = vld [vmem:[#allocation8 + $0xa8] ss:$16 sps:$4 sm:$0xff]   ;;  %v4188_v51 = vld [vmem:[#allocation8 + $0x84] ss:$16 sps:$4 sm:$0xff]   ;;  %v4192_v52 = vld [vmem:[#allocation8 + $0x8c] ss:$16 sps:$4 sm:$0xff]  }
  0x35   :  { %v4194_v53 = vld [vmem:[#allocation8 + $0x80] ss:$16 sps:$4 sm:$0xff]   ;;  %v4196_v54 = vld [vmem:[#allocation8 + $0x88] ss:$16 sps:$4 sm:$0xff]   ;;  %v4208_v57 = vld [vmem:[#allocation8 + $0x64] ss:$16 sps:$4 sm:$0xff]  }
  0x36   :  { %v147_v55 = vld [vmem:[%s5537_s0 + $0x20] sm:$0xff]  ;;  %v148_v56 = vld [vmem:[%s5537_s0 + $0x28] sm:$0xff]  ;;  %v149_v3 = vld [vmem:[%s5537_s0 + $0x30] sm:$0xff]  ;;  %v4308_v16 = vshrl.u32 %v156_v15, 7 }
  0x37   :  { %345 = vmatpush1.bf16.msra.mxu0 %v3531_v19  ;;  %418 = vmatpush1.bf16.msra.mxu1 %v3532_v20  ;;  %v4210_v58 = vld [vmem:[#allocation8 + $0x6c] ss:$16 sps:$4 sm:$0xff]   ;;  %v4214_v59 = vld [vmem:[#allocation8 + $0x60] ss:$16 sps:$4 sm:$0xff]   ;;  %v4216_v60 = vld [vmem:[#allocation8 + $0x68] ss:$16 sps:$4 sm:$0xff]   ;;  %v153_v61 = vpack.c.bf16 %v148_v56, %v147_v55 }
  0x38   :  { %346 = vmatprep.subr.bf16.mxu0 %v3533_v21  ;;  %419 = vmatprep.subr.bf16.mxu1 %v3535_v22  ;;  %v4218_v62 = vld [vmem:[#allocation8 + $0x44] ss:$16 sps:$4 sm:$0xff]   ;;  %v4220_v63 = vld [vmem:[#allocation8 + $0x4c] ss:$16 sps:$4 sm:$0xff]   ;;  %v4226_v1 = vld [vmem:[#allocation8 + $0x40] ss:$16 sps:$4 sm:$0xff]  }
  0x39   :  { %v4228_v2 = vld [vmem:[#allocation8 + $0x48] ss:$16 sps:$4 sm:$0xff]   ;;  %v4236_v5 = vld [vmem:[#allocation8 + $0x24] ss:$16 sps:$4 sm:$0xff]   ;;  %v4238_v6 = vld [vmem:[#allocation8 + $0x2c] ss:$16 sps:$4 sm:$0xff]  }
  0x3a   :  { %v150_v4 = vld [vmem:[%s5537_s0 + $0x38] sm:$0xff]  ;;  %v4246_v7 = vld [vmem:[#allocation8 + $0x20] ss:$16 sps:$4 sm:$0xff]   ;;  %v4250_v10 = vld [vmem:[#allocation8 + $0x4] ss:$16 sps:$4 sm:$0xff]   ;;  %5556 = vst [vmem:[#allocation13_spill] sm:$0xff] %v4308_v16 }
  0x3b   :  { %347 = vmatpush1.bf16.msra.mxu0 %v3537_v23  ;;  %420 = vmatpush1.bf16.msra.mxu1 %v3538_v24  ;;  %v4248_v8 = vld [vmem:[#allocation8 + $0x28] ss:$16 sps:$4 sm:$0xff]   ;;  %v154_v9 = vpack.c.bf16 %v150_v4, %v149_v3  ;;  %v4252_v11 = vld [vmem:[#allocation8 + $0xc] ss:$16 sps:$4 sm:$0xff]   ;;  %v4258_v12 = vld [vmem:[#allocation8] ss:$16 sps:$4 sm:$0xff]  }
  0x3c   :  { %348 = vmatprep.subr.bf16.mxu0 %v3539_v25  ;;  %421 = vmatprep.subr.bf16.mxu1 %v3541_v26  ;;  %v4260_v13 = vld [vmem:[#allocation8 + $0x8] ss:$16 sps:$4 sm:$0xff]   ;;  %v5546_v17 = vsub.s32 2, %v4308_v16  ;;  %v5549_v18 = vsub.s32 0, %v4308_v16  ;;  %v5547_v19 = vsub.s32 3, %v4308_v16  ;;  %v5548_v24 = vsub.s32 1, %v4308_v16 }
  0x3d   :  { %v142_v20 = vld [vmem:[%s5540_s3] sm:$0xf] }
  0x3e   :  { %v4322_v23 = vrot.slane %v142_v20, %v5546_v17 }
  0x3f   :  { %349 = vmatpush1.bf16.msra.mxu0 %v3543_v27  ;;  %422 = vmatpush1.bf16.msra.mxu1 %v3544_v28  ;;  %v159_v27 = vrot.slane %v142_v20, %v5549_v18  ;;  %v4333_v28 = vrot.slane %v142_v20, %v5547_v19 }
  0x40   :  { %350 = vmatprep.subr.bf16.mxu0 %v3545_v29  ;;  %423 = vmatprep.subr.bf16.mxu1 %v3547_v30 }
  0x43   :  { %351 = vmatpush1.bf16.msra.mxu0 %v3549_v31  ;;  %424 = vmatpush1.bf16.msra.mxu1 %v3550_v32  ;;  %v163_v31 = vrot.slane %v142_v20, %v5548_v24 }
  0x44   :  { %684 = vmatprep.subr.bf16.mxu0 %v4148_v35  ;;  %725 = vmatprep.subr.bf16.mxu1 %v4150_v36 }
  0x46   :  { %369 = vmatmul.mubr.bf16.vlgmr.msra.gmra.mxu0 %v151_v37  ;;  %442 = vmatmul.mubr.bf16.vlgmr.msra.gmra.mxu1 %v151_v37 }
  0x47   :  { %685 = vmatpush1.bf16.msra.mxu0 %v4152_v38  ;;  %726 = vmatpush1.bf16.msra.mxu1 %v4154_v39 }
  0x48   :  { %686 = vmatprep.subr.bf16.mxu0 %v4158_v40  ;;  %727 = vmatprep.subr.bf16.mxu1 %v4160_v41 }
  0x49   :  { %378 = vmatprep.mubr.bf16.mxu0 %v5552_v0  ;;  %451 = vmatprep.mubr.bf16.mxu1 %v5552_v0 }
  0x4b   :  { %687 = vmatpush1.bf16.msra.mxu0 %v4162_v42  ;;  %728 = vmatpush1.bf16.msra.mxu1 %v4164_v43 }
  0x4c   :  { %688 = vmatprep.subr.bf16.mxu0 %v4174_v46  ;;  %729 = vmatprep.subr.bf16.mxu1 %v4178_v47 }
  0x4e   :  { %379 = vmatmul.mubr.bf16.gmra.mxu0 %v152_v48  ;;  %452 = vmatmul.mubr.bf16.gmra.mxu1 %v152_v48 }
  0x4f   :  { %689 = vmatpush1.bf16.msra.mxu0 %v4182_v49  ;;  %730 = vmatpush1.bf16.msra.mxu1 %v4184_v50 }
  0x50   :  { %690 = vmatprep.subr.bf16.mxu0 %v4188_v51  ;;  %731 = vmatprep.subr.bf16.mxu1 %v4192_v52 }
  0x51   :  { %388 = vmatprep.mubr.bf16.mxu0 %v5552_v0  ;;  %461 = vmatprep.mubr.bf16.mxu1 %v5552_v0 }
  0x53   :  { %691 = vmatpush1.bf16.msra.mxu0 %v4194_v53  ;;  %732 = vmatpush1.bf16.msra.mxu1 %v4196_v54 }
  0x54   :  { %692 = vmatprep.subr.bf16.mxu0 %v4208_v57  ;;  %733 = vmatprep.subr.bf16.mxu1 %v4210_v58 }
  0x56   :  { %389 = vmatmul.mubr.bf16.gmra.mxu0 %v153_v61  ;;  %462 = vmatmul.mubr.bf16.gmra.mxu1 %v153_v61 }
  0x57   :  { %693 = vmatpush1.bf16.msra.mxu0 %v4214_v59  ;;  %734 = vmatpush1.bf16.msra.mxu1 %v4216_v60 }
  0x58   :  { %694 = vmatprep.subr.bf16.mxu0 %v4218_v62  ;;  %735 = vmatprep.subr.bf16.mxu1 %v4220_v63 }
  0x59   :  { %398 = vmatprep.mubr.bf16.mxu0 %v5552_v0  ;;  %471 = vmatprep.mubr.bf16.mxu1 %v5552_v0 }
  0x5b   :  { %695 = vmatpush1.bf16.msra.mxu0 %v4226_v1  ;;  %736 = vmatpush1.bf16.msra.mxu1 %v4228_v2 }
  0x5c   :  { %696 = vmatprep.subr.bf16.mxu0 %v4236_v5  ;;  %737 = vmatprep.subr.bf16.mxu1 %v4238_v6 }
  0x5e   :  { %399 = vmatmul.mubr.bf16.gmra.mxu0 %v154_v9  ;;  %472 = vmatmul.mubr.bf16.gmra.mxu1 %v154_v9 }
  0x5f   :  { %697 = vmatpush1.bf16.msra.mxu0 %v4246_v7  ;;  %738 = vmatpush1.bf16.msra.mxu1 %v4248_v8 }
  0x60   :  { %698 = vmatprep.subr.bf16.mxu0 %v4250_v10  ;;  %739 = vmatprep.subr.bf16.mxu1 %v4252_v11 }
  0x61   :  { %716 = vmatprep.mubr.bf16.mxu0 %v5552_v0  ;;  %757 = vmatprep.mubr.bf16.mxu1 %v5552_v0 }
  0x63   :  { %699 = vmatpush1.bf16.msra.mxu0 %v4258_v12  ;;  %740 = vmatpush1.bf16.msra.mxu1 %v4260_v13 }
  0x64   :  { %814 = vmatprep.subr.bf16.mxu0 %v4148_v35  ;;  %855 = vmatprep.subr.bf16.mxu1 %v4150_v36 }
  0x66   :  { %717 = vmatmul.mubr.bf16.vlgmr.msra.gmra.mxu0 %v5550_v14  ;;  %758 = vmatmul.mubr.bf16.vlgmr.msra.gmra.mxu1 %v5550_v14 }
  0x67   :  { %815 = vmatpush1.bf16.msra.mxu0 %v4152_v38  ;;  %856 = vmatpush1.bf16.msra.mxu1 %v4154_v39 }
  0x68   :  { %816 = vmatprep.subr.bf16.mxu0 %v4158_v40  ;;  %857 = vmatprep.subr.bf16.mxu1 %v4160_v41 }
  0x69   :  { %846 = vmatprep.mubr.bf16.mxu0 %v5552_v0  ;;  %887 = vmatprep.mubr.bf16.mxu1 %v5552_v0 }
  0x6b   :  { %817 = vmatpush1.bf16.msra.mxu0 %v4162_v42  ;;  %858 = vmatpush1.bf16.msra.mxu1 %v4164_v43 }
  0x6c   :  { %818 = vmatprep.subr.bf16.mxu0 %v4174_v46  ;;  %859 = vmatprep.subr.bf16.mxu1 %v4178_v47 }
  0x6f   :  { %819 = vmatpush1.bf16.msra.mxu0 %v4182_v49  ;;  %860 = vmatpush1.bf16.msra.mxu1 %v4184_v50 }
  0x70   :  { %820 = vmatprep.subr.bf16.mxu0 %v4188_v51  ;;  %861 = vmatprep.subr.bf16.mxu1 %v4192_v52 }
  0x73   :  { %821 = vmatpush1.bf16.msra.mxu0 %v4194_v53  ;;  %862 = vmatpush1.bf16.msra.mxu1 %v4196_v54 }
  0x74   :  { %822 = vmatprep.subr.bf16.mxu0 %v4208_v57  ;;  %863 = vmatprep.subr.bf16.mxu1 %v4210_v58 }
  0x77   :  { %823 = vmatpush1.bf16.msra.mxu0 %v4214_v59  ;;  %864 = vmatpush1.bf16.msra.mxu1 %v4216_v60 }
  0x78   :  { %824 = vmatprep.subr.bf16.mxu0 %v4218_v62  ;;  %865 = vmatprep.subr.bf16.mxu1 %v4220_v63 }
  0x7b   :  { %825 = vmatpush1.bf16.msra.mxu0 %v4226_v1  ;;  %866 = vmatpush1.bf16.msra.mxu1 %v4228_v2 }
  0x7c   :  { %826 = vmatprep.subr.bf16.mxu0 %v4236_v5  ;;  %867 = vmatprep.subr.bf16.mxu1 %v4238_v6 }
  0x7f   :  { %827 = vmatpush1.bf16.msra.mxu0 %v4246_v7  ;;  %868 = vmatpush1.bf16.msra.mxu1 %v4248_v8 }
  0x80   :  { %828 = vmatprep.subr.bf16.mxu0 %v4250_v10  ;;  %869 = vmatprep.subr.bf16.mxu1 %v4252_v11 }
  0x83   :  { %829 = vmatpush1.bf16.msra.mxu0 %v4258_v12  ;;  %870 = vmatpush1.bf16.msra.mxu1 %v4260_v13 }
  0x84   :  { %945 = vmatprep.subr.bf16.mxu0 %v4148_v35  ;;  %986 = vmatprep.subr.bf16.mxu1 %v4150_v36 }
 0x106   :  { %v4316_v21 = vpop.f32.mrf.mxu0  ;;  %v4318_v22 = vpop.f32.mrf.mxu1 }
 0x108   :  { %v4325_v25 = vpop.f32.mrf.mxu0  ;;  %v4327_v26 = vpop.f32.mrf.mxu1 }
 0x10a   :  { %v374_v29 = vpop.f32.mrf.mxu0  ;;  %v447_v30 = vpop.f32.mrf.mxu1 }
 0x10b   :  { %v4337_v32 = vadd.f32 %v374_v29, %v159_v27  ;;  %v4340_v33 = vadd.f32 %v447_v30, %v4322_v23 }
 0x10c   :  { %v376_v34 = vpop.f32.mrf.mxu0  ;;  %v449_v37 = vpop.f32.mrf.mxu1 }
 0x10d   :  { %v4342_v44 = vadd.f32 %v376_v34, %v163_v31  ;;  %v4345_v45 = vadd.f32 %v449_v37, %v4333_v28 }
 0x10e   :  { %v380_v48 = vpop.f32.mrf.mxu0  ;;  %v453_v55 = vpop.f32.mrf.mxu1 }
 0x10f   :  { %v4347_v56 = vadd.f32 %v380_v48, %v159_v27  ;;  %v4350_v61 = vadd.f32 %v453_v55, %v4322_v23 }
 0x110   :  { %v382_v3 = vpop.f32.mrf.mxu0  ;;  %v455_v4 = vpop.f32.mrf.mxu1 }
 0x111   :  { %5557 = vst [vmem:[#allocation14_spill] sm:$0xff] %v4350_v61  ;;  %v4352_v9 = vadd.f32 %v382_v3, %v163_v31  ;;  %v4355_v15 = vadd.f32 %v455_v4, %v4333_v28 }
 0x112   :  { %v384_v20 = vpop.f32.mrf.mxu0  ;;  %v457_v29 = vpop.f32.mrf.mxu1 }
 0x113   :  { %v4357_v30 = vadd.f32 %v384_v20, %v159_v27  ;;  %v4360_v34 = vadd.f32 %v457_v29, %v4322_v23 }
 0x114   :  { %v386_v37 = vpop.f32.mrf.mxu0  ;;  %v459_v48 = vpop.f32.mrf.mxu1 }
 0x115   :  { %5558 = vst [vmem:[#allocation15_spill] sm:$0xff] %v4357_v30  ;;  %5559 = vst [vmem:[#allocation16_spill] sm:$0xff] %v4360_v34  ;;  %v4362_v17 = vadd.f32 %v386_v37, %v163_v31  ;;  %v4365_v55 = vadd.f32 %v459_v48, %v4333_v28 }
 0x116   :  { %v390_v19 = vpop.f32.mrf.mxu0  ;;  %v463_v3 = vpop.f32.mrf.mxu1 }
 0x117   :  { %5560 = vst [vmem:[#allocation17_spill] sm:$0xff] %v4362_v17  ;;  %5561 = vst [vmem:[#allocation18_spill] sm:$0xff] %v4365_v55  ;;  %v4367_v24 = vadd.f32 %v390_v19, %v159_v27  ;;  %v4370_v4 = vadd.f32 %v463_v3, %v4322_v23 }
 0x118   :  { %v392_v18 = vpop.f32.mrf.mxu0  ;;  %v465_v20 = vpop.f32.mrf.mxu1 }
 0x119   :  { %5562 = vst [vmem:[#allocation19_spill] sm:$0xff] %v4367_v24  ;;  %5563 = vst [vmem:[#allocation20_spill] sm:$0xff] %v4370_v4  ;;  %v4372_v14 = vadd.f32 %v392_v18, %v163_v31  ;;  %v4375_v29 = vadd.f32 %v465_v20, %v4333_v28 }
 0x11a   :  { %v394_v0 = vpop.f32.mrf.mxu0  ;;  %v467_v37 = vpop.f32.mrf.mxu1 }
 0x11b   :  { %5564 = vst [vmem:[#allocation21_spill] sm:$0xff] %v4372_v14  ;;  %5565 = vst [vmem:[#allocation22_spill] sm:$0xff] %v4375_v29  ;;  %v4377_v16 = vadd.f32 %v394_v0, %v159_v27  ;;  %v4380_v48 = vadd.f32 %v467_v37, %v4322_v23 }
 0x11c   :  { %v396_v34 = vpop.f32.mrf.mxu0  ;;  %v469_v19 = vpop.f32.mrf.mxu1 }
 0x11d   :  { %5566 = vst [vmem:[#allocation23_spill] sm:$0xff] %v4377_v16  ;;  %5567 = vst [vmem:[#allocation24_spill] sm:$0xff] %v4380_v48  ;;  %v4382_v24 = vadd.f32 %v396_v34, %v163_v31  ;;  %v4385_v3 = vadd.f32 %v469_v19, %v4333_v28 }
 0x11e   :  { %v400_v4 = vpop.f32.mrf.mxu0  ;;  %v473_v18 = vpop.f32.mrf.mxu1 }
 0x11f   :  { %5568 = vst [vmem:[#allocation25_spill] sm:$0xff] %v4382_v24  ;;  %5569 = vst [vmem:[#allocation26_spill] sm:$0xff] %v4385_v3  ;;  %v4387_v14 = vadd.f32 %v400_v4, %v159_v27  ;;  %v4390_v20 = vadd.f32 %v473_v18, %v4322_v23 }
 0x120   :  { %v402_v29 = vpop.f32.mrf.mxu0  ;;  %v475_v0 = vpop.f32.mrf.mxu1 }
 0x121   :  { %5570 = vst [vmem:[#allocation27_spill] sm:$0xff] %v4387_v14  ;;  %5571 = vst [vmem:[#allocation28_spill] sm:$0xff] %v4390_v20  ;;  %v4392_v16 = vadd.f32 %v402_v29, %v163_v31  ;;  %v4395_v37 = vadd.f32 %v475_v0, %v4333_v28  ;;  %v371_v14 = vadd.f32 %v4316_v21, %v159_v27 }
 0x122   :  { %v404_v48 = vpop.f32.mrf.mxu0  ;;  %v477_v34 = vpop.f32.mrf.mxu1  ;;  %v373_v0 = vadd.f32 %v4325_v25, %v163_v31 }
 0x123   :  { %5572 = vst [vmem:[#allocation29_spill] sm:$0xff] %v4392_v16  ;;  %5573 = vst [vmem:[#allocation30_spill] sm:$0xff] %v4395_v37  ;;  %v4397_v24 = vadd.f32 %v404_v48, %v159_v27  ;;  %v4400_v19 = vadd.f32 %v477_v34, %v4322_v23  ;;  %v446_v27 = vadd.f32 %v4327_v26, %v4333_v28 }
 0x124   :  { %v406_v3 = vpop.f32.mrf.mxu0  ;;  %v479_v4 = vpop.f32.mrf.mxu1 }
 0x125   :  { %5574 = vst [vmem:[#allocation31_spill] sm:$0xff] %v4397_v24  ;;  %5575 = vst [vmem:[#allocation32_spill] sm:$0xff] %v4400_v19  ;;  %v4403_v18 = vadd.f32 %v406_v3, %v163_v31  ;;  %v4406_v20 = vadd.f32 %v479_v4, %v4333_v28  ;;  %v444_v4 = vadd.f32 %v4318_v22, %v4322_v23 }
 0x126   :  { %v718_v29 = vpop.f32.mrf.mxu0  ;;  %v759_v16 = vpop.f32.mrf.mxu1 }
 0x127   :  { %v766_v37 = vadd.f32 %v718_v29, %v371_v14  ;;  %v768_v31 = vadd.f32 %v759_v16, %v444_v4 }
 0x128   :  { %v720_v55 = vpop.f32.mrf.mxu0  ;;  %v761_v48 = vpop.f32.mrf.mxu1 }
 0x129   :  { %v3384_v24 = vmul.f32 -1.442695, %v766_v37  ;;  %v767_v17 = vadd.f32 %v720_v55, %v373_v0  ;;  %v769_v3 = vadd.f32 %v761_v48, %v446_v27 }
 0x12a   :  { %v722_v34 = vpop.f32.mrf.mxu0  ;;  %v763_v19 = vpop.f32.mrf.mxu1 }
 0x12b   :  { %3695 = vpow2.f32 %v3384_v24  ;;  %v3385_v30 = vmul.f32 -1.442695, %v767_v17  ;;  %v3386_v25 = vmul.f32 -1.442695, %v769_v3  ;;  %v5576_v34 = vmov 0  }
 0x12c   :  { %v723_v61 = vpop.f32.mrf.mxu0  ;;  %v764_v21 = vpop.f32.mrf.mxu1 }
 0x12d   :  { %3697 = vpow2.f32 %v3385_v30 }
 0x12e   :  { %3699 = vpow2.f32 %v3386_v25 }
 0x138   :  { %v3696_v14 = vpop.eup %3695 }
 0x139   :  { %v773_v29 = vadd.f32 1.0, %v3696_v14 }
 0x13a   :  { %v3698_v37 = vpop.eup %3697 }
 0x13b   :  { %3701 = vrcp.f32 %v773_v29  ;;  %v779_v55 = vadd.f32 1.0, %v3698_v37  ;;  %v3700_v17 = vpop.eup %3699 }
 0x13c   :  { %3703 = vtanh.f32 %v768_v31  ;;  %v786_v19 = vadd.f32 1.0, %v3700_v17 }
 0x13d   :  { %3705 = vrcp.f32 %v779_v55 }
 0x13e   :  { %3707 = vrcp.f32 %v786_v19 }
 0x148   :  { %v3702_v24 = vpop.eup %3701 }
 0x149   :  { %v3704_v61 = vpop.eup %3703 }
 0x14a   :  { %v3706_v30 = vpop.eup %3705  ;;  %v790_v28 = vmul.f32 %v3704_v61, %v3702_v24 }
 0x14b   :  { %v789_v26 = vmul.f32 0.0, %v3706_v30  ;;  %v3708_v16 = vpop.eup %3707 }
 0x14d   :  { %v4413_v0 = vadd.f32 %v790_v28, %v789_v26 }
 0x14f   :  { %3709 = vtanh.f32 %v4413_v0 }
 0x15c   :  { %v3710_v22 = vpop.eup %3709 }
 0x15d   :  { %v4416_v23 = vmul.f32 %v3710_v22, %v3708_v16 }
 0x15f   :  { %v813_v48 = vpack.c.bf16 %v4416_v23, %v4416_v23 }
 0x161   :  { %847 = vmatmul.mubr.bf16.vlgmr.msra.gmra.mxu0 %v813_v48  ;;  %888 = vmatmul.mubr.bf16.vlgmr.msra.gmra.mxu1 %v813_v48 }
 0x162   :  { %946 = vmatpush1.bf16.msra.mxu0 %v4152_v38  ;;  %987 = vmatpush1.bf16.msra.mxu1 %v4154_v39 }
 0x163   :  { %947 = vmatprep.subr.bf16.mxu0 %v4158_v40  ;;  %988 = vmatprep.subr.bf16.mxu1 %v4160_v41 }
 0x164   :  { %977 = vmatprep.mubr.bf16.mxu0 %v5576_v34  ;;  %1018 = vmatprep.mubr.bf16.mxu1 %v5576_v34 }
 0x166   :  { %948 = vmatpush1.bf16.msra.mxu0 %v4162_v42  ;;  %989 = vmatpush1.bf16.msra.mxu1 %v4164_v43 }
 0x167   :  { %949 = vmatprep.subr.bf16.mxu0 %v4174_v46  ;;  %990 = vmatprep.subr.bf16.mxu1 %v4178_v47 }
 0x16a   :  { %950 = vmatpush1.bf16.msra.mxu0 %v4182_v49  ;;  %991 = vmatpush1.bf16.msra.mxu1 %v4184_v50 }
 0x16b   :  { %951 = vmatprep.subr.bf16.mxu0 %v4188_v51  ;;  %992 = vmatprep.subr.bf16.mxu1 %v4192_v52 }
 0x16e   :  { %952 = vmatpush1.bf16.msra.mxu0 %v4194_v53  ;;  %993 = vmatpush1.bf16.msra.mxu1 %v4196_v54 }
 0x16f   :  { %953 = vmatprep.subr.bf16.mxu0 %v4208_v57  ;;  %994 = vmatprep.subr.bf16.mxu1 %v4210_v58 }
 0x172   :  { %954 = vmatpush1.bf16.msra.mxu0 %v4214_v59  ;;  %995 = vmatpush1.bf16.msra.mxu1 %v4216_v60 }
 0x173   :  { %955 = vmatprep.subr.bf16.mxu0 %v4218_v62  ;;  %996 = vmatprep.subr.bf16.mxu1 %v4220_v63 }
 0x176   :  { %956 = vmatpush1.bf16.msra.mxu0 %v4226_v1  ;;  %997 = vmatpush1.bf16.msra.mxu1 %v4228_v2 }
 0x177   :  { %957 = vmatprep.subr.bf16.mxu0 %v4236_v5  ;;  %998 = vmatprep.subr.bf16.mxu1 %v4238_v6 }
 0x17a   :  { %958 = vmatpush1.bf16.msra.mxu0 %v4246_v7  ;;  %999 = vmatpush1.bf16.msra.mxu1 %v4248_v8 }
 0x17b   :  { %959 = vmatprep.subr.bf16.mxu0 %v4250_v10  ;;  %1000 = vmatprep.subr.bf16.mxu1 %v4252_v11 }
 0x17e   :  { %960 = vmatpush1.bf16.msra.mxu0 %v4258_v12  ;;  %1001 = vmatpush1.bf16.msra.mxu1 %v4260_v13 }
 0x17f   :  { %1076 = vmatprep.subr.bf16.mxu0 %v4148_v35  ;;  %1117 = vmatprep.subr.bf16.mxu1 %v4150_v36 }
 0x221   :  { %v848_v21 = vpop.f32.mrf.mxu0  ;;  %v889_v27 = vpop.f32.mrf.mxu1 }
 0x222   :  { %v896_v3 = vadd.f32 %v848_v21, %v4337_v32  ;;  %v898_v30 = vadd.f32 %v889_v27, %v4340_v33 }
 0x223   :  { %v850_v4 = vpop.f32.mrf.mxu0  ;;  %v891_v25 = vpop.f32.mrf.mxu1 }
 0x224   :  { %v3387_v14 = vmul.f32 -1.442695, %v896_v3  ;;  %v897_v31 = vadd.f32 %v850_v4, %v4342_v44  ;;  %v899_v61 = vadd.f32 %v891_v25, %v4345_v45 }
 0x225   :  { %v852_v29 = vpop.f32.mrf.mxu0  ;;  %v893_v37 = vpop.f32.mrf.mxu1 }
 0x226   :  { %3711 = vpow2.f32 %v3387_v14  ;;  %v3388_v55 = vmul.f32 -1.442695, %v897_v31  ;;  %v3389_v19 = vmul.f32 -1.442695, %v899_v61 }
 0x227   :  { %v853_v17 = vpop.f32.mrf.mxu0  ;;  %v894_v24 = vpop.f32.mrf.mxu1 }
 0x228   :  { %3713 = vpow2.f32 %v3388_v55 }
 0x229   :  { %3715 = vtanh.f32 %v898_v30 }
 0x22a   :  { %3717 = vpow2.f32 %v3389_v19 }
 0x233   :  { %v3712_v26 = vpop.eup %3711 }
 0x234   :  { %v903_v28 = vadd.f32 1.0, %v3712_v26 }
 0x235   :  { %v3714_v32 = vpop.eup %3713 }
 0x236   :  { %3719 = vrcp.f32 %v903_v28  ;;  %v909_v16 = vadd.f32 1.0, %v3714_v32  ;;  %v3716_v44 = vpop.eup %3715 }
 0x237   :  { %v3718_v22 = vpop.eup %3717 }
 0x238   :  { %3721 = vrcp.f32 %v909_v16  ;;  %v916_v4 = vadd.f32 1.0, %v3718_v22  ;;  %v5577_v16 = vld [vmem:[#allocation14_spill] sm:$0xff] }
 0x23a   :  { %3723 = vrcp.f32 %v916_v4 }
 0x243   :  { %v3720_v48 = vpop.eup %3719 }
 0x244   :  { %v920_v21 = vmul.f32 %v3720_v48, %v3716_v44 }
 0x245   :  { %v3722_v3 = vpop.eup %3721 }
 0x246   :  { %v919_v14 = vmul.f32 %v3722_v3, %v4413_v0 }
 0x247   :  { %v3724_v33 = vpop.eup %3723 }
 0x248   :  { %v4459_v45 = vadd.f32 %v920_v21, %v919_v14 }
 0x24a   :  { %3725 = vtanh.f32 %v4459_v45 }
 0x257   :  { %v3726_v27 = vpop.eup %3725 }
 0x258   :  { %v4462_v25 = vmul.f32 %v3726_v27, %v3724_v33 }
 0x25a   :  { %v944_v31 = vpack.c.bf16 %v4462_v25, %v4462_v25 }
 0x25c   :  { %978 = vmatmul.mubr.bf16.vlgmr.msra.gmra.mxu0 %v944_v31  ;;  %1019 = vmatmul.mubr.bf16.vlgmr.msra.gmra.mxu1 %v944_v31 }
 0x25d   :  { %1077 = vmatpush1.bf16.msra.mxu0 %v4152_v38  ;;  %1118 = vmatpush1.bf16.msra.mxu1 %v4154_v39 }
 0x25e   :  { %1078 = vmatprep.subr.bf16.mxu0 %v4158_v40  ;;  %1119 = vmatprep.subr.bf16.mxu1 %v4160_v41 }
 0x25f   :  { %1108 = vmatprep.mubr.bf16.mxu0 %v5576_v34  ;;  %1149 = vmatprep.mubr.bf16.mxu1 %v5576_v34 }
 0x261   :  { %1079 = vmatpush1.bf16.msra.mxu0 %v4162_v42  ;;  %1120 = vmatpush1.bf16.msra.mxu1 %v4164_v43 }
 0x262   :  { %1080 = vmatprep.subr.bf16.mxu0 %v4174_v46  ;;  %1121 = vmatprep.subr.bf16.mxu1 %v4178_v47 }
 0x265   :  { %1081 = vmatpush1.bf16.msra.mxu0 %v4182_v49  ;;  %1122 = vmatpush1.bf16.msra.mxu1 %v4184_v50 }
 0x266   :  { %1082 = vmatprep.subr.bf16.mxu0 %v4188_v51  ;;  %1123 = vmatprep.subr.bf16.mxu1 %v4192_v52 }
 0x269   :  { %1083 = vmatpush1.bf16.msra.mxu0 %v4194_v53  ;;  %1124 = vmatpush1.bf16.msra.mxu1 %v4196_v54 }
 0x26a   :  { %1084 = vmatprep.subr.bf16.mxu0 %v4208_v57  ;;  %1125 = vmatprep.subr.bf16.mxu1 %v4210_v58 }
 0x26d   :  { %1085 = vmatpush1.bf16.msra.mxu0 %v4214_v59  ;;  %1126 = vmatpush1.bf16.msra.mxu1 %v4216_v60 }
 0x26e   :  { %1086 = vmatprep.subr.bf16.mxu0 %v4218_v62  ;;  %1127 = vmatprep.subr.bf16.mxu1 %v4220_v63 }
 0x271   :  { %1087 = vmatpush1.bf16.msra.mxu0 %v4226_v1  ;;  %1128 = vmatpush1.bf16.msra.mxu1 %v4228_v2 }
 0x272   :  { %1088 = vmatprep.subr.bf16.mxu0 %v4236_v5  ;;  %1129 = vmatprep.subr.bf16.mxu1 %v4238_v6 }
 0x275   :  { %1089 = vmatpush1.bf16.msra.mxu0 %v4246_v7  ;;  %1130 = vmatpush1.bf16.msra.mxu1 %v4248_v8 }
 0x276   :  { %1090 = vmatprep.subr.bf16.mxu0 %v4250_v10  ;;  %1131 = vmatprep.subr.bf16.mxu1 %v4252_v11 }
 0x279   :  { %1091 = vmatpush1.bf16.msra.mxu0 %v4258_v12  ;;  %1132 = vmatpush1.bf16.msra.mxu1 %v4260_v13 }
 0x27a   :  { %1207 = vmatprep.subr.bf16.mxu0 %v4148_v35  ;;  %1248 = vmatprep.subr.bf16.mxu1 %v4150_v36 }
 0x31c   :  { %v979_v0 = vpop.f32.mrf.mxu0  ;;  %v1020_v29 = vpop.f32.mrf.mxu1 }
 0x31d   :  { %v1027_v37 = vadd.f32 %v979_v0, %v4347_v56  ;;  %v1029_v36 = vadd.f32 %v1020_v29, %v5577_v16 }
 0x31e   :  { %v981_v55 = vpop.f32.mrf.mxu0  ;;  %v1022_v17 = vpop.f32.mrf.mxu1 }
 0x31f   :  { %v3390_v24 = vmul.f32 -1.442695, %v1027_v37  ;;  %v1028_v61 = vadd.f32 %v981_v55, %v4352_v9  ;;  %v1030_v35 = vadd.f32 %v1022_v17, %v4355_v15 }
 0x320   :  { %v983_v30 = vpop.f32.mrf.mxu0  ;;  %v1024_v19 = vpop.f32.mrf.mxu1 }
 0x321   :  { %3727 = vpow2.f32 %v3390_v24  ;;  %v3391_v26 = vmul.f32 -1.442695, %v1028_v61  ;;  %v3392_v44 = vmul.f32 -1.442695, %v1030_v35  ;;  %v5580_v24 = vld [vmem:[#allocation18_spill] sm:$0xff]  ;;  %v5581_v30 = vld [vmem:[#allocation16_spill] sm:$0xff] }
 0x322   :  { %v984_v28 = vpop.f32.mrf.mxu0  ;;  %v1025_v32 = vpop.f32.mrf.mxu1 }
 0x323   :  { %3729 = vpow2.f32 %v3391_v26 }
 0x324   :  { %3731 = vtanh.f32 %v1029_v36 }
 0x325   :  { %3733 = vpow2.f32 %v3392_v44 }
 0x32e   :  { %v3728_v22 = vpop.eup %3727 }
 0x32f   :  { %v1034_v48 = vadd.f32 1.0, %v3728_v22 }
 0x330   :  { %v3730_v56 = vpop.eup %3729 }
 0x331   :  { %3735 = vrcp.f32 %v1034_v48  ;;  %v1040_v21 = vadd.f32 1.0, %v3730_v56  ;;  %v3732_v9 = vpop.eup %3731 }
 0x332   :  { %v3734_v3 = vpop.eup %3733 }
 0x333   :  { %3737 = vrcp.f32 %v1040_v21  ;;  %v1047_v27 = vadd.f32 1.0, %v3734_v3 }
 0x335   :  { %3739 = vrcp.f32 %v1047_v27 }
 0x33e   :  { %v3736_v4 = vpop.eup %3735 }
 0x33f   :  { %v1051_v14 = vmul.f32 %v3736_v4, %v3732_v9 }
 0x340   :  { %v3738_v33 = vpop.eup %3737 }
 0x341   :  { %v1050_v31 = vmul.f32 %v3738_v33, %v4459_v45 }
 0x342   :  { %v3740_v0 = vpop.eup %3739 }
 0x343   :  { %v4505_v15 = vadd.f32 %v1051_v14, %v1050_v31  ;;  %v4562_v31 = vld [vmem:[#allocation8 + $0xe0] ss:$16 sps:$4 sm:$0xff]  }
 0x345   :  { %3741 = vtanh.f32 %v4505_v15 }
 0x352   :  { %v3742_v29 = vpop.eup %3741 }
 0x353   :  { %v4508_v37 = vmul.f32 %v3742_v29, %v3740_v0  ;;  %v4565_v0 = vld [vmem:[#allocation8 + $0xe8] ss:$16 sps:$4 sm:$0xff]   ;;  %v4571_v29 = vld [vmem:[#allocation8 + $0xcc] ss:$16 sps:$4 sm:$0xff]  }
 0x355   :  { %v1075_v55 = vpack.c.bf16 %v4508_v37, %v4508_v37 }
 0x357   :  { %1109 = vmatmul.mubr.bf16.vlgmr.msra.gmra.mxu0 %v1075_v55  ;;  %1150 = vmatmul.mubr.bf16.vlgmr.msra.gmra.mxu1 %v1075_v55  ;;  %v4576_v55 = vld [vmem:[#allocation8 + $0xc0] ss:$16 sps:$4 sm:$0xff]  }
 0x358   :  { %1208 = vmatpush1.bf16.msra.mxu0 %v4152_v38  ;;  %1249 = vmatpush1.bf16.msra.mxu1 %v4154_v39  ;;  %v4544_v38 = vld [vmem:[#allocation8 + $0xe4] ss:$16 sps:$4 sm:$0xff]   ;;  %v4547_v39 = vld [vmem:[#allocation8 + $0xec] ss:$16 sps:$4 sm:$0xff]  }
 0x359   :  { %1209 = vmatprep.subr.bf16.mxu0 %v4158_v40  ;;  %1250 = vmatprep.subr.bf16.mxu1 %v4160_v41 }
 0x35a   :  { %1239 = vmatprep.mubr.bf16.mxu0 %v5576_v34  ;;  %1280 = vmatprep.mubr.bf16.mxu1 %v5576_v34 }
 0x35c   :  { %1210 = vmatpush1.bf16.msra.mxu0 %v4162_v42  ;;  %1251 = vmatpush1.bf16.msra.mxu1 %v4164_v43  ;;  %v5578_v42 = vld [vmem:[#allocation15_spill] sm:$0xff] }
 0x35d   :  { %1211 = vmatprep.subr.bf16.mxu0 %v4174_v46  ;;  %1252 = vmatprep.subr.bf16.mxu1 %v4178_v47 }
 0x360   :  { %1212 = vmatpush1.bf16.msra.mxu0 %v4182_v49  ;;  %1253 = vmatpush1.bf16.msra.mxu1 %v4184_v50  ;;  %v5579_v50 = vld [vmem:[#allocation17_spill] sm:$0xff] }
 0x361   :  { %1213 = vmatprep.subr.bf16.mxu0 %v4188_v51  ;;  %1254 = vmatprep.subr.bf16.mxu1 %v4192_v52 }
 0x364   :  { %1214 = vmatpush1.bf16.msra.mxu0 %v4194_v53  ;;  %1255 = vmatpush1.bf16.msra.mxu1 %v4196_v54 }
 0x365   :  { %1215 = vmatprep.subr.bf16.mxu0 %v4208_v57  ;;  %1256 = vmatprep.subr.bf16.mxu1 %v4210_v58 }
 0x368   :  { %1216 = vmatpush1.bf16.msra.mxu0 %v4214_v59  ;;  %1257 = vmatpush1.bf16.msra.mxu1 %v4216_v60 }
 0x369   :  { %1217 = vmatprep.subr.bf16.mxu0 %v4218_v62  ;;  %1258 = vmatprep.subr.bf16.mxu1 %v4220_v63 }
 0x36c   :  { %1218 = vmatpush1.bf16.msra.mxu0 %v4226_v1  ;;  %1259 = vmatpush1.bf16.msra.mxu1 %v4228_v2 }
 0x36d   :  { %1219 = vmatprep.subr.bf16.mxu0 %v4236_v5  ;;  %1260 = vmatprep.subr.bf16.mxu1 %v4238_v6 }
 0x370   :  { %1220 = vmatpush1.bf16.msra.mxu0 %v4246_v7  ;;  %1261 = vmatpush1.bf16.msra.mxu1 %v4248_v8 }
 0x371   :  { %1221 = vmatprep.subr.bf16.mxu0 %v4250_v10  ;;  %1262 = vmatprep.subr.bf16.mxu1 %v4252_v11 }
 0x374   :  { %1222 = vmatpush1.bf16.msra.mxu0 %v4258_v12  ;;  %1263 = vmatpush1.bf16.msra.mxu1 %v4260_v13 }
 0x375   :  { %1338 = vmatprep.subr.bf16.mxu0 %v4544_v38  ;;  %1379 = vmatprep.subr.bf16.mxu1 %v4547_v39 }
 0x417   :  { %v1110_v40 = vpop.f32.mrf.mxu0  ;;  %v1151_v41 = vpop.f32.mrf.mxu1 }
 0x418   :  { %v1158_v43 = vadd.f32 %v1110_v40, %v5578_v42  ;;  %v1160_v19 = vadd.f32 %v1151_v41, %v5581_v30  ;;  %v4579_v40 = vld [vmem:[#allocation8 + $0xc8] ss:$16 sps:$4 sm:$0xff]   ;;  %v4582_v41 = vld [vmem:[#allocation8 + $0xa4] ss:$16 sps:$4 sm:$0xff]   ;;  %v4585_v42 = vld [vmem:[#allocation8 + $0xac] ss:$16 sps:$4 sm:$0xff]  }
 0x419   :  { %v1112_v46 = vpop.f32.mrf.mxu0  ;;  %v1153_v47 = vpop.f32.mrf.mxu1 }
 0x41a   :  { %v3393_v49 = vmul.f32 -1.442695, %v1158_v43  ;;  %v1159_v51 = vadd.f32 %v1112_v46, %v5579_v50  ;;  %v1161_v61 = vadd.f32 %v1153_v47, %v5580_v24  ;;  %v4588_v43 = vld [vmem:[#allocation8 + $0xa0] ss:$16 sps:$4 sm:$0xff]   ;;  %v4591_v46 = vld [vmem:[#allocation8 + $0xa8] ss:$16 sps:$4 sm:$0xff]  }
 0x41b   :  { %v1114_v52 = vpop.f32.mrf.mxu0  ;;  %v1155_v53 = vpop.f32.mrf.mxu1  ;;  %v4594_v47 = vld [vmem:[#allocation8 + $0x84] ss:$16 sps:$4 sm:$0xff]   ;;  %v4600_v50 = vld [vmem:[#allocation8 + $0x80] ss:$16 sps:$4 sm:$0xff]  }
 0x41c   :  { %3743 = vpow2.f32 %v3393_v49  ;;  %v3394_v54 = vmul.f32 -1.442695, %v1159_v51  ;;  %v3395_v26 = vmul.f32 -1.442695, %v1161_v61  ;;  %v4597_v49 = vld [vmem:[#allocation8 + $0x8c] ss:$16 sps:$4 sm:$0xff]  }
 0x41d   :  { %v1115_v45 = vpop.f32.mrf.mxu0  ;;  %v1156_v17 = vpop.f32.mrf.mxu1  ;;  %v4603_v51 = vld [vmem:[#allocation8 + $0x88] ss:$16 sps:$4 sm:$0xff]  }
 0x41e   :  { %3745 = vpow2.f32 %v3394_v54  ;;  %v5585_v52 = vld [vmem:[#allocation20_spill] sm:$0xff] }
 0x41f   :  { %3747 = vtanh.f32 %v1160_v19 }
 0x420   :  { %3749 = vpow2.f32 %v3395_v26 }
 0x429   :  { %v3744_v28 = vpop.eup %3743 }
 0x42a   :  { %v1165_v32 = vadd.f32 1.0, %v3744_v28 }
 0x42b   :  { %v3746_v35 = vpop.eup %3745 }
 0x42c   :  { %3751 = vrcp.f32 %v1165_v32  ;;  %v1171_v16 = vadd.f32 1.0, %v3746_v35  ;;  %v3748_v36 = vpop.eup %3747 }
 0x42d   :  { %v3750_v44 = vpop.eup %3749 }
 0x42e   :  { %3753 = vrcp.f32 %v1171_v16  ;;  %v1178_v21 = vadd.f32 1.0, %v3750_v44 }
 0x430   :  { %3755 = vrcp.f32 %v1178_v21  ;;  %v4652_v21 = vld [vmem:[#allocation8 + $0x64] ss:$16 sps:$4 sm:$0xff]  }
 0x439   :  { %v3752_v22 = vpop.eup %3751 }
 0x43a   :  { %v1182_v48 = vmul.f32 %v3752_v22, %v3748_v36 }
 0x43b   :  { %v3754_v56 = vpop.eup %3753 }
 0x43c   :  { %v1181_v9 = vmul.f32 %v3754_v56, %v4505_v15  ;;  %v4568_v15 = vld [vmem:[#allocation8 + $0xc4] ss:$16 sps:$4 sm:$0xff]  }
 0x43d   :  { %v3756_v4 = vpop.eup %3755 }
 0x43e   :  { %v4555_v3 = vadd.f32 %v1182_v48, %v1181_v9  ;;  %v4655_v9 = vld [vmem:[#allocation8 + $0x6c] ss:$16 sps:$4 sm:$0xff]  }
 0x440   :  { %3757 = vtanh.f32 %v4555_v3 }
 0x44d   :  { %v3758_v14 = vpop.eup %3757 }
 0x44e   :  { %v4558_v33 = vmul.f32 %v3758_v14, %v3756_v4  ;;  %v4661_v4 = vld [vmem:[#allocation8 + $0x68] ss:$16 sps:$4 sm:$0xff]   ;;  %v4664_v14 = vld [vmem:[#allocation8 + $0x44] ss:$16 sps:$4 sm:$0xff]  }
 0x450   :  { %v1206_v27 = vpack.c.bf16 %v4558_v33, %v4558_v33 }
 0x452   :  { %1240 = vmatmul.mubr.bf16.vlgmr.msra.gmra.mxu0 %v1206_v27  ;;  %1281 = vmatmul.mubr.bf16.vlgmr.msra.gmra.mxu1 %v1206_v27  ;;  %v4667_v27 = vld [vmem:[#allocation8 + $0x4c] ss:$16 sps:$4 sm:$0xff]  }
 0x453   :  { %1339 = vmatpush1.bf16.msra.mxu0 %v4562_v31  ;;  %1380 = vmatpush1.bf16.msra.mxu1 %v4565_v0 }
 0x454   :  { %1340 = vmatprep.subr.bf16.mxu0 %v4568_v15  ;;  %1381 = vmatprep.subr.bf16.mxu1 %v4571_v29 }
 0x455   :  { %1370 = vmatprep.mubr.bf16.mxu0 %v5576_v34  ;;  %1411 = vmatprep.mubr.bf16.mxu1 %v5576_v34 }
 0x457   :  { %1341 = vmatpush1.bf16.msra.mxu0 %v4576_v55  ;;  %1382 = vmatpush1.bf16.msra.mxu1 %v4579_v40 }
 0x458   :  { %1342 = vmatprep.subr.bf16.mxu0 %v4582_v41  ;;  %1383 = vmatprep.subr.bf16.mxu1 %v4585_v42 }
 0x45b   :  { %1343 = vmatpush1.bf16.msra.mxu0 %v4588_v43  ;;  %1384 = vmatpush1.bf16.msra.mxu1 %v4591_v46 }
 0x45c   :  { %1344 = vmatprep.subr.bf16.mxu0 %v4594_v47  ;;  %1385 = vmatprep.subr.bf16.mxu1 %v4597_v49 }
 0x45f   :  { %1345 = vmatpush1.bf16.msra.mxu0 %v4600_v50  ;;  %1386 = vmatpush1.bf16.msra.mxu1 %v4603_v51 }
 0x460   :  { %1346 = vmatprep.subr.bf16.mxu0 %v4208_v57  ;;  %1387 = vmatprep.subr.bf16.mxu1 %v4210_v58 }
 0x463   :  { %1347 = vmatpush1.bf16.msra.mxu0 %v4214_v59  ;;  %1388 = vmatpush1.bf16.msra.mxu1 %v4216_v60  ;;  %v5582_v59 = vld [vmem:[#allocation19_spill] sm:$0xff] }
 0x464   :  { %1348 = vmatprep.subr.bf16.mxu0 %v4218_v62  ;;  %1389 = vmatprep.subr.bf16.mxu1 %v4220_v63 }
 0x467   :  { %1349 = vmatpush1.bf16.msra.mxu0 %v4226_v1  ;;  %1390 = vmatpush1.bf16.msra.mxu1 %v4228_v2  ;;  %v5583_v2 = vld [vmem:[#allocation21_spill] sm:$0xff] }
 0x468   :  { %1350 = vmatprep.subr.bf16.mxu0 %v4236_v5  ;;  %1391 = vmatprep.subr.bf16.mxu1 %v4238_v6 }
 0x46b   :  { %1351 = vmatpush1.bf16.msra.mxu0 %v4246_v7  ;;  %1392 = vmatpush1.bf16.msra.mxu1 %v4248_v8 }
 0x46c   :  { %1352 = vmatprep.subr.bf16.mxu0 %v4250_v10  ;;  %1393 = vmatprep.subr.bf16.mxu1 %v4252_v11 }
 0x46f   :  { %1353 = vmatpush1.bf16.msra.mxu0 %v4258_v12  ;;  %1394 = vmatpush1.bf16.msra.mxu1 %v4260_v13  ;;  %v5584_v12 = vld [vmem:[#allocation22_spill] sm:$0xff] }
 0x470   :  { %1469 = vmatprep.subr.bf16.mxu0 %v4544_v38  ;;  %1510 = vmatprep.subr.bf16.mxu1 %v4547_v39 }
 0x512   :  { %v1241_v57 = vpop.f32.mrf.mxu0  ;;  %v1282_v58 = vpop.f32.mrf.mxu1 }
 0x513   :  { %v1289_v60 = vadd.f32 %v1241_v57, %v5582_v59  ;;  %v1291_v53 = vadd.f32 %v1282_v58, %v5585_v52  ;;  %v4670_v57 = vld [vmem:[#allocation8 + $0x40] ss:$16 sps:$4 sm:$0xff]   ;;  %v4673_v58 = vld [vmem:[#allocation8 + $0x48] ss:$16 sps:$4 sm:$0xff]   ;;  %v4676_v59 = vld [vmem:[#allocation8 + $0x24] ss:$16 sps:$4 sm:$0xff]  }
 0x514   :  { %v1243_v62 = vpop.f32.mrf.mxu0  ;;  %v1284_v63 = vpop.f32.mrf.mxu1 }
 0x515   :  { %v3396_v1 = vmul.f32 -1.442695, %v1289_v60  ;;  %v1290_v5 = vadd.f32 %v1243_v62, %v5583_v2  ;;  %v1292_v13 = vadd.f32 %v1284_v63, %v5584_v12  ;;  %v4679_v60 = vld [vmem:[#allocation8 + $0x2c] ss:$16 sps:$4 sm:$0xff]   ;;  %v4682_v62 = vld [vmem:[#allocation8 + $0x20] ss:$16 sps:$4 sm:$0xff]  }
 0x516   :  { %v1245_v6 = vpop.f32.mrf.mxu0  ;;  %v1286_v7 = vpop.f32.mrf.mxu1  ;;  %v4685_v63 = vld [vmem:[#allocation8 + $0x28] ss:$16 sps:$4 sm:$0xff]   ;;  %v4691_v2 = vld [vmem:[#allocation8 + $0xc] ss:$16 sps:$4 sm:$0xff]  }
 0x517   :  { %3759 = vpow2.f32 %v3396_v1  ;;  %v3397_v8 = vmul.f32 -1.442695, %v1290_v5  ;;  %v3398_v54 = vmul.f32 -1.442695, %v1292_v13  ;;  %v4688_v1 = vld [vmem:[#allocation8 + $0x4] ss:$16 sps:$4 sm:$0xff]  }
 0x518   :  { %v1246_v10 = vpop.f32.mrf.mxu0  ;;  %v1287_v11 = vpop.f32.mrf.mxu1  ;;  %v4694_v5 = vld [vmem:[#allocation8] ss:$16 sps:$4 sm:$0xff]   ;;  %v4697_v6 = vld [vmem:[#allocation8 + $0x8] ss:$16 sps:$4 sm:$0xff]  }
 0x519   :  { %3761 = vpow2.f32 %v3397_v8  ;;  %v5586_v10 = vld [vmem:[#allocation23_spill] sm:$0xff] }
 0x51a   :  { %3763 = vtanh.f32 %v1291_v53  ;;  %v5587_v53 = vld [vmem:[#allocation25_spill] sm:$0xff] }
 0x51b   :  { %3765 = vpow2.f32 %v3398_v54 }
 0x524   :  { %v3760_v45 = vpop.eup %3759 }
 0x525   :  { %v1296_v17 = vadd.f32 1.0, %v3760_v45 }
 0x526   :  { %v3762_v24 = vpop.eup %3761 }
 0x527   :  { %3767 = vrcp.f32 %v1296_v17  ;;  %v1302_v61 = vadd.f32 1.0, %v3762_v24  ;;  %v3764_v30 = vpop.eup %3763 }
 0x528   :  { %v3766_v19 = vpop.eup %3765 }
 0x529   :  { %3769 = vrcp.f32 %v1302_v61  ;;  %v1309_v35 = vadd.f32 1.0, %v3766_v19  ;;  %v5588_v19 = vld [vmem:[#allocation26_spill] sm:$0xff] }
 0x52b   :  { %3771 = vrcp.f32 %v1309_v35 }
 0x534   :  { %v3768_v26 = vpop.eup %3767 }
 0x535   :  { %v1313_v28 = vmul.f32 %v3768_v26, %v3764_v30  ;;  %v5589_v26 = vld [vmem:[#allocation24_spill] sm:$0xff] }
 0x536   :  { %v3770_v32 = vpop.eup %3769 }
 0x537   :  { %v1312_v16 = vmul.f32 %v3770_v32, %v4555_v3  ;;  %v4658_v3 = vld [vmem:[#allocation8 + $0x60] ss:$16 sps:$4 sm:$0xff]  }
 0x538   :  { %v3772_v44 = vpop.eup %3771 }
 0x539   :  { %v4629_v36 = vadd.f32 %v1313_v28, %v1312_v16 }
 0x53b   :  { %3773 = vtanh.f32 %v4629_v36 }
 0x548   :  { %v3774_v22 = vpop.eup %3773 }
 0x549   :  { %v4632_v48 = vmul.f32 %v3774_v22, %v3772_v44 }
 0x54b   :  { %v1337_v56 = vpack.c.bf16 %v4632_v48, %v4632_v48 }
 0x54d   :  { %1371 = vmatmul.mubr.bf16.vlgmr.msra.gmra.mxu0 %v1337_v56  ;;  %1412 = vmatmul.mubr.bf16.vlgmr.msra.gmra.mxu1 %v1337_v56 }
 0x54e   :  { %1470 = vmatpush1.bf16.msra.mxu0 %v4562_v31  ;;  %1511 = vmatpush1.bf16.msra.mxu1 %v4565_v0 }
 0x54f   :  { %1471 = vmatprep.subr.bf16.mxu0 %v4568_v15  ;;  %1512 = vmatprep.subr.bf16.mxu1 %v4571_v29 }
 0x550   :  { %1501 = vmatprep.mubr.bf16.mxu0 %v5576_v34  ;;  %1542 = vmatprep.mubr.bf16.mxu1 %v5576_v34 }
 0x552   :  { %1472 = vmatpush1.bf16.msra.mxu0 %v4576_v55  ;;  %1513 = vmatpush1.bf16.msra.mxu1 %v4579_v40 }
 0x553   :  { %1473 = vmatprep.subr.bf16.mxu0 %v4582_v41  ;;  %1514 = vmatprep.subr.bf16.mxu1 %v4585_v42 }
 0x556   :  { %1474 = vmatpush1.bf16.msra.mxu0 %v4588_v43  ;;  %1515 = vmatpush1.bf16.msra.mxu1 %v4591_v46 }
 0x557   :  { %1475 = vmatprep.subr.bf16.mxu0 %v4594_v47  ;;  %1516 = vmatprep.subr.bf16.mxu1 %v4597_v49 }
 0x55a   :  { %1476 = vmatpush1.bf16.msra.mxu0 %v4600_v50  ;;  %1517 = vmatpush1.bf16.msra.mxu1 %v4603_v51 }
 0x55b   :  { %1477 = vmatprep.subr.bf16.mxu0 %v4652_v21  ;;  %1518 = vmatprep.subr.bf16.mxu1 %v4655_v9 }
 0x55e   :  { %1478 = vmatpush1.bf16.msra.mxu0 %v4658_v3  ;;  %1519 = vmatpush1.bf16.msra.mxu1 %v4661_v4 }
 0x55f   :  { %1479 = vmatprep.subr.bf16.mxu0 %v4664_v14  ;;  %1520 = vmatprep.subr.bf16.mxu1 %v4667_v27 }
 0x562   :  { %1480 = vmatpush1.bf16.msra.mxu0 %v4670_v57  ;;  %1521 = vmatpush1.bf16.msra.mxu1 %v4673_v58 }
 0x563   :  { %1481 = vmatprep.subr.bf16.mxu0 %v4676_v59  ;;  %1522 = vmatprep.subr.bf16.mxu1 %v4679_v60 }
 0x566   :  { %1482 = vmatpush1.bf16.msra.mxu0 %v4682_v62  ;;  %1523 = vmatpush1.bf16.msra.mxu1 %v4685_v63 }
 0x567   :  { %1483 = vmatprep.subr.bf16.mxu0 %v4688_v1  ;;  %1524 = vmatprep.subr.bf16.mxu1 %v4691_v2 }
 0x56a   :  { %1484 = vmatpush1.bf16.msra.mxu0 %v4694_v5  ;;  %1525 = vmatpush1.bf16.msra.mxu1 %v4697_v6 }
 0x56b   :  { %1600 = vmatprep.subr.bf16.mxu0 %v4544_v38  ;;  %1641 = vmatprep.subr.bf16.mxu1 %v4547_v39 }
 0x60d   :  { %v1372_v7 = vpop.f32.mrf.mxu0  ;;  %v1413_v8 = vpop.f32.mrf.mxu1 }
 0x60e   :  { %v1420_v11 = vadd.f32 %v1372_v7, %v5586_v10  ;;  %v1422_v39 = vadd.f32 %v1413_v8, %v5589_v26  ;;  %v3602_v26 = vld [vmem:[#allocation10 + $0xe8] ss:$16 sps:$4 sm:$0xff]  }
 0x60f   :  { %v1374_v12 = vpop.f32.mrf.mxu0  ;;  %v1415_v13 = vpop.f32.mrf.mxu1 }
 0x610   :  { %v3399_v52 = vmul.f32 -1.442695, %v1420_v11  ;;  %v1421_v54 = vadd.f32 %v1374_v12, %v5587_v53  ;;  %v1423_v38 = vadd.f32 %v1415_v13, %v5588_v19 }
 0x611   :  { %v1376_v45 = vpop.f32.mrf.mxu0  ;;  %v1417_v17 = vpop.f32.mrf.mxu1 }
 0x612   :  { %3775 = vpow2.f32 %v3399_v52  ;;  %v3400_v24 = vmul.f32 -1.442695, %v1421_v54  ;;  %v3401_v28 = vmul.f32 -1.442695, %v1423_v38  ;;  %v3599_v38 = vld [vmem:[#allocation10 + $0xe0] ss:$16 sps:$4 sm:$0xff]  }
 0x613   :  { %v1377_v61 = vpop.f32.mrf.mxu0  ;;  %v1418_v30 = vpop.f32.mrf.mxu1 }
 0x614   :  { %3777 = vpow2.f32 %v3400_v24 }
 0x615   :  { %3779 = vtanh.f32 %v1422_v39 }
 0x616   :  { %3781 = vpow2.f32 %v3401_v28  ;;  %v3607_v28 = vld [vmem:[#allocation10 + $0xc4] ss:$16 sps:$4 sm:$0xff]  }
 0x61f   :  { %v3776_v32 = vpop.eup %3775 }
 0x620   :  { %v1427_v35 = vadd.f32 1.0, %v3776_v32  ;;  %v3610_v32 = vld [vmem:[#allocation10 + $0xcc] ss:$16 sps:$4 sm:$0xff]  }
 0x621   :  { %v3778_v16 = vpop.eup %3777 }
 0x622   :  { %3783 = vrcp.f32 %v1427_v35  ;;  %v1433_v44 = vadd.f32 1.0, %v3778_v16  ;;  %v3780_v22 = vpop.eup %3779  ;;  %v3605_v35 = vld [vmem:[#allocation10 + $0xc0] ss:$16 sps:$4 sm:$0xff]   ;;  %v3608_v16 = vld [vmem:[#allocation10 + $0xc8] ss:$16 sps:$4 sm:$0xff]  }
 0x623   :  { %v3782_v56 = vpop.eup %3781 }
 0x624   :  { %3785 = vrcp.f32 %v1433_v44  ;;  %v1440_v12 = vadd.f32 1.0, %v3782_v56  ;;  %v3613_v44 = vld [vmem:[#allocation10 + $0xa4] ss:$16 sps:$4 sm:$0xff]   ;;  %v3611_v56 = vld [vmem:[#allocation10 + $0xa0] ss:$16 sps:$4 sm:$0xff]  }
 0x626   :  { %3787 = vrcp.f32 %v1440_v12  ;;  %v3617_v12 = vld [vmem:[#allocation10 + $0x80] ss:$16 sps:$4 sm:$0xff]  }
 0x62f   :  { %v3784_v7 = vpop.eup %3783 }
 0x630   :  { %v1444_v10 = vmul.f32 %v3784_v7, %v3780_v22  ;;  %v3616_v22 = vld [vmem:[#allocation10 + $0xac] ss:$16 sps:$4 sm:$0xff]   ;;  %v3614_v7 = vld [vmem:[#allocation10 + $0xa8] ss:$16 sps:$4 sm:$0xff]  }
 0x631   :  { %v3786_v11 = vpop.eup %3785 }
 0x632   :  { %v1443_v52 = vmul.f32 %v3786_v11, %v4629_v36  ;;  %v3622_v11 = vld [vmem:[#allocation10 + $0x8c] ss:$16 sps:$4 sm:$0xff]  }
 0x633   :  { %v3788_v8 = vpop.eup %3787 }
 0x634   :  { %v4707_v13 = vadd.f32 %v1444_v10, %v1443_v52  ;;  %v3619_v10 = vld [vmem:[#allocation10 + $0x84] ss:$16 sps:$4 sm:$0xff]   ;;  %v3620_v52 = vld [vmem:[#allocation10 + $0x88] ss:$16 sps:$4 sm:$0xff]  }
 0x636   :  { %3789 = vtanh.f32 %v4707_v13 }
 0x643   :  { %v3790_v53 = vpop.eup %3789 }
 0x644   :  { %v4710_v54 = vmul.f32 %v3790_v53, %v3788_v8  ;;  %v3628_v8 = vld [vmem:[#allocation10 + $0x6c] ss:$16 sps:$4 sm:$0xff]   ;;  %v3623_v53 = vld [vmem:[#allocation10 + $0x60] ss:$16 sps:$4 sm:$0xff]  }
 0x646   :  { %v1468_v45 = vpack.c.bf16 %v4710_v54, %v4710_v54 }
 0x648   :  { %1502 = vmatmul.mubr.bf16.vlgmr.msra.gmra.mxu0 %v1468_v45  ;;  %1543 = vmatmul.mubr.bf16.vlgmr.msra.gmra.mxu1 %v1468_v45  ;;  %v3626_v45 = vld [vmem:[#allocation10 + $0x68] ss:$16 sps:$4 sm:$0xff]  }
 0x649   :  { %1601 = vmatpush1.bf16.msra.mxu0 %v4562_v31  ;;  %1642 = vmatpush1.bf16.msra.mxu1 %v4565_v0  ;;  %v3601_v31 = vld [vmem:[#allocation10 + $0xe4] ss:$16 sps:$4 sm:$0xff]   ;;  %v3604_v0 = vld [vmem:[#allocation10 + $0xec] ss:$16 sps:$4 sm:$0xff]  }
 0x64a   :  { %1602 = vmatprep.subr.bf16.mxu0 %v4568_v15  ;;  %1643 = vmatprep.subr.bf16.mxu1 %v4571_v29 }
 0x64b   :  { %1632 = vmatprep.mubr.bf16.mxu0 %v5576_v34  ;;  %1673 = vmatprep.mubr.bf16.mxu1 %v5576_v34 }
 0x64d   :  { %1603 = vmatpush1.bf16.msra.mxu0 %v4576_v55  ;;  %1644 = vmatpush1.bf16.msra.mxu1 %v4579_v40  ;;  %v5590_v55 = vld [vmem:[#allocation27_spill] sm:$0xff] }
 0x64e   :  { %1604 = vmatprep.subr.bf16.mxu0 %v4582_v41  ;;  %1645 = vmatprep.subr.bf16.mxu1 %v4585_v42 }
 0x651   :  { %1605 = vmatpush1.bf16.msra.mxu0 %v4588_v43  ;;  %1646 = vmatpush1.bf16.msra.mxu1 %v4591_v46  ;;  %v5591_v46 = vld [vmem:[#allocation29_spill] sm:$0xff] }
 0x652   :  { %1606 = vmatprep.subr.bf16.mxu0 %v4594_v47  ;;  %1647 = vmatprep.subr.bf16.mxu1 %v4597_v49 }
 0x655   :  { %1607 = vmatpush1.bf16.msra.mxu0 %v4600_v50  ;;  %1648 = vmatpush1.bf16.msra.mxu1 %v4603_v51 }
 0x656   :  { %1608 = vmatprep.subr.bf16.mxu0 %v4652_v21  ;;  %1649 = vmatprep.subr.bf16.mxu1 %v4655_v9  ;;  %v5592_v9 = vld [vmem:[#allocation30_spill] sm:$0xff] }
 0x659   :  { %1609 = vmatpush1.bf16.msra.mxu0 %v4658_v3  ;;  %1650 = vmatpush1.bf16.msra.mxu1 %v4661_v4  ;;  %v5593_v4 = vld [vmem:[#allocation28_spill] sm:$0xff] }
 0x65a   :  { %1610 = vmatprep.subr.bf16.mxu0 %v4664_v14  ;;  %1651 = vmatprep.subr.bf16.mxu1 %v4667_v27 }
 0x65d   :  { %1611 = vmatpush1.bf16.msra.mxu0 %v4670_v57  ;;  %1652 = vmatpush1.bf16.msra.mxu1 %v4673_v58 }
 0x65e   :  { %1612 = vmatprep.subr.bf16.mxu0 %v4676_v59  ;;  %1653 = vmatprep.subr.bf16.mxu1 %v4679_v60 }
 0x661   :  { %1613 = vmatpush1.bf16.msra.mxu0 %v4682_v62  ;;  %1654 = vmatpush1.bf16.msra.mxu1 %v4685_v63 }
 0x662   :  { %1614 = vmatprep.subr.bf16.mxu0 %v4688_v1  ;;  %1655 = vmatprep.subr.bf16.mxu1 %v4691_v2 }
 0x665   :  { %1615 = vmatpush1.bf16.msra.mxu0 %v4694_v5  ;;  %1656 = vmatpush1.bf16.msra.mxu1 %v4697_v6 }
 0x666   :  { %1979 = vmatprep.subr.bf16.mxu0 %v3601_v31  ;;  %2052 = vmatprep.subr.bf16.mxu1 %v3604_v0  ;;  %v3631_v31 = vld [vmem:[#allocation10 + $0x44] ss:$16 sps:$4 sm:$0xff]   ;;  %v3634_v0 = vld [vmem:[#allocation10 + $0x4c] ss:$16 sps:$4 sm:$0xff]  }
 0x708   :  { %v1503_v15 = vpop.f32.mrf.mxu0  ;;  %v1544_v29 = vpop.f32.mrf.mxu1 }
 0x709   :  { %v1551_v40 = vadd.f32 %v1503_v15, %v5590_v55  ;;  %v1553_v14 = vadd.f32 %v1544_v29, %v5593_v4  ;;  %v3629_v15 = vld [vmem:[#allocation10 + $0x40] ss:$16 sps:$4 sm:$0xff]   ;;  %v3632_v29 = vld [vmem:[#allocation10 + $0x48] ss:$16 sps:$4 sm:$0xff]   ;;  %v3637_v55 = vld [vmem:[#allocation10 + $0x24] ss:$16 sps:$4 sm:$0xff]  }
 0x70a   :  { %v1505_v41 = vpop.f32.mrf.mxu0  ;;  %v1546_v42 = vpop.f32.mrf.mxu1  ;;  %v4828_v4 = vld [vmem:[%s5542_s5 + $0xac] ss:$16 sps:$4 sm:$0xff]  }
 0x70b   :  { %v3402_v43 = vmul.f32 -1.442695, %v1551_v40  ;;  %v1552_v47 = vadd.f32 %v1505_v41, %v5591_v46  ;;  %v1554_v3 = vadd.f32 %v1546_v42, %v5592_v9  ;;  %v3640_v40 = vld [vmem:[#allocation10 + $0x2c] ss:$16 sps:$4 sm:$0xff]   ;;  %v3635_v41 = vld [vmem:[#allocation10 + $0x20] ss:$16 sps:$4 sm:$0xff]  }
 0x70c   :  { %v1507_v49 = vpop.f32.mrf.mxu0  ;;  %v1548_v50 = vpop.f32.mrf.mxu1  ;;  %v3638_v42 = vld [vmem:[#allocation10 + $0x28] ss:$16 sps:$4 sm:$0xff]   ;;  %v3646_v46 = vld [vmem:[#allocation10 + $0xc] ss:$16 sps:$4 sm:$0xff]  }
 0x70d   :  { %3791 = vpow2.f32 %v3402_v43  ;;  %v3403_v51 = vmul.f32 -1.442695, %v1552_v47  ;;  %v3404_v27 = vmul.f32 -1.442695, %v1554_v3  ;;  %v3643_v43 = vld [vmem:[#allocation10 + $0x4] ss:$16 sps:$4 sm:$0xff]   ;;  %v1794_v50 = vpack.c.bf16 %v4462_v25, %v4416_v23 }
 0x70e   :  { %v1508_v36 = vpop.f32.mrf.mxu0  ;;  %v1549_v21 = vpop.f32.mrf.mxu1  ;;  %v3641_v47 = vld [vmem:[#allocation10] ss:$16 sps:$4 sm:$0xff]   ;;  %v3644_v49 = vld [vmem:[#allocation10 + $0x8] ss:$16 sps:$4 sm:$0xff]   ;;  %v4775_v23 = vld [vmem:[%s5542_s5 + $0xe4] ss:$16 sps:$4 sm:$0xff]  }
 0x70f   :  { %3793 = vpow2.f32 %v3403_v51  ;;  %v1795_v51 = vpack.c.bf16 %v4558_v33, %v4508_v37  ;;  %v1796_v36 = vpack.c.bf16 %v4710_v54, %v4632_v48  ;;  %v4780_v25 = vld [vmem:[%s5542_s5 + $0xec] ss:$16 sps:$4 sm:$0xff]   ;;  %v4785_v37 = vld [vmem:[%s5542_s5 + $0xe0] ss:$16 sps:$4 sm:$0xff]   ;;  %v4790_v33 = vld [vmem:[%s5542_s5 + $0xe8] ss:$16 sps:$4 sm:$0xff]  }
 0x710   :  { %3795 = vtanh.f32 %v1553_v14  ;;  %v4799_v48 = vld [vmem:[%s5542_s5 + $0xc4] ss:$16 sps:$4 sm:$0xff]   ;;  %v4804_v54 = vld [vmem:[%s5542_s5 + $0xcc] ss:$16 sps:$4 sm:$0xff]   ;;  %v4809_v21 = vld [vmem:[%s5542_s5 + $0xc0] ss:$16 sps:$4 sm:$0xff]  }
 0x711   :  { %3797 = vpow2.f32 %v3404_v27  ;;  %v4814_v9 = vld [vmem:[%s5542_s5 + $0xc8] ss:$16 sps:$4 sm:$0xff]   ;;  %v4823_v3 = vld [vmem:[%s5542_s5 + $0xa4] ss:$16 sps:$4 sm:$0xff]   ;;  %v4833_v14 = vld [vmem:[%s5542_s5 + $0xa0] ss:$16 sps:$4 sm:$0xff]  }
 0x712   :  { %v4838_v27 = vld [vmem:[%s5542_s5 + $0xa8] ss:$16 sps:$4 sm:$0xff]  }
 0x71a   :  { %v3792_v57 = vpop.eup %3791 }
 0x71b   :  { %v1558_v58 = vadd.f32 1.0, %v3792_v57  ;;  %v4847_v57 = vld [vmem:[%s5542_s5 + $0x84] ss:$16 sps:$4 sm:$0xff]  }
 0x71c   :  { %v3794_v59 = vpop.eup %3793 }
 0x71d   :  { %3799 = vrcp.f32 %v1558_v58  ;;  %v1564_v60 = vadd.f32 1.0, %v3794_v59  ;;  %v3796_v62 = vpop.eup %3795  ;;  %v4852_v58 = vld [vmem:[%s5542_s5 + $0x8c] ss:$16 sps:$4 sm:$0xff]   ;;  %v4857_v59 = vld [vmem:[%s5542_s5 + $0x80] ss:$16 sps:$4 sm:$0xff]  }
 0x71e   :  { %v3798_v63 = vpop.eup %3797 }
 0x71f   :  { %3801 = vrcp.f32 %v1564_v60  ;;  %v1571_v6 = vadd.f32 1.0, %v3798_v63  ;;  %v4862_v60 = vld [vmem:[%s5542_s5 + $0x88] ss:$16 sps:$4 sm:$0xff]   ;;  %v4876_v63 = vld [vmem:[%s5542_s5 + $0x6c] ss:$16 sps:$4 sm:$0xff]  }
 0x721   :  { %3803 = vrcp.f32 %v1571_v6  ;;  %v4900_v6 = vld [vmem:[%s5542_s5 + $0x4c] ss:$16 sps:$4 sm:$0xff]  }
 0x72a   :  { %v3800_v1 = vpop.eup %3799 }
 0x72b   :  { %v1575_v2 = vmul.f32 %v3800_v1, %v3796_v62  ;;  %v4871_v62 = vld [vmem:[%s5542_s5 + $0x64] ss:$16 sps:$4 sm:$0xff]   ;;  %v4881_v1 = vld [vmem:[%s5542_s5 + $0x60] ss:$16 sps:$4 sm:$0xff]  }
 0x72c   :  { %v3802_v5 = vpop.eup %3801 }
 0x72d   :  { %v1574_v17 = vmul.f32 %v3802_v5, %v4707_v13  ;;  %v3625_v13 = vld [vmem:[#allocation10 + $0x64] ss:$16 sps:$4 sm:$0xff]  }
 0x72e   :  { %v3804_v61 = vpop.eup %3803  ;;  %v4895_v5 = vld [vmem:[%s5542_s5 + $0x44] ss:$16 sps:$4 sm:$0xff]  }
 0x72f   :  { %v4751_v24 = vadd.f32 %v1575_v2, %v1574_v17  ;;  %v4886_v2 = vld [vmem:[%s5542_s5 + $0x68] ss:$16 sps:$4 sm:$0xff]   ;;  %v4905_v17 = vld [vmem:[%s5542_s5 + $0x40] ss:$16 sps:$4 sm:$0xff]  }
 0x731   :  { %3805 = vtanh.f32 %v4751_v24 }
 0x73e   :  { %v3806_v30 = vpop.eup %3805 }
 0x73f   :  { %v4754_v19 = vmul.f32 %v3806_v30, %v3804_v61  ;;  %v4910_v61 = vld [vmem:[%s5542_s5 + $0x48] ss:$16 sps:$4 sm:$0xff]   ;;  %v4919_v30 = vld [vmem:[%s5542_s5 + $0x24] ss:$16 sps:$4 sm:$0xff]  }
 0x741   :  { %v1599_v39 = vpack.c.bf16 %v4754_v19, %v4754_v19 }
 0x743   :  { %1633 = vmatmul.mubr.bf16.vlgmr.msra.gmra.mxu0 %v1599_v39  ;;  %1674 = vmatmul.mubr.bf16.vlgmr.msra.gmra.mxu1 %v1599_v39  ;;  %v4934_v39 = vld [vmem:[%s5542_s5 + $0x28] ss:$16 sps:$4 sm:$0xff]  }
 0x744   :  { %1980 = vmatpush1.bf16.msra.mxu0 %v3599_v38  ;;  %2053 = vmatpush1.bf16.msra.mxu1 %v3602_v26  ;;  %v4924_v38 = vld [vmem:[%s5542_s5 + $0x2c] ss:$16 sps:$4 sm:$0xff]   ;;  %v4929_v26 = vld [vmem:[%s5542_s5 + $0x20] ss:$16 sps:$4 sm:$0xff]  }
 0x745   :  { %1981 = vmatprep.subr.bf16.mxu0 %v3607_v28  ;;  %2054 = vmatprep.subr.bf16.mxu1 %v3610_v32  ;;  %v4939_v28 = vld [vmem:[%s5542_s5 + $0x4] ss:$16 sps:$4 sm:$0xff]   ;;  %v4946_v32 = vld [vmem:[%s5542_s5 + $0xc] ss:$16 sps:$4 sm:$0xff]  }
 0x746   :  { %2011 = vmatprep.mubr.bf16.mxu0 %v5576_v34  ;;  %2084 = vmatprep.mubr.bf16.mxu1 %v5576_v34 }
 0x748   :  { %1982 = vmatpush1.bf16.msra.mxu0 %v3605_v35  ;;  %2055 = vmatpush1.bf16.msra.mxu1 %v3608_v16  ;;  %v4953_v35 = vld [vmem:[%s5542_s5] ss:$16 sps:$4 sm:$0xff]   ;;  %v4958_v16 = vld [vmem:[%s5542_s5 + $0x8] ss:$16 sps:$4 sm:$0xff]  }
 0x749   :  { %1983 = vmatprep.subr.bf16.mxu0 %v3613_v44  ;;  %2056 = vmatprep.subr.bf16.mxu1 %v3616_v22 }
 0x74c   :  { %1984 = vmatpush1.bf16.msra.mxu0 %v3611_v56  ;;  %2057 = vmatpush1.bf16.msra.mxu1 %v3614_v7  ;;  %v5594_v56 = vld [vmem:[#allocation31_spill] sm:$0xff] }
 0x74d   :  { %1985 = vmatprep.subr.bf16.mxu0 %v3619_v10  ;;  %2058 = vmatprep.subr.bf16.mxu1 %v3622_v11 }
 0x750   :  { %1986 = vmatpush1.bf16.msra.mxu0 %v3617_v12  ;;  %2059 = vmatpush1.bf16.msra.mxu1 %v3620_v52 }
 0x751   :  { %1987 = vmatprep.subr.bf16.mxu0 %v3625_v13  ;;  %2060 = vmatprep.subr.bf16.mxu1 %v3628_v8 }
 0x754   :  { %1988 = vmatpush1.bf16.msra.mxu0 %v3623_v53  ;;  %2061 = vmatpush1.bf16.msra.mxu1 %v3626_v45 }
 0x755   :  { %1989 = vmatprep.subr.bf16.mxu0 %v3631_v31  ;;  %2062 = vmatprep.subr.bf16.mxu1 %v3634_v0 }
 0x758   :  { %1990 = vmatpush1.bf16.msra.mxu0 %v3629_v15  ;;  %2063 = vmatpush1.bf16.msra.mxu1 %v3632_v29  ;;  %v5595_v15 = vld [vmem:[#allocation32_spill] sm:$0xff] }
 0x759   :  { %1991 = vmatprep.subr.bf16.mxu0 %v3637_v55  ;;  %2064 = vmatprep.subr.bf16.mxu1 %v3640_v40 }
 0x75c   :  { %1992 = vmatpush1.bf16.msra.mxu0 %v3635_v41  ;;  %2065 = vmatpush1.bf16.msra.mxu1 %v3638_v42 }
 0x75d   :  { %1993 = vmatprep.subr.bf16.mxu0 %v3643_v43  ;;  %2066 = vmatprep.subr.bf16.mxu1 %v3646_v46 }
 0x760   :  { %1994 = vmatpush1.bf16.msra.mxu0 %v3641_v47  ;;  %2067 = vmatpush1.bf16.msra.mxu1 %v3644_v49 }
 0x761   :  { %2326 = vmatprep.subr.bf16.mxu0 %v4775_v23  ;;  %2367 = vmatprep.subr.bf16.mxu1 %v4780_v25 }
 0x763   :  { %2012 = vmatmul.mubr.bf16.vlgmr.msra.gmra.mxu0 %v1794_v50  ;;  %2085 = vmatmul.mubr.bf16.vlgmr.msra.gmra.mxu1 %v1794_v50 }
 0x764   :  { %2021 = vmatprep.mubr.bf16.mxu0 %v5576_v34  ;;  %2094 = vmatprep.mubr.bf16.mxu1 %v5576_v34 }
 0x765   :  { %2327 = vmatpush1.bf16.msra.mxu0 %v4785_v37  ;;  %2368 = vmatpush1.bf16.msra.mxu1 %v4790_v33 }
 0x766   :  { %2328 = vmatprep.subr.bf16.mxu0 %v4799_v48  ;;  %2369 = vmatprep.subr.bf16.mxu1 %v4804_v54 }
 0x769   :  { %2329 = vmatpush1.bf16.msra.mxu0 %v4809_v21  ;;  %2370 = vmatpush1.bf16.msra.mxu1 %v4814_v9 }
 0x76a   :  { %2330 = vmatprep.subr.bf16.mxu0 %v4823_v3  ;;  %2371 = vmatprep.subr.bf16.mxu1 %v4828_v4 }
 0x76b   :  { %2022 = vmatmul.mubr.bf16.gmra.mxu0 %v1795_v51  ;;  %2095 = vmatmul.mubr.bf16.gmra.mxu1 %v1795_v51 }
 0x76c   :  { %2031 = vmatprep.mubr.bf16.mxu0 %v5576_v34  ;;  %2104 = vmatprep.mubr.bf16.mxu1 %v5576_v34 }
 0x76d   :  { %2331 = vmatpush1.bf16.msra.mxu0 %v4833_v14  ;;  %2372 = vmatpush1.bf16.msra.mxu1 %v4838_v27 }
 0x76e   :  { %2332 = vmatprep.subr.bf16.mxu0 %v4847_v57  ;;  %2373 = vmatprep.subr.bf16.mxu1 %v4852_v58 }
 0x771   :  { %2333 = vmatpush1.bf16.msra.mxu0 %v4857_v59  ;;  %2374 = vmatpush1.bf16.msra.mxu1 %v4862_v60 }
 0x772   :  { %2334 = vmatprep.subr.bf16.mxu0 %v4871_v62  ;;  %2375 = vmatprep.subr.bf16.mxu1 %v4876_v63 }
 0x773   :  { %2032 = vmatmul.mubr.bf16.gmra.mxu0 %v1796_v36  ;;  %2105 = vmatmul.mubr.bf16.gmra.mxu1 %v1796_v36 }
 0x774   :  { %2041 = vmatprep.mubr.bf16.mxu0 %v5576_v34  ;;  %2114 = vmatprep.mubr.bf16.mxu1 %v5576_v34 }
 0x775   :  { %2335 = vmatpush1.bf16.msra.mxu0 %v4881_v1  ;;  %2376 = vmatpush1.bf16.msra.mxu1 %v4886_v2 }
 0x776   :  { %2336 = vmatprep.subr.bf16.mxu0 %v4895_v5  ;;  %2377 = vmatprep.subr.bf16.mxu1 %v4900_v6 }
 0x779   :  { %2337 = vmatpush1.bf16.msra.mxu0 %v4905_v17  ;;  %2378 = vmatpush1.bf16.msra.mxu1 %v4910_v61 }
 0x77a   :  { %2338 = vmatprep.subr.bf16.mxu0 %v4919_v30  ;;  %2379 = vmatprep.subr.bf16.mxu1 %v4924_v38 }
 0x77d   :  { %2339 = vmatpush1.bf16.msra.mxu0 %v4929_v26  ;;  %2380 = vmatpush1.bf16.msra.mxu1 %v4934_v39 }
 0x77e   :  { %2340 = vmatprep.subr.bf16.mxu0 %v4939_v28  ;;  %2381 = vmatprep.subr.bf16.mxu1 %v4946_v32 }
 0x781   :  { %2341 = vmatpush1.bf16.msra.mxu0 %v4953_v35  ;;  %2382 = vmatpush1.bf16.msra.mxu1 %v4958_v16 }
 0x782   :  { %2448 = vmatprep.subr.bf16.mxu0 %v4775_v23  ;;  %2489 = vmatprep.subr.bf16.mxu1 %v4780_v25 }
 0x803   :  { %v1634_v44 = vpop.f32.mrf.mxu0  ;;  %v1675_v22 = vpop.f32.mrf.mxu1 }
 0x804   :  { %v1682_v7 = vadd.f32 %v1634_v44, %v5594_v56  ;;  %v1684_v29 = vadd.f32 %v1675_v22, %v5595_v15 }
 0x805   :  { %v1636_v10 = vpop.f32.mrf.mxu0  ;;  %v1677_v11 = vpop.f32.mrf.mxu1 }
 0x806   :  { %v3405_v12 = vmul.f32 -1.442695, %v1682_v7  ;;  %v1683_v52 = vadd.f32 %v1636_v10, %v4403_v18  ;;  %v1685_v0 = vadd.f32 %v1677_v11, %v4406_v20 }
 0x807   :  { %v1638_v13 = vpop.f32.mrf.mxu0  ;;  %v1679_v8 = vpop.f32.mrf.mxu1 }
 0x808   :  { %3807 = vpow2.f32 %v3405_v12  ;;  %v3406_v53 = vmul.f32 -1.442695, %v1683_v52  ;;  %v3407_v55 = vmul.f32 -1.442695, %v1685_v0 }
 0x809   :  { %v1639_v45 = vpop.f32.mrf.mxu0  ;;  %v1680_v31 = vpop.f32.mrf.mxu1 }
 0x80a   :  { %3809 = vpow2.f32 %v3406_v53 }
 0x80b   :  { %3811 = vtanh.f32 %v1684_v29 }
 0x80c   :  { %3813 = vpow2.f32 %v3407_v55 }
 0x815   :  { %v3808_v40 = vpop.eup %3807 }
 0x816   :  { %v1689_v41 = vadd.f32 1.0, %v3808_v40 }
 0x817   :  { %v3810_v42 = vpop.eup %3809 }
 0x818   :  { %3815 = vrcp.f32 %v1689_v41  ;;  %v1695_v43 = vadd.f32 1.0, %v3810_v42  ;;  %v3812_v18 = vpop.eup %3811 }
 0x819   :  { %v3814_v46 = vpop.eup %3813 }
 0x81a   :  { %3817 = vrcp.f32 %v1695_v43  ;;  %v1702_v51 = vadd.f32 1.0, %v3814_v46 }
 0x81c   :  { %3819 = vrcp.f32 %v1702_v51 }
 0x823   :  { %v2086_v10 = vpop.f32.mrf.mxu1 }
 0x825   :  { %v3816_v47 = vpop.eup %3815  ;;  %v2088_v12 = vpop.f32.mrf.mxu1 }
 0x826   :  { %v1706_v49 = vmul.f32 %v3816_v47, %v3812_v18 }
 0x827   :  { %v3818_v50 = vpop.eup %3817  ;;  %v5018_v13 = vpop.f32.mrf.mxu1 }
 0x828   :  { %v1705_v36 = vmul.f32 %v3818_v50, %v4751_v24  ;;  %v5596_v24 = vmov 0.0|0.0  }
 0x829   :  { %v3820_v44 = vpop.eup %3819  ;;  %v5022_v53 = vpop.f32.mrf.mxu1 }
 0x82a   :  { %v1707_v20 = vadd.f32 %v1706_v49, %v1705_v36  ;;  %v1785_v36 = vld [vmem:[%s5543_s6] sm:$0xf] }
 0x82b   :  { %v5026_v31 = vpop.f32.mrf.mxu1 }
 0x82c   :  { %3301 = vst [vmem:[%s5545_s8] sm:$0xff] %v1707_v20  ;;  %3821 = vtanh.f32 %v1707_v20  ;;  %5597 = vst [vmem:[#allocation14_spill] sm:$0xff] %v5026_v31 }
 0x82d   :  { %v5030_v15 = vpop.f32.mrf.mxu1 }
 0x82f   :  { %v5034_v55 = vpop.f32.mrf.mxu1 }
 0x830   :  { %5599 = vst [vmem:[#allocation17_spill] sm:$0xff] %v5034_v55 }
 0x831   :  { %v5038_v41 = vpop.f32.mrf.mxu1 }
 0x832   :  { %5601 = vst [vmem:[#allocation16_spill] sm:$0xff] %v5038_v41 }
 0x833   :  { %v5042_v43 = vpop.f32.mrf.mxu1 }
 0x834   :  { %5603 = vst [vmem:[#allocation21_spill] sm:$0xff] %v5042_v43 }
 0x835   :  { %v5046_v46 = vpop.f32.mrf.mxu1 }
 0x836   :  { %5605 = vst [vmem:[#allocation20_spill] sm:$0xff] %v5046_v46 }
 0x837   :  { %v5050_v49 = vpop.f32.mrf.mxu1 }
 0x838   :  { %5607 = vst [vmem:[#allocation25_spill] sm:$0xff] %v5050_v49 }
 0x839   :  { %v3822_v22 = vpop.eup %3821  ;;  %v5054_v51 = vpop.f32.mrf.mxu1 }
 0x83a   :  { %v1709_v56 = vmul.f32 %v3822_v22, %v3820_v44  ;;  %5609 = vst [vmem:[#allocation24_spill] sm:$0xff] %v5054_v51 }
 0x83c   :  { %v1797_v7 = vpack.c.bf16 %v1709_v56, %v4754_v19  ;;  %3297 = vst [vmem:[%s5544_s7] sm:$0xff] %v1709_v56  ;;  %v2013_v19 = vpop.f32.mrf.mxu0 }
 0x83e   :  { %2042 = vmatmul.mubr.bf16.gmra.mxu0 %v1797_v7  ;;  %2115 = vmatmul.mubr.bf16.gmra.mxu1 %v1797_v7  ;;  %v2015_v11 = vpop.f32.mrf.mxu0  ;;  %v5614_v7 = vld [vmem:[#allocation13_spill] sm:$0xff] }
 0x83f   :  { %2358 = vmatprep.mubr.bf16.mxu0 %v5576_v34  ;;  %2399 = vmatprep.mubr.bf16.mxu1 %v5576_v34  ;;  %v5618_v51 = vsub.s32 1, %v5614_v7 }
 0x840   :  { %v5016_v52 = vpop.f32.mrf.mxu0 }
 0x841   :  { %v5077_v43 = vrot.slane %v1785_v36, %v5618_v51 }
 0x842   :  { %v5020_v8 = vpop.f32.mrf.mxu0 }
 0x844   :  { %v5024_v45 = vpop.f32.mrf.mxu0 }
 0x846   :  { %2359 = vmatmul.mubr.bf16.vlgmr.msra.gmra.mxu0 %v5596_v24  ;;  %2400 = vmatmul.mubr.bf16.vlgmr.msra.gmra.mxu1 %v5596_v24  ;;  %v5028_v0 = vpop.f32.mrf.mxu0  ;;  %v5615_v24 = vsub.s32 0, %v5614_v7 }
 0x847   :  { %2449 = vmatpush1.bf16.msra.mxu0 %v4785_v37  ;;  %2490 = vmatpush1.bf16.msra.mxu1 %v4790_v33 }
 0x848   :  { %2450 = vmatprep.subr.bf16.mxu0 %v4799_v48  ;;  %2491 = vmatprep.subr.bf16.mxu1 %v4804_v54  ;;  %v5032_v29 = vpop.f32.mrf.mxu0 }
 0x849   :  { %2480 = vmatprep.mubr.bf16.mxu0 %v5576_v34  ;;  %2521 = vmatprep.mubr.bf16.mxu1 %v5576_v34  ;;  %5598 = vst [vmem:[#allocation15_spill] sm:$0xff] %v5032_v29  ;;  %v5621_v29 = vsub.s32 3, %v5614_v7 }
 0x84a   :  { %v5036_v40 = vpop.f32.mrf.mxu0 }
 0x84b   :  { %2451 = vmatpush1.bf16.msra.mxu0 %v4809_v21  ;;  %2492 = vmatpush1.bf16.msra.mxu1 %v4814_v9  ;;  %5600 = vst [vmem:[#allocation18_spill] sm:$0xff] %v5036_v40 }
 0x84c   :  { %2452 = vmatprep.subr.bf16.mxu0 %v4823_v3  ;;  %2493 = vmatprep.subr.bf16.mxu1 %v4828_v4  ;;  %v5040_v42 = vpop.f32.mrf.mxu0 }
 0x84d   :  { %5602 = vst [vmem:[#allocation19_spill] sm:$0xff] %v5040_v42 }
 0x84e   :  { %v5044_v18 = vpop.f32.mrf.mxu0 }
 0x84f   :  { %2453 = vmatpush1.bf16.msra.mxu0 %v4833_v14  ;;  %2494 = vmatpush1.bf16.msra.mxu1 %v4838_v27  ;;  %5604 = vst [vmem:[#allocation22_spill] sm:$0xff] %v5044_v18  ;;  %v2016_v18 = vadd.f32 %v2015_v11, %v5077_v43  ;;  %v5622_v11 = vsub.s32 2, %v5614_v7 }
 0x850   :  { %2454 = vmatprep.subr.bf16.mxu0 %v4847_v57  ;;  %2495 = vmatprep.subr.bf16.mxu1 %v4852_v58  ;;  %v5048_v47 = vpop.f32.mrf.mxu0 }
 0x851   :  { %5606 = vst [vmem:[#allocation23_spill] sm:$0xff] %v5048_v47  ;;  %v5069_v47 = vrot.slane %v1785_v36, %v5615_v24 }
 0x852   :  { %v5052_v50 = vpop.f32.mrf.mxu0 }
 0x853   :  { %2455 = vmatpush1.bf16.msra.mxu0 %v4857_v59  ;;  %2496 = vmatpush1.bf16.msra.mxu1 %v4862_v60  ;;  %5608 = vst [vmem:[#allocation26_spill] sm:$0xff] %v5052_v50 }
 0x854   :  { %2456 = vmatprep.subr.bf16.mxu0 %v4871_v62  ;;  %2497 = vmatprep.subr.bf16.mxu1 %v4876_v63 }
 0x857   :  { %2457 = vmatpush1.bf16.msra.mxu0 %v4881_v1  ;;  %2498 = vmatpush1.bf16.msra.mxu1 %v4886_v2 }
 0x858   :  { %2458 = vmatprep.subr.bf16.mxu0 %v4895_v5  ;;  %2499 = vmatprep.subr.bf16.mxu1 %v4900_v6 }
 0x85b   :  { %2459 = vmatpush1.bf16.msra.mxu0 %v4905_v17  ;;  %2500 = vmatpush1.bf16.msra.mxu1 %v4910_v61 }
 0x85c   :  { %2460 = vmatprep.subr.bf16.mxu0 %v4919_v30  ;;  %2501 = vmatprep.subr.bf16.mxu1 %v4924_v38 }
 0x85f   :  { %2461 = vmatpush1.bf16.msra.mxu0 %v4929_v26  ;;  %2502 = vmatpush1.bf16.msra.mxu1 %v4934_v39 }
 0x860   :  { %2462 = vmatprep.subr.bf16.mxu0 %v4939_v28  ;;  %2503 = vmatprep.subr.bf16.mxu1 %v4946_v32 }
 0x863   :  { %2463 = vmatpush1.bf16.msra.mxu0 %v4953_v35  ;;  %2504 = vmatpush1.bf16.msra.mxu1 %v4958_v16 }
 0x864   :  { %2570 = vmatprep.subr.bf16.mxu0 %v4775_v23  ;;  %2611 = vmatprep.subr.bf16.mxu1 %v4780_v25 }
 0x8fe   :  { %v5059_v20 = vpop.f32.mrf.mxu0  ;;  %v5061_v44 = vpop.f32.mrf.mxu1 }
 0x8ff   :  { %5610 = vst [vmem:[#allocation27_spill] sm:$0xff] %v5059_v20  ;;  %5611 = vst [vmem:[#allocation29_spill] sm:$0xff] %v5061_v44  ;;  %v2014_v44 = vadd.f32 %v2013_v19, %v5069_v47 }
 0x900   :  { %v5063_v22 = vpop.f32.mrf.mxu0  ;;  %v5065_v56 = vpop.f32.mrf.mxu1 }
 0x901   :  { %5612 = vst [vmem:[#allocation30_spill] sm:$0xff] %v5063_v22  ;;  %5613 = vst [vmem:[#allocation28_spill] sm:$0xff] %v5065_v56 }
 0x902   :  { %v5071_v49 = vpop.f32.mrf.mxu0  ;;  %v5073_v50 = vpop.f32.mrf.mxu1 }
 0x903   :  { %5616 = vst [vmem:[#allocation31_spill] sm:$0xff] %v5071_v49  ;;  %5617 = vst [vmem:[#allocation32_spill] sm:$0xff] %v5073_v50 }
 0x904   :  { %v5079_v46 = vpop.f32.mrf.mxu0  ;;  %v5081_v20 = vpop.f32.mrf.mxu1 }
 0x905   :  { %5619 = vst [vmem:[#allocation13_spill] sm:$0xff] %v5079_v46  ;;  %5620 = vst [vmem:[#allocation33_spill] sm:$0xff] %v5081_v20  ;;  %v5087_v46 = vrot.slane %v1785_v36, %v5621_v29 }
 0x906   :  { %v2360_v22 = vpop.f32.mrf.mxu0  ;;  %v2401_v56 = vpop.f32.mrf.mxu1 }
 0x907   :  { %v2408_v24 = vadd.f32 %v2360_v22, %v2014_v44  ;;  %v2089_v19 = vadd.f32 %v2088_v12, %v5087_v46  ;;  %v5092_v44 = vrot.slane %v1785_v36, %v5622_v11 }
 0x908   :  { %v2362_v42 = vpop.f32.mrf.mxu0  ;;  %v2403_v55 = vpop.f32.mrf.mxu1 }
 0x909   :  { %v3472_v49 = vmul.f32 -1.442695, %v2408_v24  ;;  %v2409_v41 = vadd.f32 %v2362_v42, %v2016_v18  ;;  %v2411_v22 = vadd.f32 %v2403_v55, %v2089_v19  ;;  %v2087_v42 = vadd.f32 %v2086_v10, %v5092_v44 }
 0x90a   :  { %v2364_v50 = vpop.f32.mrf.mxu0  ;;  %v2405_v40 = vpop.f32.mrf.mxu1 }
 0x90b   :  { %3823 = vpow2.f32 %v3472_v49  ;;  %v3473_v51 = vmul.f32 -1.442695, %v2409_v41  ;;  %v3474_v18 = vmul.f32 -1.442695, %v2411_v22  ;;  %v2410_v49 = vadd.f32 %v2401_v56, %v2087_v42 }
 0x90c   :  { %v2365_v20 = vpop.f32.mrf.mxu0  ;;  %v2406_v31 = vpop.f32.mrf.mxu1  ;;  %v2018_v22 = vadd.f32 %v5016_v52, %v5069_v47  ;;  %v2093_v52 = vadd.f32 %v5022_v53, %v5087_v46 }
 0x90d   :  { %3825 = vpow2.f32 %v3473_v51 }
 0x90e   :  { %3827 = vpow2.f32 %v3474_v18 }
 0x918   :  { %v3824_v40 = vpop.eup %3823 }
 0x919   :  { %v2415_v41 = vadd.f32 1.0, %v3824_v40  ;;  %v2020_v40 = vadd.f32 %v5020_v8, %v5077_v43 }
 0x91a   :  { %v3826_v50 = vpop.eup %3825 }
 0x91b   :  { %3829 = vrcp.f32 %v2415_v41  ;;  %v2421_v29 = vadd.f32 1.0, %v3826_v50  ;;  %v3828_v31 = vpop.eup %3827 }
 0x91c   :  { %3831 = vtanh.f32 %v2410_v49  ;;  %v2428_v7 = vadd.f32 1.0, %v3828_v31 }
 0x91d   :  { %3833 = vrcp.f32 %v2421_v29 }
 0x91e   :  { %3835 = vrcp.f32 %v2428_v7 }
 0x928   :  { %v3830_v20 = vpop.eup %3829 }
 0x929   :  { %v3832_v12 = vpop.eup %3831 }
 0x92a   :  { %v3834_v24 = vpop.eup %3833  ;;  %v2432_v51 = vmul.f32 %v3832_v12, %v3830_v20 }
 0x92b   :  { %v2431_v36 = vmul.f32 0.0, %v3834_v24  ;;  %v3836_v10 = vpop.eup %3835 }
 0x92d   :  { %v5095_v55 = vadd.f32 %v2432_v51, %v2431_v36 }
 0x92f   :  { %3837 = vtanh.f32 %v5095_v55 }
 0x93c   :  { %v3838_v56 = vpop.eup %3837 }
 0x93d   :  { %v2435_v19 = vmul.f32 %v3838_v56, %v3836_v10  ;;  %v2091_v10 = vadd.f32 %v5018_v13, %v5092_v44 }
 0x93f   :  { %v2447_v11 = vpack.c.bf16 %v2435_v19, %v2435_v19 }
 0x941   :  { %2481 = vmatmul.mubr.bf16.vlgmr.msra.gmra.mxu0 %v2447_v11  ;;  %2522 = vmatmul.mubr.bf16.vlgmr.msra.gmra.mxu1 %v2447_v11 }
 0x942   :  { %2571 = vmatpush1.bf16.msra.mxu0 %v4785_v37  ;;  %2612 = vmatpush1.bf16.msra.mxu1 %v4790_v33 }
 0x943   :  { %2572 = vmatprep.subr.bf16.mxu0 %v4799_v48  ;;  %2613 = vmatprep.subr.bf16.mxu1 %v4804_v54 }
 0x944   :  { %2602 = vmatprep.mubr.bf16.mxu0 %v5576_v34  ;;  %2643 = vmatprep.mubr.bf16.mxu1 %v5576_v34 }
 0x946   :  { %2573 = vmatpush1.bf16.msra.mxu0 %v4809_v21  ;;  %2614 = vmatpush1.bf16.msra.mxu1 %v4814_v9 }
 0x947   :  { %2574 = vmatprep.subr.bf16.mxu0 %v4823_v3  ;;  %2615 = vmatprep.subr.bf16.mxu1 %v4828_v4 }
 0x94a   :  { %2575 = vmatpush1.bf16.msra.mxu0 %v4833_v14  ;;  %2616 = vmatpush1.bf16.msra.mxu1 %v4838_v27 }
 0x94b   :  { %2576 = vmatprep.subr.bf16.mxu0 %v4847_v57  ;;  %2617 = vmatprep.subr.bf16.mxu1 %v4852_v58 }
 0x94e   :  { %2577 = vmatpush1.bf16.msra.mxu0 %v4857_v59  ;;  %2618 = vmatpush1.bf16.msra.mxu1 %v4862_v60 }
 0x94f   :  { %2578 = vmatprep.subr.bf16.mxu0 %v4871_v62  ;;  %2619 = vmatprep.subr.bf16.mxu1 %v4876_v63 }
 0x952   :  { %2579 = vmatpush1.bf16.msra.mxu0 %v4881_v1  ;;  %2620 = vmatpush1.bf16.msra.mxu1 %v4886_v2 }
 0x953   :  { %2580 = vmatprep.subr.bf16.mxu0 %v4895_v5  ;;  %2621 = vmatprep.subr.bf16.mxu1 %v4900_v6 }
 0x956   :  { %2581 = vmatpush1.bf16.msra.mxu0 %v4905_v17  ;;  %2622 = vmatpush1.bf16.msra.mxu1 %v4910_v61 }
 0x957   :  { %2582 = vmatprep.subr.bf16.mxu0 %v4919_v30  ;;  %2623 = vmatprep.subr.bf16.mxu1 %v4924_v38 }
 0x95a   :  { %2583 = vmatpush1.bf16.msra.mxu0 %v4929_v26  ;;  %2624 = vmatpush1.bf16.msra.mxu1 %v4934_v39 }
 0x95b   :  { %2584 = vmatprep.subr.bf16.mxu0 %v4939_v28  ;;  %2625 = vmatprep.subr.bf16.mxu1 %v4946_v32 }
 0x95e   :  { %2585 = vmatpush1.bf16.msra.mxu0 %v4953_v35  ;;  %2626 = vmatpush1.bf16.msra.mxu1 %v4958_v16 }
 0x95f   :  { %2692 = vmatprep.subr.bf16.mxu0 %v4775_v23  ;;  %2733 = vmatprep.subr.bf16.mxu1 %v4780_v25 }
 0xa01   :  { %v2482_v42 = vpop.f32.mrf.mxu0  ;;  %v2523_v18 = vpop.f32.mrf.mxu1 }
 0xa02   :  { %v2530_v49 = vadd.f32 %v2482_v42, %v2018_v22  ;;  %v2532_v8 = vadd.f32 %v2523_v18, %v2091_v10 }
 0xa03   :  { %v2484_v41 = vpop.f32.mrf.mxu0  ;;  %v2525_v50 = vpop.f32.mrf.mxu1 }
 0xa04   :  { %v3475_v29 = vmul.f32 -1.442695, %v2530_v49  ;;  %v2531_v31 = vadd.f32 %v2484_v41, %v2020_v40  ;;  %v2533_v51 = vadd.f32 %v2525_v50, %v2093_v52  ;;  %v2026_v52 = vadd.f32 %v5028_v0, %v5077_v43 }
 0xa05   :  { %v2486_v20 = vpop.f32.mrf.mxu0  ;;  %v2527_v12 = vpop.f32.mrf.mxu1 }
 0xa06   :  { %3839 = vpow2.f32 %v3475_v29  ;;  %v3476_v24 = vmul.f32 -1.442695, %v2531_v31  ;;  %v3477_v56 = vmul.f32 -1.442695, %v2533_v51 }
 0xa07   :  { %v2487_v7 = vpop.f32.mrf.mxu0  ;;  %v2528_v36 = vpop.f32.mrf.mxu1 }
 0xa08   :  { %3841 = vpow2.f32 %v3476_v24 }
 0xa09   :  { %3843 = vtanh.f32 %v2532_v8 }
 0xa0a   :  { %3845 = vpow2.f32 %v3477_v56 }
 0xa13   :  { %v3840_v19 = vpop.eup %3839 }
 0xa14   :  { %v2537_v11 = vadd.f32 1.0, %v3840_v19 }
 0xa15   :  { %v3842_v22 = vpop.eup %3841 }
 0xa16   :  { %3847 = vrcp.f32 %v2537_v11  ;;  %v2543_v42 = vadd.f32 1.0, %v3842_v22  ;;  %v3844_v40 = vpop.eup %3843 }
 0xa17   :  { %v3846_v49 = vpop.eup %3845 }
 0xa18   :  { %3849 = vrcp.f32 %v2543_v42  ;;  %v2550_v53 = vadd.f32 1.0, %v3846_v49 }
 0xa1a   :  { %3851 = vrcp.f32 %v2550_v53 }
 0xa23   :  { %v3848_v41 = vpop.eup %3847 }
 0xa24   :  { %v2554_v29 = vmul.f32 %v3848_v41, %v3844_v40 }
 0xa25   :  { %v3850_v31 = vpop.eup %3849 }
 0xa26   :  { %v2553_v50 = vmul.f32 %v3850_v31, %v5095_v55  ;;  %v2024_v55 = vadd.f32 %v5024_v45, %v5069_v47  ;;  %v2099_v45 = vadd.f32 %v5030_v15, %v5087_v46 }
 0xa27   :  { %v3852_v13 = vpop.eup %3851 }
 0xa28   :  { %v5141_v20 = vadd.f32 %v2554_v29, %v2553_v50  ;;  %v5623_v29 = vld [vmem:[#allocation14_spill] sm:$0xff] }
 0xa29   :  { %v2097_v31 = vadd.f32 %v5623_v29, %v5092_v44 }
 0xa2a   :  { %3853 = vtanh.f32 %v5141_v20 }
 0xa37   :  { %v3854_v18 = vpop.eup %3853 }
 0xa38   :  { %v2557_v12 = vmul.f32 %v3854_v18, %v3852_v13 }
 0xa3a   :  { %v2569_v24 = vpack.c.bf16 %v2557_v12, %v2557_v12 }
 0xa3c   :  { %2603 = vmatmul.mubr.bf16.vlgmr.msra.gmra.mxu0 %v2569_v24  ;;  %2644 = vmatmul.mubr.bf16.vlgmr.msra.gmra.mxu1 %v2569_v24 }
 0xa3d   :  { %2693 = vmatpush1.bf16.msra.mxu0 %v4785_v37  ;;  %2734 = vmatpush1.bf16.msra.mxu1 %v4790_v33 }
 0xa3e   :  { %2694 = vmatprep.subr.bf16.mxu0 %v4799_v48  ;;  %2735 = vmatprep.subr.bf16.mxu1 %v4804_v54 }
 0xa3f   :  { %2724 = vmatprep.mubr.bf16.mxu0 %v5576_v34  ;;  %2765 = vmatprep.mubr.bf16.mxu1 %v5576_v34 }
 0xa41   :  { %2695 = vmatpush1.bf16.msra.mxu0 %v4809_v21  ;;  %2736 = vmatpush1.bf16.msra.mxu1 %v4814_v9 }
 0xa42   :  { %2696 = vmatprep.subr.bf16.mxu0 %v4823_v3  ;;  %2737 = vmatprep.subr.bf16.mxu1 %v4828_v4 }
 0xa45   :  { %2697 = vmatpush1.bf16.msra.mxu0 %v4833_v14  ;;  %2738 = vmatpush1.bf16.msra.mxu1 %v4838_v27 }
 0xa46   :  { %2698 = vmatprep.subr.bf16.mxu0 %v4847_v57  ;;  %2739 = vmatprep.subr.bf16.mxu1 %v4852_v58 }
 0xa49   :  { %2699 = vmatpush1.bf16.msra.mxu0 %v4857_v59  ;;  %2740 = vmatpush1.bf16.msra.mxu1 %v4862_v60 }
 0xa4a   :  { %2700 = vmatprep.subr.bf16.mxu0 %v4871_v62  ;;  %2741 = vmatprep.subr.bf16.mxu1 %v4876_v63 }
 0xa4d   :  { %2701 = vmatpush1.bf16.msra.mxu0 %v4881_v1  ;;  %2742 = vmatpush1.bf16.msra.mxu1 %v4886_v2 }
 0xa4e   :  { %2702 = vmatprep.subr.bf16.mxu0 %v4895_v5  ;;  %2743 = vmatprep.subr.bf16.mxu1 %v4900_v6 }
 0xa51   :  { %2703 = vmatpush1.bf16.msra.mxu0 %v4905_v17  ;;  %2744 = vmatpush1.bf16.msra.mxu1 %v4910_v61 }
 0xa52   :  { %2704 = vmatprep.subr.bf16.mxu0 %v4919_v30  ;;  %2745 = vmatprep.subr.bf16.mxu1 %v4924_v38 }
 0xa55   :  { %2705 = vmatpush1.bf16.msra.mxu0 %v4929_v26  ;;  %2746 = vmatpush1.bf16.msra.mxu1 %v4934_v39 }
 0xa56   :  { %2706 = vmatprep.subr.bf16.mxu0 %v4939_v28  ;;  %2747 = vmatprep.subr.bf16.mxu1 %v4946_v32 }
 0xa59   :  { %2707 = vmatpush1.bf16.msra.mxu0 %v4953_v35  ;;  %2748 = vmatpush1.bf16.msra.mxu1 %v4958_v16 }
 0xa5a   :  { %2814 = vmatprep.subr.bf16.mxu0 %v4775_v23  ;;  %2855 = vmatprep.subr.bf16.mxu1 %v4780_v25 }
 0xafc   :  { %v2604_v7 = vpop.f32.mrf.mxu0  ;;  %v2645_v36 = vpop.f32.mrf.mxu1 }
 0xafd   :  { %v2652_v51 = vadd.f32 %v2604_v7, %v2024_v55  ;;  %v2654_v0 = vadd.f32 %v2645_v36, %v2097_v31 }
 0xafe   :  { %v2606_v10 = vpop.f32.mrf.mxu0  ;;  %v2647_v8 = vpop.f32.mrf.mxu1 }
 0xaff   :  { %v3478_v56 = vmul.f32 -1.442695, %v2652_v51  ;;  %v2653_v19 = vadd.f32 %v2606_v10, %v2026_v52  ;;  %v2655_v41 = vadd.f32 %v2647_v8, %v2099_v45 }
 0xb00   :  { %v2608_v11 = vpop.f32.mrf.mxu0  ;;  %v2649_v22 = vpop.f32.mrf.mxu1 }
 0xb01   :  { %3855 = vpow2.f32 %v3478_v56  ;;  %v3479_v42 = vmul.f32 -1.442695, %v2653_v19  ;;  %v3480_v53 = vmul.f32 -1.442695, %v2655_v41 }
 0xb02   :  { %v2609_v40 = vpop.f32.mrf.mxu0  ;;  %v2650_v49 = vpop.f32.mrf.mxu1 }
 0xb03   :  { %3857 = vpow2.f32 %v3479_v42  ;;  %v5625_v49 = vld [vmem:[#allocation18_spill] sm:$0xff] }
 0xb04   :  { %3859 = vtanh.f32 %v2654_v0  ;;  %v2030_v45 = vadd.f32 %v5625_v49, %v5077_v43 }
 0xb05   :  { %3861 = vpow2.f32 %v3480_v53 }
 0xb0e   :  { %v3856_v50 = vpop.eup %3855 }
 0xb0f   :  { %v2659_v13 = vadd.f32 1.0, %v3856_v50 }
 0xb10   :  { %v3858_v18 = vpop.eup %3857 }
 0xb11   :  { %3863 = vrcp.f32 %v2659_v13  ;;  %v2665_v12 = vadd.f32 1.0, %v3858_v18  ;;  %v3860_v24 = vpop.eup %3859 }
 0xb12   :  { %v3862_v55 = vpop.eup %3861 }
 0xb13   :  { %3865 = vrcp.f32 %v2665_v12  ;;  %v2672_v15 = vadd.f32 1.0, %v3862_v55  ;;  %v5626_v55 = vld [vmem:[#allocation16_spill] sm:$0xff] }
 0xb15   :  { %3867 = vrcp.f32 %v2672_v15 }
 0xb1e   :  { %v3864_v7 = vpop.eup %3863 }
 0xb1f   :  { %v2676_v52 = vmul.f32 %v3864_v7, %v3860_v24  ;;  %v2103_v7 = vadd.f32 %v5626_v55, %v5087_v46 }
 0xb20   :  { %v3866_v51 = vpop.eup %3865 }
 0xb21   :  { %v2675_v10 = vmul.f32 %v3866_v51, %v5141_v20  ;;  %v5624_v20 = vld [vmem:[#allocation15_spill] sm:$0xff]  ;;  %v5627_v51 = vld [vmem:[#allocation17_spill] sm:$0xff] }
 0xb22   :  { %v3868_v36 = vpop.eup %3867  ;;  %v2028_v22 = vadd.f32 %v5624_v20, %v5069_v47  ;;  %v2101_v15 = vadd.f32 %v5627_v51, %v5092_v44  ;;  %v5285_v51 = vld [vmem:[%s5542_s5 + $0xe0] ss:$16 sps:$4 sm:$0xff]  }
 0xb23   :  { %v5187_v8 = vadd.f32 %v2676_v52, %v2675_v10 }
 0xb25   :  { %3869 = vtanh.f32 %v5187_v8 }
 0xb32   :  { %v3870_v56 = vpop.eup %3869 }
 0xb33   :  { %v2679_v19 = vmul.f32 %v3870_v56, %v3868_v36 }
 0xb35   :  { %v2691_v11 = vpack.c.bf16 %v2679_v19, %v2679_v19 }
 0xb37   :  { %2725 = vmatmul.mubr.bf16.vlgmr.msra.gmra.mxu0 %v2691_v11  ;;  %2766 = vmatmul.mubr.bf16.vlgmr.msra.gmra.mxu1 %v2691_v11 }
 0xb38   :  { %2815 = vmatpush1.bf16.msra.mxu0 %v4785_v37  ;;  %2856 = vmatpush1.bf16.msra.mxu1 %v4790_v33 }
 0xb39   :  { %2816 = vmatprep.subr.bf16.mxu0 %v4799_v48  ;;  %2857 = vmatprep.subr.bf16.mxu1 %v4804_v54 }
 0xb3a   :  { %2846 = vmatprep.mubr.bf16.mxu0 %v5576_v34  ;;  %2887 = vmatprep.mubr.bf16.mxu1 %v5576_v34 }
 0xb3c   :  { %2817 = vmatpush1.bf16.msra.mxu0 %v4809_v21  ;;  %2858 = vmatpush1.bf16.msra.mxu1 %v4814_v9 }
 0xb3d   :  { %2818 = vmatprep.subr.bf16.mxu0 %v4823_v3  ;;  %2859 = vmatprep.subr.bf16.mxu1 %v4828_v4 }
 0xb40   :  { %2819 = vmatpush1.bf16.msra.mxu0 %v4833_v14  ;;  %2860 = vmatpush1.bf16.msra.mxu1 %v4838_v27 }
 0xb41   :  { %2820 = vmatprep.subr.bf16.mxu0 %v4847_v57  ;;  %2861 = vmatprep.subr.bf16.mxu1 %v4852_v58 }
 0xb44   :  { %2821 = vmatpush1.bf16.msra.mxu0 %v4857_v59  ;;  %2862 = vmatpush1.bf16.msra.mxu1 %v4862_v60 }
 0xb45   :  { %2822 = vmatprep.subr.bf16.mxu0 %v4871_v62  ;;  %2863 = vmatprep.subr.bf16.mxu1 %v4876_v63 }
 0xb48   :  { %2823 = vmatpush1.bf16.msra.mxu0 %v4881_v1  ;;  %2864 = vmatpush1.bf16.msra.mxu1 %v4886_v2 }
 0xb49   :  { %2824 = vmatprep.subr.bf16.mxu0 %v4895_v5  ;;  %2865 = vmatprep.subr.bf16.mxu1 %v4900_v6 }
 0xb4c   :  { %2825 = vmatpush1.bf16.msra.mxu0 %v4905_v17  ;;  %2866 = vmatpush1.bf16.msra.mxu1 %v4910_v61 }
 0xb4d   :  { %2826 = vmatprep.subr.bf16.mxu0 %v4919_v30  ;;  %2867 = vmatprep.subr.bf16.mxu1 %v4924_v38 }
 0xb50   :  { %2827 = vmatpush1.bf16.msra.mxu0 %v4929_v26  ;;  %2868 = vmatpush1.bf16.msra.mxu1 %v4934_v39 }
 0xb51   :  { %2828 = vmatprep.subr.bf16.mxu0 %v4939_v28  ;;  %2869 = vmatprep.subr.bf16.mxu1 %v4946_v32 }
 0xb54   :  { %2829 = vmatpush1.bf16.msra.mxu0 %v4953_v35  ;;  %2870 = vmatpush1.bf16.msra.mxu1 %v4958_v16 }
 0xb55   :  { %2936 = vmatprep.subr.bf16.mxu0 %v4775_v23  ;;  %2977 = vmatprep.subr.bf16.mxu1 %v4780_v25 }
 0xbf7   :  { %v2726_v42 = vpop.f32.mrf.mxu0  ;;  %v2767_v40 = vpop.f32.mrf.mxu1 }
 0xbf8   :  { %v2774_v41 = vadd.f32 %v2726_v42, %v2028_v22  ;;  %v2776_v10 = vadd.f32 %v2767_v40, %v2101_v15  ;;  %v5291_v15 = vld [vmem:[%s5542_s5 + $0xe8] ss:$16 sps:$4 sm:$0xff]  }
 0xbf9   :  { %v2728_v29 = vpop.f32.mrf.mxu0  ;;  %v2769_v31 = vpop.f32.mrf.mxu1 }
 0xbfa   :  { %v3481_v0 = vmul.f32 -1.442695, %v2774_v41  ;;  %v2775_v53 = vadd.f32 %v2728_v29, %v2030_v45  ;;  %v2777_v52 = vadd.f32 %v2769_v31, %v2103_v7 }
 0xbfb   :  { %v2730_v50 = vpop.f32.mrf.mxu0  ;;  %v2771_v13 = vpop.f32.mrf.mxu1 }
 0xbfc   :  { %3871 = vpow2.f32 %v3481_v0  ;;  %v3482_v18 = vmul.f32 -1.442695, %v2775_v53  ;;  %v3483_v36 = vmul.f32 -1.442695, %v2777_v52 }
 0xbfd   :  { %v2731_v12 = vpop.f32.mrf.mxu0  ;;  %v2772_v24 = vpop.f32.mrf.mxu1 }
 0xbfe   :  { %3873 = vpow2.f32 %v3482_v18 }
 0xbff   :  { %3875 = vtanh.f32 %v2776_v10  ;;  %v5297_v10 = vld [vmem:[%s5542_s5 + $0xc4] ss:$16 sps:$4 sm:$0xff]  }
 0xc00   :  { %3877 = vpow2.f32 %v3483_v36  ;;  %v5303_v36 = vld [vmem:[%s5542_s5 + $0xcc] ss:$16 sps:$4 sm:$0xff]  }
 0xc09   :  { %v3872_v56 = vpop.eup %3871 }
 0xc0a   :  { %v2781_v19 = vadd.f32 1.0, %v3872_v56  ;;  %v5311_v56 = vld [vmem:[%s5542_s5 + $0xc0] ss:$16 sps:$4 sm:$0xff]  }
 0xc0b   :  { %v3874_v11 = vpop.eup %3873 }
 0xc0c   :  { %3879 = vrcp.f32 %v2781_v19  ;;  %v2787_v20 = vadd.f32 1.0, %v3874_v11  ;;  %v3876_v22 = vpop.eup %3875  ;;  %v5317_v19 = vld [vmem:[%s5542_s5 + $0xc8] ss:$16 sps:$4 sm:$0xff]   ;;  %v5323_v11 = vld [vmem:[%s5542_s5 + $0xa4] ss:$16 sps:$4 sm:$0xff]  }
 0xc0d   :  { %v3878_v42 = vpop.eup %3877 }
 0xc0e   :  { %3881 = vrcp.f32 %v2787_v20  ;;  %v2794_v29 = vadd.f32 1.0, %v3878_v42  ;;  %v5329_v20 = vld [vmem:[%s5542_s5 + $0xac] ss:$16 sps:$4 sm:$0xff]   ;;  %v5341_v42 = vld [vmem:[%s5542_s5 + $0xa8] ss:$16 sps:$4 sm:$0xff]  }
 0xc10   :  { %3883 = vrcp.f32 %v2794_v29  ;;  %v5365_v29 = vld [vmem:[%s5542_s5 + $0x88] ss:$16 sps:$4 sm:$0xff]  }
 0xc19   :  { %v3880_v49 = vpop.eup %3879 }
 0xc1a   :  { %v2798_v45 = vmul.f32 %v3880_v49, %v3876_v22  ;;  %v5335_v22 = vld [vmem:[%s5542_s5 + $0xa0] ss:$16 sps:$4 sm:$0xff]   ;;  %v5347_v49 = vld [vmem:[%s5542_s5 + $0x84] ss:$16 sps:$4 sm:$0xff]  }
 0xc1b   :  { %v3882_v41 = vpop.eup %3881 }
 0xc1c   :  { %v2797_v31 = vmul.f32 %v3882_v41, %v5187_v8  ;;  %v5359_v41 = vld [vmem:[%s5542_s5 + $0x80] ss:$16 sps:$4 sm:$0xff]  }
 0xc1d   :  { %v3884_v40 = vpop.eup %3883 }
 0xc1e   :  { %v5233_v0 = vadd.f32 %v2798_v45, %v2797_v31  ;;  %v5353_v45 = vld [vmem:[%s5542_s5 + $0x8c] ss:$16 sps:$4 sm:$0xff]   ;;  %v5371_v31 = vld [vmem:[%s5542_s5 + $0x64] ss:$16 sps:$4 sm:$0xff]  }
 0xc20   :  { %3885 = vtanh.f32 %v5233_v0 }
 0xc2d   :  { %v3886_v53 = vpop.eup %3885 }
 0xc2e   :  { %v2801_v50 = vmul.f32 %v3886_v53, %v3884_v40  ;;  %v5383_v40 = vld [vmem:[%s5542_s5 + $0x60] ss:$16 sps:$4 sm:$0xff]   ;;  %v5389_v53 = vld [vmem:[%s5542_s5 + $0x68] ss:$16 sps:$4 sm:$0xff]  }
 0xc30   :  { %v2813_v13 = vpack.c.bf16 %v2801_v50, %v2801_v50  ;;  %v5395_v50 = vld [vmem:[%s5542_s5 + $0x44] ss:$16 sps:$4 sm:$0xff]  }
 0xc32   :  { %2847 = vmatmul.mubr.bf16.vlgmr.msra.gmra.mxu0 %v2813_v13  ;;  %2888 = vmatmul.mubr.bf16.vlgmr.msra.gmra.mxu1 %v2813_v13  ;;  %v5401_v13 = vld [vmem:[%s5542_s5 + $0x4c] ss:$16 sps:$4 sm:$0xff]  }
 0xc33   :  { %2937 = vmatpush1.bf16.msra.mxu0 %v4785_v37  ;;  %2978 = vmatpush1.bf16.msra.mxu1 %v4790_v33  ;;  %v5628_v37 = vld [vmem:[#allocation19_spill] sm:$0xff] }
 0xc34   :  { %2938 = vmatprep.subr.bf16.mxu0 %v4799_v48  ;;  %2979 = vmatprep.subr.bf16.mxu1 %v4804_v54  ;;  %v2034_v33 = vadd.f32 %v5628_v37, %v5069_v47  ;;  %v5407_v37 = vld [vmem:[%s5542_s5 + $0x40] ss:$16 sps:$4 sm:$0xff]  }
 0xc35   :  { %2968 = vmatprep.mubr.bf16.mxu0 %v5576_v34  ;;  %3009 = vmatprep.mubr.bf16.mxu1 %v5576_v34 }
 0xc37   :  { %2939 = vmatpush1.bf16.msra.mxu0 %v4809_v21  ;;  %2980 = vmatpush1.bf16.msra.mxu1 %v4814_v9  ;;  %v5629_v21 = vld [vmem:[#allocation22_spill] sm:$0xff] }
 0xc38   :  { %2940 = vmatprep.subr.bf16.mxu0 %v4823_v3  ;;  %2981 = vmatprep.subr.bf16.mxu1 %v4828_v4  ;;  %v2036_v9 = vadd.f32 %v5629_v21, %v5077_v43  ;;  %v5431_v21 = vld [vmem:[%s5542_s5 + $0x20] ss:$16 sps:$4 sm:$0xff]  }
 0xc3b   :  { %2941 = vmatpush1.bf16.msra.mxu0 %v4833_v14  ;;  %2982 = vmatpush1.bf16.msra.mxu1 %v4838_v27 }
 0xc3c   :  { %2942 = vmatprep.subr.bf16.mxu0 %v4847_v57  ;;  %2983 = vmatprep.subr.bf16.mxu1 %v4852_v58 }
 0xc3f   :  { %2943 = vmatpush1.bf16.msra.mxu0 %v4857_v59  ;;  %2984 = vmatpush1.bf16.msra.mxu1 %v4862_v60 }
 0xc40   :  { %2944 = vmatprep.subr.bf16.mxu0 %v4871_v62  ;;  %2985 = vmatprep.subr.bf16.mxu1 %v4876_v63 }
 0xc43   :  { %2945 = vmatpush1.bf16.msra.mxu0 %v4881_v1  ;;  %2986 = vmatpush1.bf16.msra.mxu1 %v4886_v2  ;;  %v5631_v2 = vld [vmem:[#allocation21_spill] sm:$0xff] }
 0xc44   :  { %2946 = vmatprep.subr.bf16.mxu0 %v4895_v5  ;;  %2987 = vmatprep.subr.bf16.mxu1 %v4900_v6  ;;  %v2107_v5 = vadd.f32 %v5631_v2, %v5092_v44 }
 0xc47   :  { %2947 = vmatpush1.bf16.msra.mxu0 %v4905_v17  ;;  %2988 = vmatpush1.bf16.msra.mxu1 %v4910_v61 }
 0xc48   :  { %2948 = vmatprep.subr.bf16.mxu0 %v4919_v30  ;;  %2989 = vmatprep.subr.bf16.mxu1 %v4924_v38 }
 0xc4b   :  { %2949 = vmatpush1.bf16.msra.mxu0 %v4929_v26  ;;  %2990 = vmatpush1.bf16.msra.mxu1 %v4934_v39 }
 0xc4c   :  { %2950 = vmatprep.subr.bf16.mxu0 %v4939_v28  ;;  %2991 = vmatprep.subr.bf16.mxu1 %v4946_v32 }
 0xc4f   :  { %2951 = vmatpush1.bf16.msra.mxu0 %v4953_v35  ;;  %2992 = vmatpush1.bf16.msra.mxu1 %v4958_v16 }
 0xc50   :  { %3058 = vmatprep.subr.bf16.mxu0 %v4775_v23  ;;  %3099 = vmatprep.subr.bf16.mxu1 %v4780_v25  ;;  %v5630_v25 = vld [vmem:[#allocation20_spill] sm:$0xff] }
 0xc51   :  { %v2109_v63 = vadd.f32 %v5630_v25, %v5087_v46  ;;  %v5633_v25 = vld [vmem:[#allocation26_spill] sm:$0xff] }
 0xcf2   :  { %v2848_v48 = vpop.f32.mrf.mxu0  ;;  %v2889_v54 = vpop.f32.mrf.mxu1 }
 0xcf3   :  { %v2896_v3 = vadd.f32 %v2848_v48, %v2034_v33  ;;  %v2898_v6 = vadd.f32 %v2889_v54, %v2107_v5  ;;  %v5413_v33 = vld [vmem:[%s5542_s5 + $0x48] ss:$16 sps:$4 sm:$0xff]   ;;  %v5419_v48 = vld [vmem:[%s5542_s5 + $0x24] ss:$16 sps:$4 sm:$0xff]   ;;  %v5425_v54 = vld [vmem:[%s5542_s5 + $0x2c] ss:$16 sps:$4 sm:$0xff]  }
 0xcf4   :  { %v2850_v4 = vpop.f32.mrf.mxu0  ;;  %v2891_v14 = vpop.f32.mrf.mxu1 }
 0xcf5   :  { %v3484_v27 = vmul.f32 -1.442695, %v2896_v3  ;;  %v2897_v57 = vadd.f32 %v2850_v4, %v2036_v9  ;;  %v2899_v1 = vadd.f32 %v2891_v14, %v2109_v63  ;;  %v5437_v9 = vld [vmem:[%s5542_s5 + $0x28] ss:$16 sps:$4 sm:$0xff]   ;;  %v5443_v3 = vld [vmem:[%s5542_s5 + $0x4] ss:$16 sps:$4 sm:$0xff]   ;;  %v2040_v63 = vadd.f32 %v5633_v25, %v5077_v43 }
 0xcf6   :  { %v2852_v58 = vpop.f32.mrf.mxu0  ;;  %v2893_v59 = vpop.f32.mrf.mxu1  ;;  %v5449_v4 = vld [vmem:[%s5542_s5 + $0xc] ss:$16 sps:$4 sm:$0xff]   ;;  %v5455_v14 = vld [vmem:[%s5542_s5] ss:$16 sps:$4 sm:$0xff]  }
 0xcf7   :  { %3887 = vpow2.f32 %v3484_v27  ;;  %v3485_v60 = vmul.f32 -1.442695, %v2897_v57  ;;  %v3486_v17 = vmul.f32 -1.442695, %v2899_v1  ;;  %v5461_v27 = vld [vmem:[%s5542_s5 + $0x8] ss:$16 sps:$4 sm:$0xff]  }
 0xcf8   :  { %v2853_v23 = vpop.f32.mrf.mxu0  ;;  %v2894_v62 = vpop.f32.mrf.mxu1  ;;  %v4013_v57 = vld [vmem:[%s5542_s5 + $0xe4] ss:$16 sps:$4 sm:$0xff]   ;;  %v4014_v58 = vld [vmem:[%s5542_s5 + $0xec] ss:$16 sps:$4 sm:$0xff]  }
 0xcf9   :  { %3889 = vpow2.f32 %v3485_v60  ;;  %v5632_v59 = vld [vmem:[#allocation23_spill] sm:$0xff] }
 0xcfa   :  { %3891 = vtanh.f32 %v2898_v6  ;;  %v2038_v60 = vadd.f32 %v5632_v59, %v5069_v47 }
 0xcfb   :  { %3893 = vpow2.f32 %v3486_v17 }
 0xd04   :  { %v3888_v61 = vpop.eup %3887 }
 0xd05   :  { %v2903_v30 = vadd.f32 1.0, %v3888_v61 }
 0xd06   :  { %v3890_v38 = vpop.eup %3889 }
 0xd07   :  { %3895 = vrcp.f32 %v2903_v30  ;;  %v2909_v26 = vadd.f32 1.0, %v3890_v38  ;;  %v3892_v39 = vpop.eup %3891 }
 0xd08   :  { %v3894_v28 = vpop.eup %3893 }
 0xd09   :  { %3897 = vrcp.f32 %v2909_v26  ;;  %v2916_v8 = vadd.f32 1.0, %v3894_v28  ;;  %v5634_v28 = vld [vmem:[#allocation24_spill] sm:$0xff] }
 0xd0b   :  { %3899 = vrcp.f32 %v2916_v8 }
 0xd14   :  { %v3896_v32 = vpop.eup %3895 }
 0xd15   :  { %v2920_v35 = vmul.f32 %v3896_v32, %v3892_v39  ;;  %v2113_v32 = vadd.f32 %v5634_v28, %v5087_v46 }
 0xd16   :  { %v3898_v16 = vpop.eup %3897 }
 0xd17   :  { %v2919_v18 = vmul.f32 %v3898_v16, %v5233_v0  ;;  %v5377_v0 = vld [vmem:[%s5542_s5 + $0x6c] ss:$16 sps:$4 sm:$0xff]   ;;  %v5635_v16 = vld [vmem:[#allocation25_spill] sm:$0xff] }
 0xd18   :  { %v3900_v24 = vpop.eup %3899  ;;  %v2111_v8 = vadd.f32 %v5635_v16, %v5092_v44 }
 0xd19   :  { %v5279_v12 = vadd.f32 %v2920_v35, %v2919_v18 }
 0xd1b   :  { %3901 = vtanh.f32 %v5279_v12 }
 0xd28   :  { %v3902_v55 = vpop.eup %3901 }
 0xd29   :  { %v2923_v7 = vmul.f32 %v3902_v55, %v3900_v24 }
 0xd2b   :  { %v2935_v52 = vpack.c.bf16 %v2923_v7, %v2923_v7 }
 0xd2d   :  { %2969 = vmatmul.mubr.bf16.vlgmr.msra.gmra.mxu0 %v2935_v52  ;;  %3010 = vmatmul.mubr.bf16.vlgmr.msra.gmra.mxu1 %v2935_v52 }
 0xd2e   :  { %3059 = vmatpush1.bf16.msra.mxu0 %v5285_v51  ;;  %3100 = vmatpush1.bf16.msra.mxu1 %v5291_v15 }
 0xd2f   :  { %3060 = vmatprep.subr.bf16.mxu0 %v5297_v10  ;;  %3101 = vmatprep.subr.bf16.mxu1 %v5303_v36 }
 0xd30   :  { %3090 = vmatprep.mubr.bf16.mxu0 %v5576_v34  ;;  %3131 = vmatprep.mubr.bf16.mxu1 %v5576_v34 }
 0xd32   :  { %3061 = vmatpush1.bf16.msra.mxu0 %v5311_v56  ;;  %3102 = vmatpush1.bf16.msra.mxu1 %v5317_v19 }
 0xd33   :  { %3062 = vmatprep.subr.bf16.mxu0 %v5323_v11  ;;  %3103 = vmatprep.subr.bf16.mxu1 %v5329_v20 }
 0xd36   :  { %3063 = vmatpush1.bf16.msra.mxu0 %v5335_v22  ;;  %3104 = vmatpush1.bf16.msra.mxu1 %v5341_v42 }
 0xd37   :  { %3064 = vmatprep.subr.bf16.mxu0 %v5347_v49  ;;  %3105 = vmatprep.subr.bf16.mxu1 %v5353_v45 }
 0xd3a   :  { %3065 = vmatpush1.bf16.msra.mxu0 %v5359_v41  ;;  %3106 = vmatpush1.bf16.msra.mxu1 %v5365_v29 }
 0xd3b   :  { %3066 = vmatprep.subr.bf16.mxu0 %v5371_v31  ;;  %3107 = vmatprep.subr.bf16.mxu1 %v5377_v0 }
 0xd3e   :  { %3067 = vmatpush1.bf16.msra.mxu0 %v5383_v40  ;;  %3108 = vmatpush1.bf16.msra.mxu1 %v5389_v53 }
 0xd3f   :  { %3068 = vmatprep.subr.bf16.mxu0 %v5395_v50  ;;  %3109 = vmatprep.subr.bf16.mxu1 %v5401_v13 }
 0xd42   :  { %3069 = vmatpush1.bf16.msra.mxu0 %v5407_v37  ;;  %3110 = vmatpush1.bf16.msra.mxu1 %v5413_v33 }
 0xd43   :  { %3070 = vmatprep.subr.bf16.mxu0 %v5419_v48  ;;  %3111 = vmatprep.subr.bf16.mxu1 %v5425_v54 }
 0xd46   :  { %3071 = vmatpush1.bf16.msra.mxu0 %v5431_v21  ;;  %3112 = vmatpush1.bf16.msra.mxu1 %v5437_v9 }
 0xd47   :  { %3072 = vmatprep.subr.bf16.mxu0 %v5443_v3  ;;  %3113 = vmatprep.subr.bf16.mxu1 %v5449_v4 }
 0xd4a   :  { %3073 = vmatpush1.bf16.msra.mxu0 %v5455_v14  ;;  %3114 = vmatpush1.bf16.msra.mxu1 %v5461_v27 }
 0xd4b   :  { %3180 = vmatprep.subr.bf16.mxu0 %v4013_v57  ;;  %3221 = vmatprep.subr.bf16.mxu1 %v4014_v58 }
 0xded   :  { %v2970_v23 = vpop.f32.mrf.mxu0  ;;  %v3011_v62 = vpop.f32.mrf.mxu1 }
 0xdee   :  { %v3018_v1 = vadd.f32 %v2970_v23, %v2038_v60  ;;  %v3020_v18 = vadd.f32 %v3011_v62, %v2111_v8 }
 0xdef   :  { %v2972_v2 = vpop.f32.mrf.mxu0  ;;  %v3013_v5 = vpop.f32.mrf.mxu1 }
 0xdf0   :  { %v3487_v6 = vmul.f32 -1.442695, %v3018_v1  ;;  %v3019_v17 = vadd.f32 %v2972_v2, %v2040_v63  ;;  %v3021_v35 = vadd.f32 %v3013_v5, %v2113_v32 }
 0xdf1   :  { %v2974_v61 = vpop.f32.mrf.mxu0  ;;  %v3015_v30 = vpop.f32.mrf.mxu1 }
 0xdf2   :  { %3903 = vpow2.f32 %v3487_v6  ;;  %v3488_v38 = vmul.f32 -1.442695, %v3019_v17  ;;  %v3489_v24 = vmul.f32 -1.442695, %v3021_v35  ;;  %v5640_v35 = vld [vmem:[#allocation31_spill] sm:$0xff] }
 0xdf3   :  { %v2975_v26 = vpop.f32.mrf.mxu0  ;;  %v3016_v39 = vpop.f32.mrf.mxu1  ;;  %v2048_v16 = vadd.f32 %v5640_v35, %v5069_v47 }
 0xdf4   :  { %3905 = vpow2.f32 %v3488_v38 }
 0xdf5   :  { %3907 = vtanh.f32 %v3020_v18 }
 0xdf6   :  { %3909 = vpow2.f32 %v3489_v24  ;;  %v5641_v24 = vld [vmem:[#allocation13_spill] sm:$0xff] }
 0xdff   :  { %v3904_v55 = vpop.eup %3903 }
 0xe00   :  { %v3025_v7 = vadd.f32 1.0, %v3904_v55  ;;  %v2050_v55 = vadd.f32 %v5641_v24, %v5077_v43 }
 0xe01   :  { %v3906_v52 = vpop.eup %3905 }
 0xe02   :  { %3911 = vrcp.f32 %v3025_v7  ;;  %v3031_v57 = vadd.f32 1.0, %v3906_v52  ;;  %v3908_v58 = vpop.eup %3907 }
 0xe03   :  { %v3910_v59 = vpop.eup %3909 }
 0xe04   :  { %3913 = vrcp.f32 %v3031_v57  ;;  %v3038_v63 = vadd.f32 1.0, %v3910_v59 }
 0xe06   :  { %3915 = vrcp.f32 %v3038_v63 }
 0xe0f   :  { %v3912_v60 = vpop.eup %3911 }
 0xe10   :  { %v3042_v23 = vmul.f32 %v3912_v60, %v3908_v58 }
 0xe11   :  { %v3914_v25 = vpop.eup %3913 }
 0xe12   :  { %v3041_v1 = vmul.f32 %v3914_v25, %v5279_v12 }
 0xe13   :  { %v3916_v62 = vpop.eup %3915 }
 0xe14   :  { %v5479_v2 = vadd.f32 %v3042_v23, %v3041_v1 }
 0xe16   :  { %3917 = vtanh.f32 %v5479_v2 }
 0xe23   :  { %v3918_v5 = vpop.eup %3917 }
 0xe24   :  { %v3045_v6 = vmul.f32 %v3918_v5, %v3916_v62  ;;  %v5643_v5 = vld [vmem:[#allocation32_spill] sm:$0xff] }
 0xe26   :  { %v3057_v17 = vpack.c.bf16 %v3045_v6, %v3045_v6  ;;  %v2121_v6 = vadd.f32 %v5643_v5, %v5092_v44 }
 0xe28   :  { %3091 = vmatmul.mubr.bf16.vlgmr.msra.gmra.mxu0 %v3057_v17  ;;  %3132 = vmatmul.mubr.bf16.vlgmr.msra.gmra.mxu1 %v3057_v17 }
 0xe29   :  { %3181 = vmatpush1.bf16.msra.mxu0 %v5285_v51  ;;  %3222 = vmatpush1.bf16.msra.mxu1 %v5291_v15 }
 0xe2a   :  { %3182 = vmatprep.subr.bf16.mxu0 %v5297_v10  ;;  %3223 = vmatprep.subr.bf16.mxu1 %v5303_v36  ;;  %v5637_v10 = vld [vmem:[#allocation30_spill] sm:$0xff] }
 0xe2b   :  { %3212 = vmatprep.mubr.bf16.mxu0 %v5576_v34  ;;  %3253 = vmatprep.mubr.bf16.mxu1 %v5576_v34  ;;  %v5636_v34 = vld [vmem:[#allocation27_spill] sm:$0xff]  ;;  %v2046_v36 = vadd.f32 %v5637_v10, %v5077_v43 }
 0xe2c   :  { %v2044_v12 = vadd.f32 %v5636_v34, %v5069_v47 }
 0xe2d   :  { %3183 = vmatpush1.bf16.msra.mxu0 %v5311_v56  ;;  %3224 = vmatpush1.bf16.msra.mxu1 %v5317_v19 }
 0xe2e   :  { %3184 = vmatprep.subr.bf16.mxu0 %v5323_v11  ;;  %3225 = vmatprep.subr.bf16.mxu1 %v5329_v20 }
 0xe31   :  { %3185 = vmatpush1.bf16.msra.mxu0 %v5335_v22  ;;  %3226 = vmatpush1.bf16.msra.mxu1 %v5341_v42 }
 0xe32   :  { %3186 = vmatprep.subr.bf16.mxu0 %v5347_v49  ;;  %3227 = vmatprep.subr.bf16.mxu1 %v5353_v45 }
 0xe35   :  { %3187 = vmatpush1.bf16.msra.mxu0 %v5359_v41  ;;  %3228 = vmatpush1.bf16.msra.mxu1 %v5365_v29 }
 0xe36   :  { %3188 = vmatprep.subr.bf16.mxu0 %v5371_v31  ;;  %3229 = vmatprep.subr.bf16.mxu1 %v5377_v0  ;;  %v5638_v31 = vld [vmem:[#allocation28_spill] sm:$0xff] }
 0xe37   :  { %v2119_v0 = vadd.f32 %v5638_v31, %v5087_v46 }
 0xe39   :  { %3189 = vmatpush1.bf16.msra.mxu0 %v5383_v40  ;;  %3230 = vmatpush1.bf16.msra.mxu1 %v5389_v53  ;;  %v5639_v53 = vld [vmem:[#allocation29_spill] sm:$0xff] }
 0xe3a   :  { %3190 = vmatprep.subr.bf16.mxu0 %v5395_v50  ;;  %3231 = vmatprep.subr.bf16.mxu1 %v5401_v13  ;;  %v2117_v50 = vadd.f32 %v5639_v53, %v5092_v44 }
 0xe3d   :  { %3191 = vmatpush1.bf16.msra.mxu0 %v5407_v37  ;;  %3232 = vmatpush1.bf16.msra.mxu1 %v5413_v33 }
 0xe3e   :  { %3192 = vmatprep.subr.bf16.mxu0 %v5419_v48  ;;  %3233 = vmatprep.subr.bf16.mxu1 %v5425_v54 }
 0xe41   :  { %3193 = vmatpush1.bf16.msra.mxu0 %v5431_v21  ;;  %3234 = vmatpush1.bf16.msra.mxu1 %v5437_v9 }
 0xe42   :  { %3194 = vmatprep.subr.bf16.mxu0 %v5443_v3  ;;  %3235 = vmatprep.subr.bf16.mxu1 %v5449_v4 }
 0xe45   :  { %3195 = vmatpush1.bf16.msra.mxu0 %v5455_v14  ;;  %3236 = vmatpush1.bf16.msra.mxu1 %v5461_v27 }
 0xee8   :  { %v3092_v51 = vpop.f32.mrf.mxu0  ;;  %v3133_v15 = vpop.f32.mrf.mxu1 }
 0xee9   :  { %v3140_v56 = vadd.f32 %v3092_v51, %v2044_v12  ;;  %v3142_v13 = vadd.f32 %v3133_v15, %v2117_v50 }
 0xeea   :  { %v3094_v19 = vpop.f32.mrf.mxu0  ;;  %v3135_v11 = vpop.f32.mrf.mxu1 }
 0xeeb   :  { %v3490_v20 = vmul.f32 -1.442695, %v3140_v56  ;;  %v3141_v22 = vadd.f32 %v3094_v19, %v2046_v36  ;;  %v3143_v40 = vadd.f32 %v3135_v11, %v2119_v0 }
 0xeec   :  { %v3096_v42 = vpop.f32.mrf.mxu0  ;;  %v3137_v49 = vpop.f32.mrf.mxu1 }
 0xeed   :  { %3919 = vpow2.f32 %v3490_v20  ;;  %v3491_v45 = vmul.f32 -1.442695, %v3141_v22  ;;  %v3492_v37 = vmul.f32 -1.442695, %v3143_v40 }
 0xeee   :  { %v3097_v41 = vpop.f32.mrf.mxu0  ;;  %v3138_v29 = vpop.f32.mrf.mxu1 }
 0xeef   :  { %3921 = vpow2.f32 %v3491_v45 }
 0xef0   :  { %3923 = vtanh.f32 %v3142_v13 }
 0xef1   :  { %3925 = vpow2.f32 %v3492_v37 }
 0xefa   :  { %v3920_v33 = vpop.eup %3919 }
 0xefb   :  { %v3147_v48 = vadd.f32 1.0, %v3920_v33 }
 0xefc   :  { %v3922_v54 = vpop.eup %3921 }
 0xefd   :  { %3927 = vrcp.f32 %v3147_v48  ;;  %v3153_v21 = vadd.f32 1.0, %v3922_v54  ;;  %v3924_v9 = vpop.eup %3923 }
 0xefe   :  { %v3926_v3 = vpop.eup %3925 }
 0xeff   :  { %3929 = vrcp.f32 %v3153_v21  ;;  %v3160_v61 = vadd.f32 1.0, %v3926_v3 }
 0xf01   :  { %3931 = vrcp.f32 %v3160_v61 }
 0xf0a   :  { %v3928_v4 = vpop.eup %3927 }
 0xf0b   :  { %v3164_v14 = vmul.f32 %v3928_v4, %v3924_v9 }
 0xf0c   :  { %v3930_v27 = vpop.eup %3929 }
 0xf0d   :  { %v3163_v30 = vmul.f32 %v3930_v27, %v5479_v2  ;;  %v5642_v2 = vld [vmem:[#allocation33_spill] sm:$0xff] }
 0xf0e   :  { %v3932_v26 = vpop.eup %3931  ;;  %v2123_v47 = vadd.f32 %v5642_v2, %v5087_v46 }
 0xf0f   :  { %v3165_v38 = vadd.f32 %v3164_v14, %v3163_v30 }
 0xf11   :  { %3933 = vtanh.f32 %v3165_v38 }
 0xf1e   :  { %v3934_v39 = vpop.eup %3933 }
 0xf1f   :  { %v3167_v28 = vmul.f32 %v3934_v39, %v3932_v26 }
 0xf21   :  { %v3179_v32 = vpack.c.bf16 %v3167_v28, %v3167_v28 }
 0xf23   :  { %3213 = vmatmul.mubr.bf16.vlgmr.msra.gmra.mxu0 %v3179_v32  ;;  %3254 = vmatmul.mubr.bf16.vlgmr.msra.gmra.mxu1 %v3179_v32 }
 0xfe3   :  { %v3214_v8 = vpop.f32.mrf.mxu0  ;;  %v3255_v18 = vpop.f32.mrf.mxu1 }
 0xfe4   :  { %v3262_v7 = vadd.f32 %v3214_v8, %v2048_v16  ;;  %v3264_v43 = vadd.f32 %v3255_v18, %v2121_v6 }
 0xfe5   :  { %v3216_v52 = vpop.f32.mrf.mxu0  ;;  %v3257_v57 = vpop.f32.mrf.mxu1 }
 0xfe6   :  { %v3493_v58 = vmul.f32 -1.442695, %v3262_v7  ;;  %v3263_v59 = vadd.f32 %v3216_v52, %v2050_v55  ;;  %v3265_v62 = vadd.f32 %v3257_v57, %v2123_v47 }
 0xfe7   :  { %v3218_v60 = vpop.f32.mrf.mxu0  ;;  %v3259_v23 = vpop.f32.mrf.mxu1 }
 0xfe8   :  { %3935 = vpow2.f32 %v3493_v58  ;;  %v3494_v25 = vmul.f32 -1.442695, %v3263_v59  ;;  %v3495_v17 = vmul.f32 -1.442695, %v3265_v62 }
 0xfe9   :  { %v3219_v63 = vpop.f32.mrf.mxu0  ;;  %v3260_v1 = vpop.f32.mrf.mxu1 }
 0xfea   :  { %3937 = vpow2.f32 %v3494_v25 }
 0xfeb   :  { %3939 = vtanh.f32 %v3264_v43 }
 0xfec   :  { %3941 = vpow2.f32 %v3495_v17 }
 0xff5   :  { %v3936_v34 = vpop.eup %3935 }
 0xff6   :  { %v3269_v12 = vadd.f32 1.0, %v3936_v34 }
 0xff7   :  { %v3938_v51 = vpop.eup %3937 }
 0xff8   :  { %3943 = vrcp.f32 %v3269_v12  ;;  %v3275_v15 = vadd.f32 1.0, %v3938_v51  ;;  %v3940_v10 = vpop.eup %3939 }
 0xff9   :  { %v3942_v36 = vpop.eup %3941 }
 0xffa   :  { %3945 = vrcp.f32 %v3275_v15  ;;  %v3282_v46 = vadd.f32 1.0, %v3942_v36 }
 0xffc   :  { %3947 = vrcp.f32 %v3282_v46 }
0x1005   :  { %v3944_v56 = vpop.eup %3943 }
0x1006   :  { %v3286_v19 = vmul.f32 %v3944_v56, %v3940_v10 }
0x1007   :  { %v3946_v11 = vpop.eup %3945 }
0x1008   :  { %v3285_v20 = vmul.f32 %v3946_v11, %v3165_v38 }
0x1009   :  { %v3948_v44 = vpop.eup %3947 }
0x100a   :  { %v3287_v22 = vadd.f32 %v3286_v19, %v3285_v20 }
0x100c   :  { %3949 = vtanh.f32 %v3287_v22  ;;  %3302 = vst [vmem:[%s5545_s8 + $0x8] sm:$0xff] %v3287_v22 }
0x1019   :  { %v3950_v42 = vpop.eup %3949 }
0x101a   :  { %v3289_v49 = vmul.f32 %v3950_v42, %v3948_v44 }
0x101c   :  { %3298 = vst [vmem:[%s5544_s7 + $0x8] sm:$0xff] %v3289_v49 }
0x101d   :  { %3311 = vsyncpa [#allocation7], 1 }
0x101e   :  { %3312 = vsyncpa [#allocation9], 1 }

</bundles_post_ra>
